<compile_context>
chip_gen: v5e
topology: v5e:2x2
jax: 0.10.0
libtpu: 0.0.40
codegen_flags: <defaults>
</compile_context>

<pallas_src>
import functools

import jax
import jax.numpy as jnp
from jax import lax
from jax.experimental import pallas as pl

EPS = 1e-5


def mul_conv1x1_bn_kernel(x_ref, s_ref, w_ref, g_ref, b_ref, o_ref, *, p_true):
    # x_ref : [P_pad, C]     flattened spatial positions (zero-padded rows)
    # s_ref : [1, C]         per-Cin scale (the x422 broadcast multiply)
    # w_ref : [Cout, C]      1x1 conv weight, consumed untransposed
    # g_ref : [1, Cout]      batchnorm gamma
    # b_ref : [1, Cout]      batchnorm beta
    # o_ref : [P_pad, Cout]  output
    y = x_ref[...] * s_ref[...]                                  # VPU broadcast mul
    # Transposed-RHS matmul on the MXU: contract Cin of both operands -> [P_pad, Cout].
    z = lax.dot_general(
        y, w_ref[...],
        dimension_numbers=(((1,), (1,)), ((), ())),
        preferred_element_type=jnp.float32,
    )

    # BatchNorm2d (training mode): biased batch statistics per output channel over
    # the TRUE P positions.  Padded x rows give z == 0, so the sum-based mean is
    # exact; the variance masks padded rows before squaring (numerically safe
    # two-pass form).
    inv_p = 1.0 / float(p_true)
    mean = jnp.sum(z, axis=0, keepdims=True) * inv_p             # [1, Cout]
    row = lax.broadcasted_iota(jnp.int32, z.shape, 0)
    d = jnp.where(row < p_true, z - mean, 0.0)
    var = jnp.sum(d * d, axis=0, keepdims=True) * inv_p          # [1, Cout]
    inv = lax.rsqrt(var + EPS)

    # Fold the BN affine into a single FMA over the [P_pad, Cout] tile.
    a = inv * g_ref[...]                                         # [1, Cout]
    c = b_ref[...] - mean * a                                    # [1, Cout]
    o_ref[...] = z * a + c


def _round_up(v, m):
    return ((v + m - 1) // m) * m


def mul_conv1x1_bn(x_nchw, scale_nc11, w_oi11, gamma, beta):
    N, C, H, W = x_nchw.shape
    Cout = w_oi11.shape[0]
    P = N * H * W

    # The scale is per-channel (batch dim 1), so it broadcasts over all P rows.
    assert scale_nc11.shape == (1, C, 1, 1)

    # Only the rows (sublane / MXU-M axis) need padding; channels stay exact
    # because full-extent blocks satisfy the (8, 128) rule.
    P_pad = max(_round_up(P, 8), 64)

    # NCHW -> [P, C]; this is the only data movement done outside the kernel
    # (~227 KB).  The weight / gamma / beta / scale reshapes are metadata-only.
    x2d = jnp.transpose(x_nchw, (0, 2, 3, 1)).reshape(P, C)
    x2d = jnp.pad(x2d, ((0, P_pad - P), (0, 0)))
    s2d = scale_nc11.reshape(1, C)
    w2d = w_oi11.reshape(Cout, C)          # no transpose, no pad
    g2d = gamma.reshape(1, Cout)
    b2d = beta.reshape(1, Cout)

    cost = pl.CostEstimate(
        flops=2 * P_pad * C * Cout,
        transcendentals=Cout,              # rsqrt per output channel
        bytes_accessed=4 * (P_pad * C + Cout * C + P_pad * Cout),
    )

    kernel = functools.partial(mul_conv1x1_bn_kernel, p_true=P)

    out2d = pl.pallas_call(
        kernel,
        out_shape=jax.ShapeDtypeStruct((P_pad, Cout), jnp.float32),
        grid=(1,),
        in_specs=[
            pl.BlockSpec((P_pad, C), lambda i: (0, 0)),    # x, fully resident
            pl.BlockSpec((1, C), lambda i: (0, 0)),        # per-Cin scale
            pl.BlockSpec((Cout, C), lambda i: (0, 0)),     # weight, untransposed
            pl.BlockSpec((1, Cout), lambda i: (0, 0)),     # gamma
            pl.BlockSpec((1, Cout), lambda i: (0, 0)),     # beta
        ],
        out_specs=pl.BlockSpec((P_pad, Cout), lambda i: (0, 0)),
        cost_estimate=cost,
    )(x2d, s2d, w2d, g2d, b2d)

    # Slice away row padding, [P, Cout] -> NCHW.
    out2d = out2d[:P, :]
    return jnp.transpose(out2d.reshape(N, H, W, Cout), (0, 3, 1, 2))


def reference(x_nchw, scale_nc11, w_oi11, gamma, beta):
    y = x_nchw * scale_nc11
    z = jnp.einsum("nchw,oc->nohw", y, w_oi11.reshape(w_oi11.shape[0], -1))
    mean = jnp.mean(z, axis=(0, 2, 3), keepdims=True)
    var = jnp.mean((z - mean) ** 2, axis=(0, 2, 3), keepdims=True)
    zn = (z - mean) * lax.rsqrt(var + EPS)
    return zn * gamma.reshape(1, -1, 1, 1) + beta.reshape(1, -1, 1, 1)


if __name__ == "__main__":
    # Shapes implied by the module: x417 [1, 888, 7, 7], x422 [1, 888, 1, 1].
    N, C, H, W = 1, 888, 7, 7
    key = jax.random.PRNGKey(0)
    k1, k2, k3, k4, k5 = jax.random.split(key, 5)

    x417 = jax.random.normal(k1, (N, C, H, W), dtype=jnp.float32)
    x422 = jax.random.normal(k2, (1, C, 1, 1), dtype=jnp.float32)

    # Deterministic synthetic parameters (Conv2d weight [Cout, Cin, 1, 1], BN gamma/beta).
    conv_w = jax.random.normal(k3, (C, C, 1, 1), dtype=jnp.float32) * (1.0 / jnp.sqrt(C))
    gamma = 1.0 + 0.1 * jax.random.normal(k4, (C,), dtype=jnp.float32)
    beta = 0.1 * jax.random.normal(k5, (C,), dtype=jnp.float32)

    fwd = jax.jit(mul_conv1x1_bn)
    out = fwd(x417, x422, conv_w, gamma, beta)
    out = jax.block_until_ready(out)

    ref = reference(x417, x422, conv_w, gamma, beta)
    assert out.shape == (N, C, H, W)
    assert jnp.allclose(out, ref, atol=1e-3, rtol=1e-3)

    # TODO(synk): PyTorch BatchNorm2d in training mode also updates the
    # running_mean/running_var buffers; only the normalized forward output
    # (the module's return value) is produced here.
    print("KERNEL_OK")
</pallas_src>

<mosaic_0001>
module attributes {stable_mosaic.version = 11 : i64} {
  func.func @mul_conv1x1_bn_kernel(%arg0: i32, %arg1: memref<64x888xf32, #tpu.memory_space<vmem>>, %arg2: memref<1x888xf32, #tpu.memory_space<vmem>>, %arg3: memref<888x888xf32, #tpu.memory_space<vmem>>, %arg4: memref<1x888xf32, #tpu.memory_space<vmem>>, %arg5: memref<1x888xf32, #tpu.memory_space<vmem>>, %arg6: memref<64x888xf32, #tpu.memory_space<vmem>>) attributes {dimension_semantics = [#tpu.dimension_semantics<arbitrary>], iteration_bounds = array<i64: 1>, scalar_prefetch = 0 : i64, scratch_operands = 0 : i64, tpu.core_type = #tpu.core_type<tc>, window_params = [{pipeline_mode = #tpu.pipeline_mode<synchronous>, transform_indices = @transform_0, window_bounds = array<i64: 64, 888>}, {pipeline_mode = #tpu.pipeline_mode<synchronous>, transform_indices = @transform_1, window_bounds = array<i64: 1, 888>}, {pipeline_mode = #tpu.pipeline_mode<synchronous>, transform_indices = @transform_2, window_bounds = array<i64: 888, 888>}, {pipeline_mode = #tpu.pipeline_mode<synchronous>, transform_indices = @transform_3, window_bounds = array<i64: 1, 888>}, {pipeline_mode = #tpu.pipeline_mode<synchronous>, transform_indices = @transform_4, window_bounds = array<i64: 1, 888>}, {pipeline_mode = #tpu.pipeline_mode<synchronous>, transform_indices = @transform_5, window_bounds = array<i64: 64, 888>}]} {
    %c0 = arith.constant 0 : index
    %c0_0 = arith.constant 0 : index
    %0 = vector.load %arg1[%c0, %c0_0] : memref<64x888xf32, #tpu.memory_space<vmem>>, vector<64x888xf32>
    %c0_1 = arith.constant 0 : index
    %c0_2 = arith.constant 0 : index
    %1 = vector.load %arg2[%c0_1, %c0_2] : memref<1x888xf32, #tpu.memory_space<vmem>>, vector<1x888xf32>
    %2 = vector.broadcast %1 : vector<1x888xf32> to vector<64x888xf32>
    %3 = arith.mulf %0, %2 : vector<64x888xf32>
    %c0_3 = arith.constant 0 : index
    %c0_4 = arith.constant 0 : index
    %4 = vector.load %arg3[%c0_3, %c0_4] : memref<888x888xf32, #tpu.memory_space<vmem>>, vector<888x888xf32>
    %cst = arith.constant dense<0.000000e+00> : vector<64x888xf32>
    %5 = tpu.matmul %3, %4, %cst {dimension_numbers = #tpu.dot_dimension_numbers<[1], [1], [0], [0], [0, 0, 1, 0], [], []>} : vector<64x888xf32>, vector<888x888xf32>, vector<64x888xf32> -> vector<64x888xf32>
    %cst_5 = arith.constant dense<0.000000e+00> : vector<888xf32>
    %6 = vector.multi_reduction <add>, %5, %cst_5 [0] : vector<64x888xf32> to vector<888xf32>
    %7 = vector.shape_cast %6 : vector<888xf32> to vector<1x888xf32>
    %cst_6 = arith.constant 0.0204081628 : f32
    %8 = vector.broadcast %cst_6 : f32 to vector<1x888xf32>
    %9 = arith.mulf %7, %8 : vector<1x888xf32>
    %10 = tpu.iota {dimensions = array<i32: 0>} : vector<64x888xi32>
    %c49_i32 = arith.constant 49 : i32
    %11 = vector.broadcast %c49_i32 : i32 to vector<64x888xi32>
    %12 = arith.cmpi slt, %10, %11 : vector<64x888xi32>
    %13 = vector.broadcast %9 : vector<1x888xf32> to vector<64x888xf32>
    %14 = arith.subf %5, %13 : vector<64x888xf32>
    %cst_7 = arith.constant 0.000000e+00 : f32
    %15 = vector.broadcast %cst_7 : f32 to vector<64x888xf32>
    %16 = arith.select %12, %14, %15 : vector<64x888xi1>, vector<64x888xf32>
    %17 = arith.mulf %16, %16 : vector<64x888xf32>
    %cst_8 = arith.constant dense<0.000000e+00> : vector<888xf32>
    %18 = vector.multi_reduction <add>, %17, %cst_8 [0] : vector<64x888xf32> to vector<888xf32>
    %19 = vector.shape_cast %18 : vector<888xf32> to vector<1x888xf32>
    %cst_9 = arith.constant 0.0204081628 : f32
    %20 = vector.broadcast %cst_9 : f32 to vector<1x888xf32>
    %21 = arith.mulf %19, %20 : vector<1x888xf32>
    %cst_10 = arith.constant 9.99999974E-6 : f32
    %22 = vector.broadcast %cst_10 : f32 to vector<1x888xf32>
    %23 = arith.addf %21, %22 : vector<1x888xf32>
    %24 = math.rsqrt %23 : vector<1x888xf32>
    %c0_11 = arith.constant 0 : index
    %c0_12 = arith.constant 0 : index
    %25 = vector.load %arg4[%c0_11, %c0_12] : memref<1x888xf32, #tpu.memory_space<vmem>>, vector<1x888xf32>
    %26 = arith.mulf %24, %25 : vector<1x888xf32>
    %c0_13 = arith.constant 0 : index
    %c0_14 = arith.constant 0 : index
    %27 = vector.load %arg5[%c0_13, %c0_14] : memref<1x888xf32, #tpu.memory_space<vmem>>, vector<1x888xf32>
    %28 = arith.mulf %9, %26 : vector<1x888xf32>
    %29 = arith.subf %27, %28 : vector<1x888xf32>
    %30 = vector.broadcast %26 : vector<1x888xf32> to vector<64x888xf32>
    %31 = arith.mulf %5, %30 : vector<64x888xf32>
    %32 = vector.broadcast %29 : vector<1x888xf32> to vector<64x888xf32>
    %33 = arith.addf %31, %32 : vector<64x888xf32>
    %c0_15 = arith.constant 0 : index
    %c0_16 = arith.constant 0 : index
    %34 = vector.load %arg6[%c0_15, %c0_16] : memref<64x888xf32, #tpu.memory_space<vmem>>, vector<64x888xf32>
    tpu.vector_store %arg6[%c0_15, %c0_16], %33 {strides = array<i32>} : memref<64x888xf32, #tpu.memory_space<vmem>>, vector<64x888xf32>,
    return
  }
  func.func @transform_0(%arg0: i32) -> (i32, i32) {
    %c0_i32 = arith.constant 0 : i32
    %c0_i32_0 = arith.constant 0 : i32
    %c0_i32_1 = arith.constant 0 : i32
    return %c0_i32, %c0_i32_0 : i32, i32
  }
  func.func @transform_1(%arg0: i32) -> (i32, i32) {
    %c0_i32 = arith.constant 0 : i32
    %c0_i32_0 = arith.constant 0 : i32
    %c0_i32_1 = arith.constant 0 : i32
    return %c0_i32, %c0_i32_0 : i32, i32
  }
  func.func @transform_2(%arg0: i32) -> (i32, i32) {
    %c0_i32 = arith.constant 0 : i32
    %c0_i32_0 = arith.constant 0 : i32
    %c0_i32_1 = arith.constant 0 : i32
    return %c0_i32, %c0_i32_0 : i32, i32
  }
  func.func @transform_3(%arg0: i32) -> (i32, i32) {
    %c0_i32 = arith.constant 0 : i32
    %c0_i32_0 = arith.constant 0 : i32
    %c0_i32_1 = arith.constant 0 : i32
    return %c0_i32, %c0_i32_0 : i32, i32
  }
  func.func @transform_4(%arg0: i32) -> (i32, i32) {
    %c0_i32 = arith.constant 0 : i32
    %c0_i32_0 = arith.constant 0 : i32
    %c0_i32_1 = arith.constant 0 : i32
    return %c0_i32, %c0_i32_0 : i32, i32
  }
  func.func @transform_5(%arg0: i32) -> (i32, i32) {
    %c0_i32 = arith.constant 0 : i32
    %c0_i32_0 = arith.constant 0 : i32
    %c0_i32_1 = arith.constant 0 : i32
    return %c0_i32, %c0_i32_0 : i32, i32
  }
}

</mosaic_0001>

<bundles_post_ra>
// kernel: mul_conv1x1_bn.1
= control target key start
LH: loop header
LB: loop body
LE: loop exit
PB: predicated region body
PF: predicated region fallthrough
CT: control target
= control target key end

     0   :  { %vm925_vm0 = vcmask 982016   ;;  %s8797_s2 = inlined_call_operand.vmem [shape: f32[888,888], index: 2, kind: input, shape index: {}]   ;;  %s8798_s1 = inlined_call_operand.vmem [shape: f32[1,888], index: 1, kind: input, shape index: {}]   ;;  %s8799_s0 = inlined_call_operand.vmem [shape: f32[64,888], index: 0, kind: input, shape index: {}]   ;;  %s8800_s3 = inlined_call_operand.vmem [shape: f32[1,888], index: 3, kind: input, shape index: {}]   ;;  %s8801_s4 = inlined_call_operand.vmem [shape: f32[1,888], index: 4, kind: input, shape index: {}]   ;;  %s8802_s5 = inlined_call_operand.vmem [shape: f32[64,888], index: 5, kind: output, shape index: {}]  }
   0x1   :  { %v253_v0 = vld [vmem:[%s8797_s2 + $0x348] sm:$0xff]  ;;  %v254_v1 = vld [vmem:[%s8797_s2 + $0x350] sm:$0xff]  ;;  %v255_v2 = vld [vmem:[%s8797_s2 + $0x358] sm:$0xff] }
   0x2   :  { %1283 = vmatpush.xpose.msra.mxu0 %v253_v0  ;;  %1324 = vmatpush.xpose.msra.mxu1 %v254_v1  ;;  %v256_v3 = vld [vmem:[%s8797_s2 + $0x360] sm:$0xff]  ;;  %v246_v4 = vld [vmem:[%s8797_s2 + $0x310] sm:$0xff]  ;;  %v247_v5 = vld [vmem:[%s8797_s2 + $0x318] sm:$0xff] }
   0x3   :  { %1365 = vmatpush.xpose.msra.mxu2 %v255_v2  ;;  %1406 = vmatpush.xpose.msra.mxu3 %v256_v3  ;;  %v248_v6 = vld [vmem:[%s8797_s2 + $0x320] sm:$0xff]  ;;  %v249_v7 = vld [vmem:[%s8797_s2 + $0x328] sm:$0xff]  ;;  %v239_v8 = vld [vmem:[%s8797_s2 + $0x2d8] sm:$0xff] }
   0x4   :  { %v240_v9 = vld [vmem:[%s8797_s2 + $0x2e0] sm:$0xff]  ;;  %v241_v10 = vld [vmem:[%s8797_s2 + $0x2e8] sm:$0xff]  ;;  %v242_v11 = vld [vmem:[%s8797_s2 + $0x2f0] sm:$0xff] }
   0x5   :  { %v232_v12 = vld [vmem:[%s8797_s2 + $0x2a0] sm:$0xff]  ;;  %v233_v13 = vld [vmem:[%s8797_s2 + $0x2a8] sm:$0xff]  ;;  %v234_v14 = vld [vmem:[%s8797_s2 + $0x2b0] sm:$0xff] }
   0x6   :  { %1284 = vmatpush.xpose.msra.mxu0 %v246_v4  ;;  %1325 = vmatpush.xpose.msra.mxu1 %v247_v5  ;;  %v235_v15 = vld [vmem:[%s8797_s2 + $0x2b8] sm:$0xff]  ;;  %v225_v16 = vld [vmem:[%s8797_s2 + $0x268] sm:$0xff]  ;;  %v226_v17 = vld [vmem:[%s8797_s2 + $0x270] sm:$0xff] }
   0x7   :  { %1366 = vmatpush.xpose.msra.mxu2 %v248_v6  ;;  %1407 = vmatpush.xpose.msra.mxu3 %v249_v7  ;;  %v227_v18 = vld [vmem:[%s8797_s2 + $0x278] sm:$0xff]  ;;  %v228_v19 = vld [vmem:[%s8797_s2 + $0x280] sm:$0xff]  ;;  %v218_v20 = vld [vmem:[%s8797_s2 + $0x230] sm:$0xff] }
   0x8   :  { %v219_v21 = vld [vmem:[%s8797_s2 + $0x238] sm:$0xff]  ;;  %v220_v22 = vld [vmem:[%s8797_s2 + $0x240] sm:$0xff]  ;;  %v221_v23 = vld [vmem:[%s8797_s2 + $0x248] sm:$0xff] }
   0x9   :  { %v211_v24 = vld [vmem:[%s8797_s2 + $0x1f8] sm:$0xff]  ;;  %v212_v25 = vld [vmem:[%s8797_s2 + $0x200] sm:$0xff]  ;;  %v213_v26 = vld [vmem:[%s8797_s2 + $0x208] sm:$0xff] }
   0xa   :  { %1285 = vmatpush.xpose.msra.mxu0 %v239_v8  ;;  %1326 = vmatpush.xpose.msra.mxu1 %v240_v9  ;;  %v214_v27 = vld [vmem:[%s8797_s2 + $0x210] sm:$0xff]  ;;  %v204_v28 = vld [vmem:[%s8797_s2 + $0x1c0] sm:$0xff]  ;;  %v205_v29 = vld [vmem:[%s8797_s2 + $0x1c8] sm:$0xff] }
   0xb   :  { %1367 = vmatpush.xpose.msra.mxu2 %v241_v10  ;;  %1408 = vmatpush.xpose.msra.mxu3 %v242_v11  ;;  %v206_v30 = vld [vmem:[%s8797_s2 + $0x1d0] sm:$0xff]  ;;  %v207_v31 = vld [vmem:[%s8797_s2 + $0x1d8] sm:$0xff]  ;;  %v197_v32 = vld [vmem:[%s8797_s2 + $0x188] sm:$0xff] }
   0xc   :  { %v198_v33 = vld [vmem:[%s8797_s2 + $0x190] sm:$0xff]  ;;  %v199_v34 = vld [vmem:[%s8797_s2 + $0x198] sm:$0xff]  ;;  %v200_v35 = vld [vmem:[%s8797_s2 + $0x1a0] sm:$0xff] }
   0xd   :  { %v190_v36 = vld [vmem:[%s8797_s2 + $0x150] sm:$0xff]  ;;  %v191_v37 = vld [vmem:[%s8797_s2 + $0x158] sm:$0xff]  ;;  %v192_v38 = vld [vmem:[%s8797_s2 + $0x160] sm:$0xff] }
   0xe   :  { %1286 = vmatpush.xpose.msra.mxu0 %v232_v12  ;;  %1327 = vmatpush.xpose.msra.mxu1 %v233_v13  ;;  %v193_v39 = vld [vmem:[%s8797_s2 + $0x168] sm:$0xff]  ;;  %v183_v40 = vld [vmem:[%s8797_s2 + $0x118] sm:$0xff]  ;;  %v184_v41 = vld [vmem:[%s8797_s2 + $0x120] sm:$0xff] }
   0xf   :  { %1368 = vmatpush.xpose.msra.mxu2 %v234_v14  ;;  %1409 = vmatpush.xpose.msra.mxu3 %v235_v15  ;;  %v185_v42 = vld [vmem:[%s8797_s2 + $0x128] sm:$0xff]  ;;  %v186_v43 = vld [vmem:[%s8797_s2 + $0x130] sm:$0xff]  ;;  %v176_v44 = vld [vmem:[%s8797_s2 + $0xe0] sm:$0xff] }
  0x10   :  { %v177_v45 = vld [vmem:[%s8797_s2 + $0xe8] sm:$0xff]  ;;  %v178_v46 = vld [vmem:[%s8797_s2 + $0xf0] sm:$0xff]  ;;  %v179_v47 = vld [vmem:[%s8797_s2 + $0xf8] sm:$0xff] }
  0x11   :  { %v169_v48 = vld [vmem:[%s8797_s2 + $0xa8] sm:$0xff]  ;;  %v170_v49 = vld [vmem:[%s8797_s2 + $0xb0] sm:$0xff]  ;;  %v171_v50 = vld [vmem:[%s8797_s2 + $0xb8] sm:$0xff] }
  0x12   :  { %1287 = vmatpush.xpose.msra.mxu0 %v225_v16  ;;  %1328 = vmatpush.xpose.msra.mxu1 %v226_v17  ;;  %v172_v51 = vld [vmem:[%s8797_s2 + $0xc0] sm:$0xff]  ;;  %v162_v52 = vld [vmem:[%s8797_s2 + $0x70] sm:$0xff]  ;;  %v163_v53 = vld [vmem:[%s8797_s2 + $0x78] sm:$0xff] }
  0x13   :  { %1369 = vmatpush.xpose.msra.mxu2 %v227_v18  ;;  %1410 = vmatpush.xpose.msra.mxu3 %v228_v19  ;;  %v164_v54 = vld [vmem:[%s8797_s2 + $0x80] sm:$0xff]  ;;  %v165_v55 = vld [vmem:[%s8797_s2 + $0x88] sm:$0xff]  ;;  %v155_v57 = vld [vmem:[%s8797_s2 + $0x38] sm:$0xff] }
  0x14   :  { %v4445_v56 = vld [vmem:[%s8798_s1] sm:$0x7f]  ;;  %v157_v59 = vld [vmem:[%s8797_s2 + $0x48] sm:$0xff]  ;;  %v158_v60 = vld [vmem:[%s8797_s2 + $0x50] sm:$0xff] }
  0x15   :  { %v156_v58 = vld [vmem:[%s8797_s2 + $0x40] sm:$0xff]  ;;  %v4460_v61 = vperm.slane %v4445_v56, 0  ;;  %v4463_v62 = vperm.slane %v4445_v56, 1  ;;  %v21_v1 = vld [vmem:[%s8799_s0 + $0x8] sm:$0xff]  ;;  %v4475_v2 = vperm.slane %v4445_v56, 2  ;;  %v4478_v3 = vperm.slane %v4445_v56, 3 }
  0x16   :  { %1288 = vmatpush.xpose.msra.mxu0 %v218_v20  ;;  %1329 = vmatpush.xpose.msra.mxu1 %v219_v21  ;;  %v148_v63 = vld [vmem:[%s8797_s2] sm:$0xff]  ;;  %v149_v4 = vld [vmem:[%s8797_s2 + $0x8] sm:$0xff]  ;;  %v22_v5 = vld [vmem:[%s8799_s0 + $0x10] sm:$0xff] }
  0x17   :  { %1370 = vmatpush.xpose.msra.mxu2 %v220_v22  ;;  %1411 = vmatpush.xpose.msra.mxu3 %v221_v23  ;;  %v20_v0 = vld [vmem:[%s8799_s0] sm:$0xff]  ;;  %v23_v6 = vld [vmem:[%s8799_s0 + $0x18] sm:$0xff]  ;;  %v150_v7 = vld [vmem:[%s8797_s2 + $0x10] sm:$0xff]  ;;  %v4499_v10 = vmul.f32 %v4463_v62, %v21_v1  ;;  %v4508_v13 = vmul.f32 %v4475_v2, %v22_v5 }
  0x18   :  { %v151_v8 = vld [vmem:[%s8797_s2 + $0x18] sm:$0xff]  ;;  %v4496_v9 = vmul.f32 %v4460_v61, %v20_v0  ;;  %v257_v11 = vld [vmem:[%s8797_s2 + $0x368] sm:$0xff]  ;;  %v258_v12 = vld [vmem:[%s8797_s2 + $0x370] sm:$0xff]  ;;  %v4511_v14 = vmul.f32 %v4478_v3, %v23_v6 }
  0x19   :  { %8937 = vst [vmem:[#allocation3_spill] sm:$0xff] %v4508_v13  ;;  %v259_v15 = vld [vmem:[%s8797_s2 + $0x378] sm:$0xff]  ;;  %v365_v16 = vld [vmem:[%s8797_s2 + $0x6c8] sm:$0xff]  ;;  %v250_v17 = vld [vmem:[%s8797_s2 + $0x330] sm:$0xff] }
  0x1a   :  { %1289 = vmatpush.xpose.msra.mxu0 %v211_v24  ;;  %1330 = vmatpush.xpose.msra.mxu1 %v212_v25  ;;  %8936 = vst [vmem:[#allocation2_spill] sm:$0xff] %v4496_v9  ;;  %v251_v18 = vld [vmem:[%s8797_s2 + $0x338] sm:$0xff]  ;;  %v28_v20 = vld [vmem:[%s8799_s0 + $0x40] sm:$0xff]  ;;  %v29_v21 = vld [vmem:[%s8799_s0 + $0x48] sm:$0xff] }
  0x1b   :  { %1371 = vmatpush.xpose.msra.mxu2 %v213_v26  ;;  %1412 = vmatpush.xpose.msra.mxu3 %v214_v27  ;;  %8938 = vst [vmem:[#allocation4_spill] sm:$0xff] %v4511_v14  ;;  %v27_v19 = vld [vmem:[%s8799_s0 + $0x38] sm:$0xff]  ;;  %v30_v22 = vld [vmem:[%s8799_s0 + $0x50] sm:$0xff]  ;;  %v252_v23 = vld [vmem:[%s8797_s2 + $0x340] sm:$0xff]  ;;  %v4552_v26 = vmul.f32 %v4463_v62, %v28_v20 }
  0x1c   :  { %v358_v24 = vld [vmem:[%s8797_s2 + $0x690] sm:$0xff]  ;;  %v4549_v25 = vmul.f32 %v4460_v61, %v27_v19  ;;  %v243_v27 = vld [vmem:[%s8797_s2 + $0x2f8] sm:$0xff]  ;;  %v208_v6 = vld [vmem:[%s8797_s2 + $0x1e0] sm:$0xff] }
  0x1d   :  { %v323_v5 = vld [vmem:[%s8797_s2 + $0x578] sm:$0xff]  ;;  %v201_v20 = vld [vmem:[%s8797_s2 + $0x1a8] sm:$0xff] }
  0x1e   :  { %1290 = vmatpush.xpose.msra.mxu0 %v204_v28  ;;  %1331 = vmatpush.xpose.msra.mxu1 %v205_v29  ;;  %v244_v28 = vld [vmem:[%s8797_s2 + $0x300] sm:$0xff]  ;;  %v4561_v29 = vmul.f32 %v4475_v2, %v29_v21  ;;  %v202_v21 = vld [vmem:[%s8797_s2 + $0x1b0] sm:$0xff] }
  0x1f   :  { %1372 = vmatpush.xpose.msra.mxu2 %v206_v30  ;;  %1413 = vmatpush.xpose.msra.mxu3 %v207_v31  ;;  %v4564_v30 = vmul.f32 %v4478_v3, %v30_v22  ;;  %v245_v31 = vld [vmem:[%s8797_s2 + $0x308] sm:$0xff] }
  0x22   :  { %1291 = vmatpush.xpose.msra.mxu0 %v197_v32  ;;  %1332 = vmatpush.xpose.msra.mxu1 %v198_v33  ;;  %v351_v32 = vld [vmem:[%s8797_s2 + $0x658] sm:$0xff]  ;;  %v236_v33 = vld [vmem:[%s8797_s2 + $0x2c0] sm:$0xff] }
  0x23   :  { %1373 = vmatpush.xpose.msra.mxu2 %v199_v34  ;;  %1414 = vmatpush.xpose.msra.mxu3 %v200_v35  ;;  %v237_v34 = vld [vmem:[%s8797_s2 + $0x2c8] sm:$0xff]  ;;  %v34_v35 = vld [vmem:[%s8799_s0 + $0x70] sm:$0xff] }
  0x26   :  { %1292 = vmatpush.xpose.msra.mxu0 %v190_v36  ;;  %1333 = vmatpush.xpose.msra.mxu1 %v191_v37  ;;  %v35_v36 = vld [vmem:[%s8799_s0 + $0x78] sm:$0xff]  ;;  %v36_v37 = vld [vmem:[%s8799_s0 + $0x80] sm:$0xff] }
  0x27   :  { %1374 = vmatpush.xpose.msra.mxu2 %v192_v38  ;;  %1415 = vmatpush.xpose.msra.mxu3 %v193_v39  ;;  %v37_v38 = vld [vmem:[%s8799_s0 + $0x88] sm:$0xff]  ;;  %v238_v39 = vld [vmem:[%s8797_s2 + $0x2d0] sm:$0xff] }
  0x2a   :  { %1293 = vmatpush.xpose.msra.mxu0 %v183_v40  ;;  %1334 = vmatpush.xpose.msra.mxu1 %v184_v41  ;;  %v344_v40 = vld [vmem:[%s8797_s2 + $0x620] sm:$0xff]  ;;  %v4603_v41 = vmul.f32 %v4460_v61, %v34_v35  ;;  %v58_v35 = vld [vmem:[%s8799_s0 + $0x130] sm:$0xff] }
  0x2b   :  { %1375 = vmatpush.xpose.msra.mxu2 %v185_v42  ;;  %1416 = vmatpush.xpose.msra.mxu3 %v186_v43  ;;  %v4606_v42 = vmul.f32 %v4463_v62, %v35_v36  ;;  %v229_v43 = vld [vmem:[%s8797_s2 + $0x288] sm:$0xff]  ;;  %v196_v36 = vld [vmem:[%s8797_s2 + $0x180] sm:$0xff] }
  0x2e   :  { %1294 = vmatpush.xpose.msra.mxu0 %v176_v44  ;;  %1335 = vmatpush.xpose.msra.mxu1 %v177_v45  ;;  %v230_v44 = vld [vmem:[%s8797_s2 + $0x290] sm:$0xff]  ;;  %v4615_v45 = vmul.f32 %v4475_v2, %v36_v37 }
  0x2f   :  { %1376 = vmatpush.xpose.msra.mxu2 %v178_v46  ;;  %1417 = vmatpush.xpose.msra.mxu3 %v179_v47  ;;  %v4618_v46 = vmul.f32 %v4478_v3, %v37_v38  ;;  %v231_v47 = vld [vmem:[%s8797_s2 + $0x298] sm:$0xff]  ;;  %v302_v37 = vld [vmem:[%s8797_s2 + $0x4d0] sm:$0xff] }
  0x31   :  { %8939 = vst [vmem:[#allocation5_spill] sm:$0xff] %v4618_v46 }
  0x32   :  { %1295 = vmatpush.xpose.msra.mxu0 %v169_v48  ;;  %1336 = vmatpush.xpose.msra.mxu1 %v170_v49  ;;  %v337_v48 = vld [vmem:[%s8797_s2 + $0x5e8] sm:$0xff]  ;;  %v222_v49 = vld [vmem:[%s8797_s2 + $0x250] sm:$0xff] }
  0x33   :  { %1377 = vmatpush.xpose.msra.mxu2 %v171_v50  ;;  %1418 = vmatpush.xpose.msra.mxu3 %v172_v51  ;;  %v223_v50 = vld [vmem:[%s8797_s2 + $0x258] sm:$0xff]  ;;  %v41_v51 = vld [vmem:[%s8799_s0 + $0xa8] sm:$0xff] }
  0x36   :  { %1296 = vmatpush.xpose.msra.mxu0 %v162_v52  ;;  %1337 = vmatpush.xpose.msra.mxu1 %v163_v53  ;;  %v42_v52 = vld [vmem:[%s8799_s0 + $0xb0] sm:$0xff]  ;;  %v43_v53 = vld [vmem:[%s8799_s0 + $0xb8] sm:$0xff] }
  0x37   :  { %1378 = vmatpush.xpose.msra.mxu2 %v164_v54  ;;  %1419 = vmatpush.xpose.msra.mxu3 %v165_v55  ;;  %v44_v54 = vld [vmem:[%s8799_s0 + $0xc0] sm:$0xff]  ;;  %v4669_v0 = vmul.f32 %v4475_v2, %v43_v53  ;;  %v63_v53 = vld [vmem:[%s8799_s0 + $0x158] sm:$0xff] }
  0x38   :  { %v224_v55 = vld [vmem:[%s8797_s2 + $0x260] sm:$0xff]  ;;  %v4672_v1 = vmul.f32 %v4478_v3, %v44_v54 }
  0x39   :  { %v64_v54 = vld [vmem:[%s8799_s0 + $0x160] sm:$0xff] }
  0x3a   :  { %1297 = vmatpush.xpose.msra.mxu0 %v155_v57  ;;  %1338 = vmatpush.xpose.msra.mxu1 %v156_v58  ;;  %v330_v57 = vld [vmem:[%s8797_s2 + $0x5b0] sm:$0xff]  ;;  %v4657_v58 = vmul.f32 %v4460_v61, %v41_v51  ;;  %8940 = vst [vmem:[#allocation6_spill] sm:$0xff] %v4672_v1  ;;  %v181_v51 = vld [vmem:[%s8797_s2 + $0x108] sm:$0xff] }
  0x3b   :  { %1379 = vmatpush.xpose.msra.mxu2 %v157_v59  ;;  %1420 = vmatpush.xpose.msra.mxu3 %v158_v60  ;;  %v4660_v59 = vmul.f32 %v4463_v62, %v42_v52  ;;  %v215_v60 = vld [vmem:[%s8797_s2 + $0x218] sm:$0xff]  ;;  %v62_v52 = vld [vmem:[%s8799_s0 + $0x150] sm:$0xff] }
  0x3e   :  { %1298 = vmatpush.xpose.msra.mxu0 %v148_v63  ;;  %1339 = vmatpush.xpose.msra.mxu1 %v149_v4  ;;  %v216_v63 = vld [vmem:[%s8797_s2 + $0x220] sm:$0xff]  ;;  %v217_v4 = vld [vmem:[%s8797_s2 + $0x228] sm:$0xff] }
  0x3f   :  { %1380 = vmatpush.xpose.msra.mxu2 %v150_v7  ;;  %1421 = vmatpush.xpose.msra.mxu3 %v151_v8  ;;  %v209_v7 = vld [vmem:[%s8797_s2 + $0x1e8] sm:$0xff]  ;;  %v48_v8 = vld [vmem:[%s8799_s0 + $0xe0] sm:$0xff] }
  0x41   :  { %1299 = vmatmul.f32.vlgmr.msra.gmra.mxu0 %v4496_v9  ;;  %1340 = vmatmul.f32.vlgmr.msra.gmra.mxu1 %v4499_v10 }
  0x42   :  { %1447 = vmatpush.xpose.msrb.mxu0 %v257_v11  ;;  %1488 = vmatpush.xpose.msrb.mxu1 %v258_v12  ;;  %v49_v11 = vld [vmem:[%s8799_s0 + $0xe8] sm:$0xff]  ;;  %v50_v12 = vld [vmem:[%s8799_s0 + $0xf0] sm:$0xff] }
  0x43   :  { %1381 = vmatmul.f32.vlgmr.msra.gmra.mxu2 %v4508_v13  ;;  %1422 = vmatmul.f32.vlgmr.msra.gmra.mxu3 %v4511_v14  ;;  %v4714_v19 = vmul.f32 %v4463_v62, %v49_v11  ;;  %v4723_v22 = vmul.f32 %v4475_v2, %v50_v12  ;;  %v175_v11 = vld [vmem:[%s8797_s2 + $0xd8] sm:$0xff]  ;;  %v281_v12 = vld [vmem:[%s8797_s2 + $0x428] sm:$0xff] }
  0x44   :  { %4018 = vmatpush.xpose.msk.msrb.mxu2 %vm925_vm0, %v259_v15  ;;  %1570 = vmatpush.xpose.msrb.mxu3 %v365_v16  ;;  %v51_v15 = vld [vmem:[%s8799_s0 + $0xf8] sm:$0xff]  ;;  %v210_v16 = vld [vmem:[%s8797_s2 + $0x1f0] sm:$0xff] }
  0x45   :  { %8941 = vst [vmem:[#allocation7_spill] sm:$0xff] %v4723_v22 }
  0x46   :  { %1448 = vmatpush.xpose.msrb.mxu0 %v250_v17  ;;  %1489 = vmatpush.xpose.msrb.mxu1 %v251_v18  ;;  %v316_v17 = vld [vmem:[%s8797_s2 + $0x540] sm:$0xff]  ;;  %v4711_v18 = vmul.f32 %v4460_v61, %v48_v8 }
  0x48   :  { %4019 = vmatpush.xpose.msk.msrb.mxu2 %vm925_vm0, %v252_v23  ;;  %1571 = vmatpush.xpose.msrb.mxu3 %v358_v24  ;;  %v4726_v23 = vmul.f32 %v4478_v3, %v51_v15  ;;  %v203_v24 = vld [vmem:[%s8797_s2 + $0x1b8] sm:$0xff]  ;;  %v166_v15 = vld [vmem:[%s8797_s2 + $0x90] sm:$0xff] }
  0x49   :  { %1302 = vmatmul.f32.gmra.mxu0 %v4549_v25  ;;  %1343 = vmatmul.f32.gmra.mxu1 %v4552_v26 }
  0x4a   :  { %1449 = vmatpush.xpose.msrb.mxu0 %v243_v27  ;;  %1490 = vmatpush.xpose.msrb.mxu1 %v244_v28  ;;  %8942 = vst [vmem:[#allocation8_spill] sm:$0xff] %v4726_v23  ;;  %v309_v27 = vld [vmem:[%s8797_s2 + $0x508] sm:$0xff]  ;;  %v194_v28 = vld [vmem:[%s8797_s2 + $0x170] sm:$0xff] }
  0x4b   :  { %1384 = vmatmul.f32.gmra.mxu2 %v4561_v29  ;;  %1425 = vmatmul.f32.gmra.mxu3 %v4564_v30 }
  0x4c   :  { %4020 = vmatpush.xpose.msk.msrb.mxu2 %vm925_vm0, %v245_v31  ;;  %1572 = vmatpush.xpose.msrb.mxu3 %v351_v32  ;;  %v195_v31 = vld [vmem:[%s8797_s2 + $0x178] sm:$0xff] }
  0x4d   :  { %v55_v32 = vld [vmem:[%s8799_s0 + $0x118] sm:$0xff] }
  0x4e   :  { %1450 = vmatpush.xpose.msrb.mxu0 %v236_v33  ;;  %1491 = vmatpush.xpose.msrb.mxu1 %v237_v34  ;;  %v56_v33 = vld [vmem:[%s8799_s0 + $0x120] sm:$0xff]  ;;  %v57_v34 = vld [vmem:[%s8799_s0 + $0x128] sm:$0xff]  ;;  %v4765_v38 = vmul.f32 %v4460_v61, %v55_v32 }
  0x50   :  { %4021 = vmatpush.xpose.msk.msrb.mxu2 %vm925_vm0, %v238_v39  ;;  %1573 = vmatpush.xpose.msrb.mxu3 %v344_v40  ;;  %v4768_v39 = vmul.f32 %v4463_v62, %v56_v33  ;;  %v187_v40 = vld [vmem:[%s8797_s2 + $0x138] sm:$0xff] }
  0x51   :  { %1305 = vmatmul.f32.gmra.mxu0 %v4603_v41  ;;  %1346 = vmatmul.f32.gmra.mxu1 %v4606_v42  ;;  %v159_v33 = vld [vmem:[%s8797_s2 + $0x58] sm:$0xff] }
  0x52   :  { %1451 = vmatpush.xpose.msrb.mxu0 %v229_v43  ;;  %1492 = vmatpush.xpose.msrb.mxu1 %v230_v44  ;;  %v188_v43 = vld [vmem:[%s8797_s2 + $0x140] sm:$0xff]  ;;  %v4777_v44 = vmul.f32 %v4475_v2, %v57_v34 }
  0x53   :  { %1387 = vmatmul.f32.gmra.mxu2 %v4615_v45  ;;  %1428 = vmatmul.f32.gmra.mxu3 %v4618_v46  ;;  %v160_v34 = vld [vmem:[%s8797_s2 + $0x60] sm:$0xff] }
  0x54   :  { %4022 = vmatpush.xpose.msk.msrb.mxu2 %vm925_vm0, %v231_v47  ;;  %1574 = vmatpush.xpose.msrb.mxu3 %v337_v48  ;;  %8943 = vst [vmem:[#allocation9_spill] sm:$0xff] %v4777_v44  ;;  %v4780_v47 = vmul.f32 %v4478_v3, %v58_v35  ;;  %v189_v48 = vld [vmem:[%s8797_s2 + $0x148] sm:$0xff] }
  0x56   :  { %1452 = vmatpush.xpose.msrb.mxu0 %v222_v49  ;;  %1493 = vmatpush.xpose.msrb.mxu1 %v223_v50  ;;  %8944 = vst [vmem:[#allocation10_spill] sm:$0xff] %v4780_v47  ;;  %v295_v49 = vld [vmem:[%s8797_s2 + $0x498] sm:$0xff]  ;;  %v180_v50 = vld [vmem:[%s8797_s2 + $0x100] sm:$0xff] }
  0x58   :  { %4023 = vmatpush.xpose.msk.msrb.mxu2 %vm925_vm0, %v224_v55  ;;  %1575 = vmatpush.xpose.msrb.mxu3 %v330_v57  ;;  %v65_v55 = vld [vmem:[%s8799_s0 + $0x168] sm:$0xff]  ;;  %v182_v57 = vld [vmem:[%s8797_s2 + $0x110] sm:$0xff] }
  0x59   :  { %1308 = vmatmul.f32.gmra.mxu0 %v4657_v58  ;;  %1349 = vmatmul.f32.gmra.mxu1 %v4660_v59  ;;  %v4834_v8 = vmul.f32 %v4478_v3, %v65_v55 }
  0x5a   :  { %1453 = vmatpush.xpose.msrb.mxu0 %v215_v60  ;;  %1494 = vmatpush.xpose.msrb.mxu1 %v216_v63  ;;  %v288_v60 = vld [vmem:[%s8797_s2 + $0x460] sm:$0xff]  ;;  %v4819_v63 = vmul.f32 %v4460_v61, %v62_v52  ;;  %v26_v52 = vld [vmem:[%s8799_s0 + $0x30] sm:$0xff] }
  0x5b   :  { %1390 = vmatmul.f32.gmra.mxu2 %v4669_v0  ;;  %1431 = vmatmul.f32.gmra.mxu3 %v4672_v1  ;;  %8948 = vst [vmem:[#allocation14_spill] sm:$0xff] %v4834_v8 }
  0x5c   :  { %4024 = vmatpush.xpose.msk.msrb.mxu2 %vm925_vm0, %v217_v4  ;;  %1576 = vmatpush.xpose.msrb.mxu3 %v323_v5  ;;  %8945 = vst [vmem:[#allocation11_spill] sm:$0xff] %v4819_v63  ;;  %v4822_v4 = vmul.f32 %v4463_v62, %v63_v53  ;;  %v173_v5 = vld [vmem:[%s8797_s2 + $0xc8] sm:$0xff]  ;;  %v260_v53 = vld [vmem:[%s8797_s2 + $0x380] sm:$0xff] }
  0x5e   :  { %1454 = vmatpush.xpose.msrb.mxu0 %v208_v6  ;;  %1495 = vmatpush.xpose.msrb.mxu1 %v209_v7  ;;  %8946 = vst [vmem:[#allocation12_spill] sm:$0xff] %v4822_v4  ;;  %v174_v6 = vld [vmem:[%s8797_s2 + $0xd0] sm:$0xff]  ;;  %v4831_v7 = vmul.f32 %v4475_v2, %v64_v54 }
  0x60   :  { %4025 = vmatpush.xpose.msk.msrb.mxu2 %vm925_vm0, %v210_v16  ;;  %1577 = vmatpush.xpose.msrb.mxu3 %v316_v17  ;;  %8947 = vst [vmem:[#allocation13_spill] sm:$0xff] %v4831_v7  ;;  %v167_v16 = vld [vmem:[%s8797_s2 + $0x98] sm:$0xff]  ;;  %v69_v17 = vld [vmem:[%s8799_s0 + $0x188] sm:$0xff] }
  0x61   :  { %1311 = vmatmul.f32.gmra.mxu0 %v4711_v18  ;;  %1352 = vmatmul.f32.gmra.mxu1 %v4714_v19 }
  0x62   :  { %1455 = vmatpush.xpose.msrb.mxu0 %v201_v20  ;;  %1496 = vmatpush.xpose.msrb.mxu1 %v202_v21  ;;  %v70_v20 = vld [vmem:[%s8799_s0 + $0x190] sm:$0xff]  ;;  %v71_v21 = vld [vmem:[%s8799_s0 + $0x198] sm:$0xff] }
  0x63   :  { %1393 = vmatmul.f32.gmra.mxu2 %v4723_v22  ;;  %1434 = vmatmul.f32.gmra.mxu3 %v4726_v23  ;;  %v4876_v32 = vmul.f32 %v4463_v62, %v70_v20  ;;  %v4885_v35 = vmul.f32 %v4475_v2, %v71_v21  ;;  %v267_v62 = vld [vmem:[%s8797_s2 + $0x3b8] sm:$0xff]  ;;  %v152_v2 = vld [vmem:[%s8797_s2 + $0x20] sm:$0xff]  ;;  %v33_v20 = vld [vmem:[%s8799_s0 + $0x68] sm:$0xff] }
  0x64   :  { %4026 = vmatpush.xpose.msk.msrb.mxu2 %vm925_vm0, %v203_v24  ;;  %1578 = vmatpush.xpose.msrb.mxu3 %v309_v27  ;;  %v72_v24 = vld [vmem:[%s8799_s0 + $0x1a0] sm:$0xff] }
  0x65   :  { %v168_v27 = vld [vmem:[%s8797_s2 + $0xa0] sm:$0xff]  ;;  %8950 = vst [vmem:[#allocation16_spill] sm:$0xff] %v4876_v32 }
  0x66   :  { %1456 = vmatpush.xpose.msrb.mxu0 %v194_v28  ;;  %1497 = vmatpush.xpose.msrb.mxu1 %v195_v31  ;;  %v274_v28 = vld [vmem:[%s8797_s2 + $0x3f0] sm:$0xff]  ;;  %v4873_v31 = vmul.f32 %v4460_v61, %v69_v17  ;;  %8951 = vst [vmem:[#allocation17_spill] sm:$0xff] %v4885_v35  ;;  %v161_v61 = vld [vmem:[%s8797_s2 + $0x68] sm:$0xff]  ;;  %v32_v17 = vld [vmem:[%s8799_s0 + $0x60] sm:$0xff] }
  0x67   :  { %v352_v21 = vld [vmem:[%s8797_s2 + $0x660] sm:$0xff] }
  0x68   :  { %4027 = vmatpush.xpose.msk.msrb.mxu2 %vm925_vm0, %v196_v36  ;;  %1579 = vmatpush.xpose.msrb.mxu3 %v302_v37  ;;  %8949 = vst [vmem:[#allocation15_spill] sm:$0xff] %v4873_v31  ;;  %v4888_v36 = vmul.f32 %v4478_v3, %v72_v24  ;;  %v153_v3 = vld [vmem:[%s8797_s2 + $0x28] sm:$0xff]  ;;  %v24_v37 = vld [vmem:[%s8799_s0 + $0x20] sm:$0xff] }
  0x69   :  { %1314 = vmatmul.f32.gmra.mxu0 %v4765_v38  ;;  %1355 = vmatmul.f32.gmra.mxu1 %v4768_v39  ;;  %v353_v24 = vld [vmem:[%s8797_s2 + $0x668] sm:$0xff] }
  0x6a   :  { %1457 = vmatpush.xpose.msrb.mxu0 %v187_v40  ;;  %1498 = vmatpush.xpose.msrb.mxu1 %v188_v43  ;;  %8952 = vst [vmem:[#allocation18_spill] sm:$0xff] %v4888_v36  ;;  %v4909_v40 = vperm.slane %v4445_v56, 4  ;;  %v4912_v43 = vperm.slane %v4445_v56, 5 }
  0x6b   :  { %1396 = vmatmul.f32.gmra.mxu2 %v4777_v44  ;;  %1437 = vmatmul.f32.gmra.mxu3 %v4780_v47 }
  0x6c   :  { %4028 = vmatpush.xpose.msk.msrb.mxu2 %vm925_vm0, %v189_v48  ;;  %1580 = vmatpush.xpose.msrb.mxu3 %v295_v49  ;;  %v25_v48 = vld [vmem:[%s8799_s0 + $0x28] sm:$0xff]  ;;  %v4920_v49 = vperm.slane %v4445_v56, 6  ;;  %v154_v56 = vld [vmem:[%s8797_s2 + $0x30] sm:$0xff]  ;;  %v4939_v54 = vmul.f32 %v4909_v40, %v24_v37  ;;  %v348_v37 = vld [vmem:[%s8797_s2 + $0x640] sm:$0xff] }
  0x6d   :  { %v4942_v55 = vmul.f32 %v4912_v43, %v25_v48  ;;  %v38_v48 = vld [vmem:[%s8799_s0 + $0x90] sm:$0xff] }
  0x6e   :  { %1458 = vmatpush.xpose.msrb.mxu0 %v180_v50  ;;  %1499 = vmatpush.xpose.msrb.mxu1 %v181_v51  ;;  %v366_v50 = vld [vmem:[%s8797_s2 + $0x6d0] sm:$0xff]  ;;  %v367_v51 = vld [vmem:[%s8797_s2 + $0x6d8] sm:$0xff]  ;;  %8953 = vst [vmem:[#allocation19_spill] sm:$0xff] %v4939_v54 }
  0x6f   :  { %8954 = vst [vmem:[#allocation20_spill] sm:$0xff] %v4942_v55 }
  0x70   :  { %4029 = vmatpush.xpose.msk.msrb.mxu2 %vm925_vm0, %v182_v57  ;;  %1581 = vmatpush.xpose.msrb.mxu3 %v288_v60  ;;  %v368_v57 = vld [vmem:[%s8797_s2 + $0x6e0] sm:$0xff]  ;;  %v369_v60 = vld [vmem:[%s8797_s2 + $0x6e8] sm:$0xff] }
  0x71   :  { %1317 = vmatmul.f32.gmra.mxu0 %v4819_v63  ;;  %1358 = vmatmul.f32.gmra.mxu1 %v4822_v4 }
  0x72   :  { %1459 = vmatpush.xpose.msrb.mxu0 %v173_v5  ;;  %1500 = vmatpush.xpose.msrb.mxu1 %v174_v6  ;;  %v4951_v5 = vmul.f32 %v4920_v49, %v26_v52  ;;  %v359_v6 = vld [vmem:[%s8797_s2 + $0x698] sm:$0xff]  ;;  %v338_v52 = vld [vmem:[%s8797_s2 + $0x5f0] sm:$0xff] }
  0x73   :  { %1399 = vmatmul.f32.gmra.mxu2 %v4831_v7  ;;  %1440 = vmatmul.f32.gmra.mxu3 %v4834_v8 }
  0x74   :  { %4030 = vmatpush.xpose.msk.msrb.mxu2 %vm925_vm0, %v175_v11  ;;  %1582 = vmatpush.xpose.msrb.mxu3 %v281_v12  ;;  %8955 = vst [vmem:[#allocation21_spill] sm:$0xff] %v4951_v5  ;;  %v360_v11 = vld [vmem:[%s8797_s2 + $0x6a0] sm:$0xff]  ;;  %v361_v12 = vld [vmem:[%s8797_s2 + $0x6a8] sm:$0xff] }
  0x76   :  { %1460 = vmatpush.xpose.msrb.mxu0 %v166_v15  ;;  %1501 = vmatpush.xpose.msrb.mxu1 %v167_v16  ;;  %v362_v15 = vld [vmem:[%s8797_s2 + $0x6b0] sm:$0xff]  ;;  %v31_v16 = vld [vmem:[%s8799_s0 + $0x58] sm:$0xff] }
  0x78   :  { %4031 = vmatpush.xpose.msk.msrb.mxu2 %vm925_vm0, %v168_v27  ;;  %1583 = vmatpush.xpose.msrb.mxu3 %v274_v28  ;;  %v4987_v27 = vmul.f32 %v4909_v40, %v31_v16  ;;  %v4990_v28 = vmul.f32 %v4912_v43, %v32_v17  ;;  %v333_v16 = vld [vmem:[%s8797_s2 + $0x5c8] sm:$0xff]  ;;  %v334_v17 = vld [vmem:[%s8797_s2 + $0x5d0] sm:$0xff] }
  0x79   :  { %1320 = vmatmul.f32.gmra.mxu0 %v4873_v31  ;;  %1361 = vmatmul.f32.gmra.mxu1 %v4876_v32 }
  0x7a   :  { %1461 = vmatpush.xpose.msrb.mxu0 %v159_v33  ;;  %1502 = vmatpush.xpose.msrb.mxu1 %v160_v34  ;;  %8956 = vst [vmem:[#allocation22_spill] sm:$0xff] %v4987_v27  ;;  %v354_v33 = vld [vmem:[%s8797_s2 + $0x670] sm:$0xff]  ;;  %v355_v34 = vld [vmem:[%s8797_s2 + $0x678] sm:$0xff] }
  0x7b   :  { %1402 = vmatmul.f32.gmra.mxu2 %v4885_v35  ;;  %1443 = vmatmul.f32.gmra.mxu3 %v4888_v36 }
  0x7c   :  { %4032 = vmatpush.xpose.msk.msrb.mxu2 %vm925_vm0, %v161_v61  ;;  %1584 = vmatpush.xpose.msrb.mxu3 %v267_v62  ;;  %v4999_v61 = vmul.f32 %v4920_v49, %v33_v20  ;;  %v345_v62 = vld [vmem:[%s8797_s2 + $0x628] sm:$0xff] }
  0x7d   :  { %v45_v20 = vld [vmem:[%s8799_s0 + $0xc8] sm:$0xff] }
  0x7e   :  { %1462 = vmatpush.xpose.msrb.mxu0 %v152_v2  ;;  %1503 = vmatpush.xpose.msrb.mxu1 %v153_v3  ;;  %v346_v2 = vld [vmem:[%s8797_s2 + $0x630] sm:$0xff]  ;;  %v347_v3 = vld [vmem:[%s8797_s2 + $0x638] sm:$0xff] }
  0x80   :  { %4033 = vmatpush.xpose.msk.msrb.mxu2 %vm925_vm0, %v154_v56  ;;  %1585 = vmatpush.xpose.msrb.mxu3 %v260_v53  ;;  %v339_v56 = vld [vmem:[%s8797_s2 + $0x5f8] sm:$0xff]  ;;  %v5034_v53 = vmul.f32 %v4909_v40, %v38_v48 }
  0x81   :  { %1463 = vmatmul.f32.vlgmr.msrb.gmra.mxu0 %v4939_v54  ;;  %1504 = vmatmul.f32.vlgmr.msrb.gmra.mxu1 %v4942_v55 }
  0x82   :  { %1611 = vmatpush.xpose.msra.mxu0 %v366_v50  ;;  %1652 = vmatpush.xpose.msra.mxu1 %v367_v51  ;;  %v39_v50 = vld [vmem:[%s8799_s0 + $0x98] sm:$0xff]  ;;  %v40_v51 = vld [vmem:[%s8799_s0 + $0xa0] sm:$0xff]  ;;  %8957 = vst [vmem:[#allocation23_spill] sm:$0xff] %v5034_v53 }
  0x83   :  { %4034 = vmatmul.msk.f32.vlgmr.msrb.gmra.mxu2 %vm925_vm0, %v4951_v5  ;;  %1586 = vmatmul.f32.vlgmr.msrb.gmra.mxu3 %v4496_v9 }
  0x84   :  { %1693 = vmatpush.xpose.msra.mxu2 %v368_v57  ;;  %1734 = vmatpush.xpose.msra.mxu3 %v369_v60  ;;  %v5037_v57 = vmul.f32 %v4912_v43, %v39_v50  ;;  %v340_v60 = vld [vmem:[%s8797_s2 + $0x600] sm:$0xff]  ;;  %v317_v50 = vld [vmem:[%s8797_s2 + $0x548] sm:$0xff] }
  0x86   :  { %1612 = vmatpush.xpose.msra.mxu0 %v359_v6  ;;  %1653 = vmatpush.xpose.msra.mxu1 %v360_v11  ;;  %v341_v6 = vld [vmem:[%s8797_s2 + $0x608] sm:$0xff]  ;;  %v5046_v11 = vmul.f32 %v4920_v49, %v40_v51  ;;  %v318_v51 = vld [vmem:[%s8797_s2 + $0x550] sm:$0xff] }
  0x88   :  { %1694 = vmatpush.xpose.msra.mxu2 %v361_v12  ;;  %1735 = vmatpush.xpose.msra.mxu3 %v362_v15  ;;  %v331_v12 = vld [vmem:[%s8797_s2 + $0x5b8] sm:$0xff]  ;;  %v332_v15 = vld [vmem:[%s8797_s2 + $0x5c0] sm:$0xff] }
  0x89   :  { %1466 = vmatmul.f32.gmra.mxu0 %v4987_v27  ;;  %1507 = vmatmul.f32.gmra.mxu1 %v4990_v28 }
  0x8a   :  { %1613 = vmatpush.xpose.msra.mxu0 %v352_v21  ;;  %1654 = vmatpush.xpose.msra.mxu1 %v353_v24  ;;  %v46_v21 = vld [vmem:[%s8799_s0 + $0xd0] sm:$0xff]  ;;  %v47_v24 = vld [vmem:[%s8799_s0 + $0xd8] sm:$0xff] }
  0x8b   :  { %4035 = vmatmul.msk.f32.gmra.mxu2 %vm925_vm0, %v4999_v61  ;;  %1589 = vmatmul.f32.gmra.mxu3 %v4549_v25  ;;  %v5093_v48 = vmul.f32 %v4920_v49, %v47_v24  ;;  %v313_v24 = vld [vmem:[%s8797_s2 + $0x528] sm:$0xff] }
  0x8c   :  { %1695 = vmatpush.xpose.msra.mxu2 %v354_v33  ;;  %1736 = vmatpush.xpose.msra.mxu3 %v355_v34  ;;  %v324_v33 = vld [vmem:[%s8797_s2 + $0x580] sm:$0xff]  ;;  %v325_v34 = vld [vmem:[%s8797_s2 + $0x588] sm:$0xff] }
  0x8e   :  { %1614 = vmatpush.xpose.msra.mxu0 %v345_v62  ;;  %1655 = vmatpush.xpose.msra.mxu1 %v346_v2  ;;  %v5081_v62 = vmul.f32 %v4909_v40, %v45_v20  ;;  %v5084_v2 = vmul.f32 %v4912_v43, %v46_v21  ;;  %v312_v21 = vld [vmem:[%s8797_s2 + $0x520] sm:$0xff] }
  0x90   :  { %1696 = vmatpush.xpose.msra.mxu2 %v347_v3  ;;  %1737 = vmatpush.xpose.msra.mxu3 %v348_v37  ;;  %8958 = vst [vmem:[#allocation24_spill] sm:$0xff] %v5081_v62  ;;  %v326_v3 = vld [vmem:[%s8797_s2 + $0x590] sm:$0xff]  ;;  %v327_v37 = vld [vmem:[%s8797_s2 + $0x598] sm:$0xff] }
  0x91   :  { %1469 = vmatmul.f32.gmra.mxu0 %v5034_v53  ;;  %1510 = vmatmul.f32.gmra.mxu1 %v5037_v57  ;;  %8959 = vst [vmem:[#allocation25_spill] sm:$0xff] %v5084_v2 }
  0x92   :  { %1615 = vmatpush.xpose.msra.mxu0 %v338_v52  ;;  %1656 = vmatpush.xpose.msra.mxu1 %v339_v56  ;;  %v319_v52 = vld [vmem:[%s8797_s2 + $0x558] sm:$0xff]  ;;  %v320_v56 = vld [vmem:[%s8797_s2 + $0x560] sm:$0xff] }
  0x93   :  { %4036 = vmatmul.msk.f32.gmra.mxu2 %vm925_vm0, %v5046_v11  ;;  %1592 = vmatmul.f32.gmra.mxu3 %v4603_v41 }
  0x94   :  { %1697 = vmatpush.xpose.msra.mxu2 %v340_v60  ;;  %1738 = vmatpush.xpose.msra.mxu3 %v341_v6  ;;  %v52_v60 = vld [vmem:[%s8799_s0 + $0x100] sm:$0xff]  ;;  %v53_v6 = vld [vmem:[%s8799_s0 + $0x108] sm:$0xff] }
  0x95   :  { %v5131_v20 = vmul.f32 %v4912_v43, %v53_v6  ;;  %v297_v6 = vld [vmem:[%s8797_s2 + $0x4a8] sm:$0xff] }
  0x96   :  { %1616 = vmatpush.xpose.msra.mxu0 %v331_v12  ;;  %1657 = vmatpush.xpose.msra.mxu1 %v332_v15  ;;  %v54_v12 = vld [vmem:[%s8799_s0 + $0x110] sm:$0xff] }
  0x97   :  { %v310_v15 = vld [vmem:[%s8797_s2 + $0x510] sm:$0xff] }
  0x98   :  { %1698 = vmatpush.xpose.msra.mxu2 %v333_v16  ;;  %1739 = vmatpush.xpose.msra.mxu3 %v334_v17  ;;  %v311_v16 = vld [vmem:[%s8797_s2 + $0x518] sm:$0xff]  ;;  %v5128_v17 = vmul.f32 %v4909_v40, %v52_v60  ;;  %v296_v60 = vld [vmem:[%s8797_s2 + $0x4a0] sm:$0xff] }
  0x99   :  { %1472 = vmatmul.f32.gmra.mxu0 %v5081_v62  ;;  %1513 = vmatmul.f32.gmra.mxu1 %v5084_v2 }
  0x9a   :  { %1617 = vmatpush.xpose.msra.mxu0 %v324_v33  ;;  %1658 = vmatpush.xpose.msra.mxu1 %v325_v34  ;;  %8960 = vst [vmem:[#allocation26_spill] sm:$0xff] %v5128_v17  ;;  %v5140_v33 = vmul.f32 %v4920_v49, %v54_v12  ;;  %v303_v34 = vld [vmem:[%s8797_s2 + $0x4d8] sm:$0xff] }
  0x9b   :  { %4037 = vmatmul.msk.f32.gmra.mxu2 %vm925_vm0, %v5093_v48  ;;  %1595 = vmatmul.f32.gmra.mxu3 %v4657_v58 }
  0x9c   :  { %1699 = vmatpush.xpose.msra.mxu2 %v326_v3  ;;  %1740 = vmatpush.xpose.msra.mxu3 %v327_v37  ;;  %v304_v3 = vld [vmem:[%s8797_s2 + $0x4e0] sm:$0xff]  ;;  %v305_v37 = vld [vmem:[%s8797_s2 + $0x4e8] sm:$0xff] }
  0x9e   :  { %1618 = vmatpush.xpose.msra.mxu0 %v317_v50  ;;  %1659 = vmatpush.xpose.msra.mxu1 %v318_v51  ;;  %v306_v50 = vld [vmem:[%s8797_s2 + $0x4f0] sm:$0xff]  ;;  %v59_v51 = vld [vmem:[%s8799_s0 + $0x138] sm:$0xff] }
  0x9f   :  { %v5175_v12 = vmul.f32 %v4909_v40, %v59_v51  ;;  %v66_v51 = vld [vmem:[%s8799_s0 + $0x170] sm:$0xff] }
  0xa0   :  { %1700 = vmatpush.xpose.msra.mxu2 %v319_v52  ;;  %1741 = vmatpush.xpose.msra.mxu3 %v320_v56  ;;  %v60_v52 = vld [vmem:[%s8799_s0 + $0x140] sm:$0xff]  ;;  %v61_v56 = vld [vmem:[%s8799_s0 + $0x148] sm:$0xff] }
  0xa1   :  { %1475 = vmatmul.f32.gmra.mxu0 %v5128_v17  ;;  %1516 = vmatmul.f32.gmra.mxu1 %v5131_v20  ;;  %8961 = vst [vmem:[#allocation27_spill] sm:$0xff] %v5175_v12 }
  0xa2   :  { %1619 = vmatpush.xpose.msra.mxu0 %v310_v15  ;;  %1660 = vmatpush.xpose.msra.mxu1 %v311_v16  ;;  %v5178_v15 = vmul.f32 %v4912_v43, %v60_v52  ;;  %v298_v16 = vld [vmem:[%s8797_s2 + $0x4b0] sm:$0xff]  ;;  %v67_v52 = vld [vmem:[%s8799_s0 + $0x178] sm:$0xff] }
  0xa3   :  { %4038 = vmatmul.msk.f32.gmra.mxu2 %vm925_vm0, %v5140_v33  ;;  %1598 = vmatmul.f32.gmra.mxu3 %v4711_v18 }
  0xa4   :  { %1701 = vmatpush.xpose.msra.mxu2 %v312_v21  ;;  %1742 = vmatpush.xpose.msra.mxu3 %v313_v24  ;;  %v299_v21 = vld [vmem:[%s8797_s2 + $0x4b8] sm:$0xff]  ;;  %v5187_v24 = vmul.f32 %v4920_v49, %v61_v56  ;;  %v68_v56 = vld [vmem:[%s8799_s0 + $0x180] sm:$0xff] }
  0xa6   :  { %1620 = vmatpush.xpose.msra.mxu0 %v303_v34  ;;  %1661 = vmatpush.xpose.msra.mxu1 %v304_v3  ;;  %v289_v34 = vld [vmem:[%s8797_s2 + $0x468] sm:$0xff]  ;;  %v290_v3 = vld [vmem:[%s8797_s2 + $0x470] sm:$0xff] }
  0xa8   :  { %1702 = vmatpush.xpose.msra.mxu2 %v305_v37  ;;  %1743 = vmatpush.xpose.msra.mxu3 %v306_v50  ;;  %v291_v37 = vld [vmem:[%s8797_s2 + $0x478] sm:$0xff]  ;;  %v292_v50 = vld [vmem:[%s8797_s2 + $0x480] sm:$0xff] }
  0xa9   :  { %1478 = vmatmul.f32.gmra.mxu0 %v5175_v12  ;;  %1519 = vmatmul.f32.gmra.mxu1 %v5178_v15 }
  0xaa   :  { %1621 = vmatpush.xpose.msra.mxu0 %v296_v60  ;;  %1662 = vmatpush.xpose.msra.mxu1 %v297_v6  ;;  %v282_v60 = vld [vmem:[%s8797_s2 + $0x430] sm:$0xff]  ;;  %v283_v6 = vld [vmem:[%s8797_s2 + $0x438] sm:$0xff] }
  0xab   :  { %4039 = vmatmul.msk.f32.gmra.mxu2 %vm925_vm0, %v5187_v24  ;;  %1601 = vmatmul.f32.gmra.mxu3 %v4765_v38 }
  0xac   :  { %1703 = vmatpush.xpose.msra.mxu2 %v298_v16  ;;  %1744 = vmatpush.xpose.msra.mxu3 %v299_v21  ;;  %v5222_v16 = vmul.f32 %v4909_v40, %v66_v51  ;;  %v5225_v21 = vmul.f32 %v4912_v43, %v67_v52  ;;  %v276_v51 = vld [vmem:[%s8797_s2 + $0x400] sm:$0xff]  ;;  %v277_v52 = vld [vmem:[%s8797_s2 + $0x408] sm:$0xff] }
  0xae   :  { %1622 = vmatpush.xpose.msra.mxu0 %v289_v34  ;;  %1663 = vmatpush.xpose.msra.mxu1 %v290_v3  ;;  %8962 = vst [vmem:[#allocation28_spill] sm:$0xff] %v5222_v16  ;;  %v284_v34 = vld [vmem:[%s8797_s2 + $0x440] sm:$0xff]  ;;  %v285_v3 = vld [vmem:[%s8797_s2 + $0x448] sm:$0xff] }
  0xaf   :  { %8963 = vst [vmem:[#allocation29_spill] sm:$0xff] %v5225_v21 }
  0xb0   :  { %1704 = vmatpush.xpose.msra.mxu2 %v291_v37  ;;  %1745 = vmatpush.xpose.msra.mxu3 %v292_v50  ;;  %v5234_v37 = vmul.f32 %v4920_v49, %v68_v56  ;;  %v275_v50 = vld [vmem:[%s8797_s2 + $0x3f8] sm:$0xff]  ;;  %v278_v56 = vld [vmem:[%s8797_s2 + $0x410] sm:$0xff] }
  0xb1   :  { %1481 = vmatmul.f32.gmra.mxu0 %v5222_v16  ;;  %1522 = vmatmul.f32.gmra.mxu1 %v5225_v21 }
  0xb2   :  { %8964 = vst [vmem:[#allocation30_spill] sm:$0xff] %v5234_v37  ;;  %1623 = vmatpush.xpose.msra.mxu0 %v282_v60  ;;  %1664 = vmatpush.xpose.msra.mxu1 %v283_v6  ;;  %v73_v60 = vld [vmem:[%s8799_s0 + $0x1a8] sm:$0xff]  ;;  %v74_v6 = vld [vmem:[%s8799_s0 + $0x1b0] sm:$0xff] }
  0xb3   :  { %4040 = vmatmul.msk.f32.gmra.mxu2 %vm925_vm0, %v5234_v37  ;;  %1604 = vmatmul.f32.gmra.mxu3 %v4819_v63  ;;  %v269_v63 = vld [vmem:[%s8797_s2 + $0x3c8] sm:$0xff]  ;;  %v5269_v37 = vmul.f32 %v4909_v40, %v73_v60  ;;  %v370_v60 = vld [vmem:[%s8797_s2 + $0x6f0] sm:$0xff] }
  0xb4   :  { %1705 = vmatpush.xpose.msra.mxu2 %v284_v34  ;;  %1746 = vmatpush.xpose.msra.mxu3 %v285_v3  ;;  %v75_v34 = vld [vmem:[%s8799_s0 + $0x1b8] sm:$0xff]  ;;  %v268_v3 = vld [vmem:[%s8797_s2 + $0x3c0] sm:$0xff]  ;;  %v261_v40 = vld [vmem:[%s8797_s2 + $0x388] sm:$0xff] }
  0xb5   :  { %8965 = vst [vmem:[#allocation31_spill] sm:$0xff] %v5269_v37 }
  0xb6   :  { %1624 = vmatpush.xpose.msra.mxu0 %v275_v50  ;;  %1665 = vmatpush.xpose.msra.mxu1 %v276_v51  ;;  %v5272_v50 = vmul.f32 %v4912_v43, %v74_v6  ;;  %v270_v51 = vld [vmem:[%s8797_s2 + $0x3d0] sm:$0xff]  ;;  %v371_v6 = vld [vmem:[%s8797_s2 + $0x6f8] sm:$0xff] }
  0xb7   :  { %v262_v43 = vld [vmem:[%s8797_s2 + $0x390] sm:$0xff] }
  0xb8   :  { %1706 = vmatpush.xpose.msra.mxu2 %v277_v52  ;;  %1747 = vmatpush.xpose.msra.mxu3 %v278_v56  ;;  %8966 = vst [vmem:[#allocation32_spill] sm:$0xff] %v5272_v50  ;;  %v271_v52 = vld [vmem:[%s8797_s2 + $0x3d8] sm:$0xff]  ;;  %v5281_v56 = vmul.f32 %v4920_v49, %v75_v34  ;;  %v477_v34 = vld [vmem:[%s8797_s2 + $0xa48] sm:$0xff] }
  0xb9   :  { %1484 = vmatmul.f32.gmra.mxu0 %v5269_v37  ;;  %1525 = vmatmul.f32.gmra.mxu1 %v5272_v50  ;;  %v263_v49 = vld [vmem:[%s8797_s2 + $0x398] sm:$0xff] }
  0xba   :  { %1625 = vmatpush.xpose.msra.mxu0 %v268_v3  ;;  %1666 = vmatpush.xpose.msra.mxu1 %v269_v63  ;;  %v264_v63 = vld [vmem:[%s8797_s2 + $0x3a0] sm:$0xff]  ;;  %v478_v3 = vld [vmem:[%s8797_s2 + $0xa50] sm:$0xff] }
  0xbb   :  { %4041 = vmatmul.msk.f32.gmra.mxu2 %vm925_vm0, %v5281_v56  ;;  %1607 = vmatmul.f32.gmra.mxu3 %v4873_v31 }
  0xbc   :  { %1707 = vmatpush.xpose.msra.mxu2 %v270_v51  ;;  %1748 = vmatpush.xpose.msra.mxu3 %v271_v52 }
  0xbe   :  { %1626 = vmatpush.xpose.msra.mxu0 %v261_v40  ;;  %1667 = vmatpush.xpose.msra.mxu1 %v262_v43  ;;  %v1300_v51 = vpop.f32.mrf.mxu0  ;;  %v1341_v52 = vpop.f32.mrf.mxu1  ;;  %v363_v40 = vld [vmem:[%s8797_s2 + $0x6b8] sm:$0xff]  ;;  %v364_v43 = vld [vmem:[%s8797_s2 + $0x6c0] sm:$0xff] }
  0xc0   :  { %1708 = vmatpush.xpose.msra.mxu2 %v263_v49  ;;  %1749 = vmatpush.xpose.msra.mxu3 %v264_v63  ;;  %v470_v49 = vld [vmem:[%s8797_s2 + $0xa10] sm:$0xff]  ;;  %v471_v63 = vld [vmem:[%s8797_s2 + $0xa18] sm:$0xff] }
  0xc1   :  { %1627 = vmatmul.f32.vlgmr.msra.gmra.mxu0 %v4499_v10  ;;  %1668 = vmatmul.f32.vlgmr.msra.gmra.mxu1 %v4508_v13 }
  0xc2   :  { %1775 = vmatpush.xpose.msrb.mxu0 %v370_v60  ;;  %4042 = vmatpush.xpose.msk.msrb.mxu1 %vm925_vm0, %v371_v6  ;;  %v1342_v60 = vadd.f32 %v1341_v52, %v1300_v51  ;;  %v356_v6 = vld [vmem:[%s8797_s2 + $0x680] sm:$0xff] }
  0xc3   :  { %1709 = vmatmul.f32.vlgmr.msra.gmra.mxu2 %v4511_v14  ;;  %1750 = vmatmul.f32.vlgmr.msra.gmra.mxu3 %v4939_v54  ;;  %v463_v54 = vld [vmem:[%s8797_s2 + $0x9d8] sm:$0xff]  ;;  %v464_v51 = vld [vmem:[%s8797_s2 + $0x9e0] sm:$0xff]  ;;  %v350_v14 = vld [vmem:[%s8797_s2 + $0x650] sm:$0xff] }
  0xc4   :  { %1857 = vmatpush.xpose.msrb.mxu2 %v477_v34  ;;  %1898 = vmatpush.xpose.msrb.mxu3 %v478_v3  ;;  %v357_v34 = vld [vmem:[%s8797_s2 + $0x688] sm:$0xff] }
  0xc6   :  { %1776 = vmatpush.xpose.msrb.mxu0 %v363_v40  ;;  %4043 = vmatpush.xpose.msk.msrb.mxu1 %vm925_vm0, %v364_v43  ;;  %v1382_v3 = vpop.f32.mrf.mxu2  ;;  %v1423_v13 = vpop.f32.mrf.mxu3 }
  0xc7   :  { %v1383_v52 = vadd.f32 %v1382_v3, %v1342_v60  ;;  %v1303_v40 = vpop.f32.mrf.mxu0  ;;  %v1344_v43 = vpop.f32.mrf.mxu1  ;;  %v456_v60 = vld [vmem:[%s8797_s2 + $0x9a0] sm:$0xff] }
  0xc8   :  { %1858 = vmatpush.xpose.msrb.mxu2 %v470_v49  ;;  %1899 = vmatpush.xpose.msrb.mxu3 %v471_v63  ;;  %v349_v63 = vld [vmem:[%s8797_s2 + $0x648] sm:$0xff] }
  0xc9   :  { %v5343_v49 = vadd.f32 %v1423_v13, %v1383_v52  ;;  %1630 = vmatmul.f32.gmra.mxu0 %v4552_v26  ;;  %1671 = vmatmul.f32.gmra.mxu1 %v4561_v29  ;;  %v457_v13 = vld [vmem:[%s8797_s2 + $0x9a8] sm:$0xff] }
  0xca   :  { %1777 = vmatpush.xpose.msrb.mxu0 %v356_v6  ;;  %4044 = vmatpush.xpose.msk.msrb.mxu1 %vm925_vm0, %v357_v34  ;;  %v342_v6 = vld [vmem:[%s8797_s2 + $0x610] sm:$0xff]  ;;  %v343_v34 = vld [vmem:[%s8797_s2 + $0x618] sm:$0xff]  ;;  %v449_v52 = vld [vmem:[%s8797_s2 + $0x968] sm:$0xff] }
  0xcb   :  { %1712 = vmatmul.f32.gmra.mxu2 %v4564_v30  ;;  %1753 = vmatmul.f32.gmra.mxu3 %v4987_v27  ;;  %v336_v27 = vld [vmem:[%s8797_s2 + $0x5e0] sm:$0xff] }
  0xcc   :  { %1859 = vmatpush.xpose.msrb.mxu2 %v463_v54  ;;  %1900 = vmatpush.xpose.msrb.mxu3 %v464_v51  ;;  %v1345_v54 = vadd.f32 %v1344_v43, %v1303_v40 }
  0xce   :  { %1778 = vmatpush.xpose.msrb.mxu0 %v349_v63  ;;  %4045 = vmatpush.xpose.msk.msrb.mxu1 %vm925_vm0, %v350_v14  ;;  %v1385_v3 = vpop.f32.mrf.mxu2  ;;  %v1426_v51 = vpop.f32.mrf.mxu3  ;;  %v450_v14 = vld [vmem:[%s8797_s2 + $0x970] sm:$0xff] }
  0xcf   :  { %v1386_v40 = vadd.f32 %v1385_v3, %v1345_v54  ;;  %v1306_v43 = vpop.f32.mrf.mxu0  ;;  %v1347_v63 = vpop.f32.mrf.mxu1  ;;  %v442_v54 = vld [vmem:[%s8797_s2 + $0x930] sm:$0xff]  ;;  %v328_v3 = vld [vmem:[%s8797_s2 + $0x5a0] sm:$0xff] }
  0xd0   :  { %1860 = vmatpush.xpose.msrb.mxu2 %v456_v60  ;;  %1901 = vmatpush.xpose.msrb.mxu3 %v457_v13  ;;  %v335_v13 = vld [vmem:[%s8797_s2 + $0x5d8] sm:$0xff] }
  0xd1   :  { %v5375_v60 = vadd.f32 %v1426_v51, %v1386_v40  ;;  %1633 = vmatmul.f32.gmra.mxu0 %v4606_v42  ;;  %1674 = vmatmul.f32.gmra.mxu1 %v4615_v45  ;;  %v329_v51 = vld [vmem:[%s8797_s2 + $0x5a8] sm:$0xff]  ;;  %v435_v40 = vld [vmem:[%s8797_s2 + $0x8f8] sm:$0xff] }
  0xd2   :  { %1779 = vmatpush.xpose.msrb.mxu0 %v342_v6  ;;  %4046 = vmatpush.xpose.msk.msrb.mxu1 %vm925_vm0, %v343_v34  ;;  %v443_v6 = vld [vmem:[%s8797_s2 + $0x938] sm:$0xff]  ;;  %v1348_v34 = vadd.f32 %v1347_v63, %v1306_v43 }
  0xd3   :  { %1715 = vmatmul.f32.gmra.mxu2 %v4618_v46  ;;  %1756 = vmatmul.f32.gmra.mxu3 %v5034_v53  ;;  %v322_v53 = vld [vmem:[%s8797_s2 + $0x570] sm:$0xff] }
  0xd4   :  { %1861 = vmatpush.xpose.msrb.mxu2 %v449_v52  ;;  %1902 = vmatpush.xpose.msrb.mxu3 %v450_v14 }
  0xd6   :  { %1780 = vmatpush.xpose.msrb.mxu0 %v335_v13  ;;  %4047 = vmatpush.xpose.msk.msrb.mxu1 %vm925_vm0, %v336_v27  ;;  %v1388_v52 = vpop.f32.mrf.mxu2  ;;  %v1429_v14 = vpop.f32.mrf.mxu3  ;;  %v436_v27 = vld [vmem:[%s8797_s2 + $0x900] sm:$0xff] }
  0xd7   :  { %v1389_v43 = vadd.f32 %v1388_v52, %v1348_v34  ;;  %v1309_v63 = vpop.f32.mrf.mxu0  ;;  %v1350_v13 = vpop.f32.mrf.mxu1  ;;  %v428_v34 = vld [vmem:[%s8797_s2 + $0x8c0] sm:$0xff]  ;;  %v314_v52 = vld [vmem:[%s8797_s2 + $0x530] sm:$0xff] }
  0xd8   :  { %1862 = vmatpush.xpose.msrb.mxu2 %v442_v54  ;;  %1903 = vmatpush.xpose.msrb.mxu3 %v443_v6  ;;  %v321_v6 = vld [vmem:[%s8797_s2 + $0x568] sm:$0xff] }
  0xd9   :  { %v5407_v54 = vadd.f32 %v1429_v14, %v1389_v43  ;;  %1636 = vmatmul.f32.gmra.mxu0 %v4660_v59  ;;  %1677 = vmatmul.f32.gmra.mxu1 %v4669_v0  ;;  %v315_v14 = vld [vmem:[%s8797_s2 + $0x538] sm:$0xff]  ;;  %v421_v43 = vld [vmem:[%s8797_s2 + $0x888] sm:$0xff] }
  0xda   :  { %1781 = vmatpush.xpose.msrb.mxu0 %v328_v3  ;;  %4048 = vmatpush.xpose.msk.msrb.mxu1 %vm925_vm0, %v329_v51  ;;  %v429_v3 = vld [vmem:[%s8797_s2 + $0x8c8] sm:$0xff]  ;;  %v1351_v51 = vadd.f32 %v1350_v13, %v1309_v63 }
  0xdb   :  { %1718 = vmatmul.f32.gmra.mxu2 %v4672_v1  ;;  %1759 = vmatmul.f32.gmra.mxu3 %v5081_v62  ;;  %v308_v62 = vld [vmem:[%s8797_s2 + $0x500] sm:$0xff] }
  0xdc   :  { %1863 = vmatpush.xpose.msrb.mxu2 %v435_v40  ;;  %1904 = vmatpush.xpose.msrb.mxu3 %v436_v27 }
  0xde   :  { %1782 = vmatpush.xpose.msrb.mxu0 %v321_v6  ;;  %4049 = vmatpush.xpose.msk.msrb.mxu1 %vm925_vm0, %v322_v53  ;;  %v1391_v40 = vpop.f32.mrf.mxu2  ;;  %v1432_v27 = vpop.f32.mrf.mxu3  ;;  %v422_v53 = vld [vmem:[%s8797_s2 + $0x890] sm:$0xff] }
  0xdf   :  { %v1392_v63 = vadd.f32 %v1391_v40, %v1351_v51  ;;  %v1312_v13 = vpop.f32.mrf.mxu0  ;;  %v1353_v6 = vpop.f32.mrf.mxu1  ;;  %v414_v51 = vld [vmem:[%s8797_s2 + $0x850] sm:$0xff]  ;;  %v300_v40 = vld [vmem:[%s8797_s2 + $0x4c0] sm:$0xff] }
  0xe0   :  { %1864 = vmatpush.xpose.msrb.mxu2 %v428_v34  ;;  %1905 = vmatpush.xpose.msrb.mxu3 %v429_v3  ;;  %v307_v3 = vld [vmem:[%s8797_s2 + $0x4f8] sm:$0xff] }
  0xe1   :  { %v5439_v34 = vadd.f32 %v1432_v27, %v1392_v63  ;;  %1639 = vmatmul.f32.gmra.mxu0 %v4714_v19  ;;  %1680 = vmatmul.f32.gmra.mxu1 %v4723_v22  ;;  %v301_v27 = vld [vmem:[%s8797_s2 + $0x4c8] sm:$0xff]  ;;  %v407_v63 = vld [vmem:[%s8797_s2 + $0x818] sm:$0xff] }
  0xe2   :  { %1783 = vmatpush.xpose.msrb.mxu0 %v314_v52  ;;  %4050 = vmatpush.xpose.msk.msrb.mxu1 %vm925_vm0, %v315_v14  ;;  %v415_v52 = vld [vmem:[%s8797_s2 + $0x858] sm:$0xff]  ;;  %v1354_v14 = vadd.f32 %v1353_v6, %v1312_v13 }
  0xe3   :  { %1721 = vmatmul.f32.gmra.mxu2 %v4726_v23  ;;  %1762 = vmatmul.f32.gmra.mxu3 %v5128_v17  ;;  %v294_v17 = vld [vmem:[%s8797_s2 + $0x490] sm:$0xff] }
  0xe4   :  { %1865 = vmatpush.xpose.msrb.mxu2 %v421_v43  ;;  %1906 = vmatpush.xpose.msrb.mxu3 %v422_v53 }
  0xe6   :  { %1784 = vmatpush.xpose.msrb.mxu0 %v307_v3  ;;  %4051 = vmatpush.xpose.msk.msrb.mxu1 %vm925_vm0, %v308_v62  ;;  %v1394_v43 = vpop.f32.mrf.mxu2  ;;  %v1435_v53 = vpop.f32.mrf.mxu3  ;;  %v408_v62 = vld [vmem:[%s8797_s2 + $0x820] sm:$0xff] }
  0xe7   :  { %v1395_v13 = vadd.f32 %v1394_v43, %v1354_v14  ;;  %v1315_v6 = vpop.f32.mrf.mxu0  ;;  %v1356_v3 = vpop.f32.mrf.mxu1  ;;  %v400_v14 = vld [vmem:[%s8797_s2 + $0x7e0] sm:$0xff]  ;;  %v286_v43 = vld [vmem:[%s8797_s2 + $0x450] sm:$0xff] }
  0xe8   :  { %1866 = vmatpush.xpose.msrb.mxu2 %v414_v51  ;;  %1907 = vmatpush.xpose.msrb.mxu3 %v415_v52  ;;  %v293_v52 = vld [vmem:[%s8797_s2 + $0x488] sm:$0xff] }
  0xe9   :  { %v5471_v51 = vadd.f32 %v1435_v53, %v1395_v13  ;;  %1642 = vmatmul.f32.gmra.mxu0 %v4768_v39  ;;  %1683 = vmatmul.f32.gmra.mxu1 %v4777_v44  ;;  %v287_v53 = vld [vmem:[%s8797_s2 + $0x458] sm:$0xff]  ;;  %v393_v13 = vld [vmem:[%s8797_s2 + $0x7a8] sm:$0xff] }
  0xea   :  { %1785 = vmatpush.xpose.msrb.mxu0 %v300_v40  ;;  %4052 = vmatpush.xpose.msk.msrb.mxu1 %vm925_vm0, %v301_v27  ;;  %v401_v40 = vld [vmem:[%s8797_s2 + $0x7e8] sm:$0xff]  ;;  %v1357_v27 = vadd.f32 %v1356_v3, %v1315_v6 }
  0xeb   :  { %1724 = vmatmul.f32.gmra.mxu2 %v4780_v47  ;;  %1765 = vmatmul.f32.gmra.mxu3 %v5175_v12  ;;  %v280_v12 = vld [vmem:[%s8797_s2 + $0x420] sm:$0xff] }
  0xec   :  { %1867 = vmatpush.xpose.msrb.mxu2 %v407_v63  ;;  %1908 = vmatpush.xpose.msrb.mxu3 %v408_v62 }
  0xee   :  { %1786 = vmatpush.xpose.msrb.mxu0 %v293_v52  ;;  %4053 = vmatpush.xpose.msk.msrb.mxu1 %vm925_vm0, %v294_v17  ;;  %v1397_v63 = vpop.f32.mrf.mxu2  ;;  %v1438_v62 = vpop.f32.mrf.mxu3  ;;  %v394_v17 = vld [vmem:[%s8797_s2 + $0x7b0] sm:$0xff] }
  0xef   :  { %v1398_v6 = vadd.f32 %v1397_v63, %v1357_v27  ;;  %v1318_v3 = vpop.f32.mrf.mxu0  ;;  %v1359_v52 = vpop.f32.mrf.mxu1  ;;  %v386_v27 = vld [vmem:[%s8797_s2 + $0x770] sm:$0xff]  ;;  %v272_v63 = vld [vmem:[%s8797_s2 + $0x3e0] sm:$0xff] }
  0xf0   :  { %1868 = vmatpush.xpose.msrb.mxu2 %v400_v14  ;;  %1909 = vmatpush.xpose.msrb.mxu3 %v401_v40  ;;  %v279_v40 = vld [vmem:[%s8797_s2 + $0x418] sm:$0xff] }
  0xf1   :  { %v5503_v14 = vadd.f32 %v1438_v62, %v1398_v6  ;;  %1645 = vmatmul.f32.gmra.mxu0 %v4822_v4  ;;  %1686 = vmatmul.f32.gmra.mxu1 %v4831_v7  ;;  %v273_v62 = vld [vmem:[%s8797_s2 + $0x3e8] sm:$0xff]  ;;  %v379_v6 = vld [vmem:[%s8797_s2 + $0x738] sm:$0xff]  ;;  %v472_v7 = vld [vmem:[%s8797_s2 + $0xa20] sm:$0xff] }
  0xf2   :  { %1787 = vmatpush.xpose.msrb.mxu0 %v286_v43  ;;  %4054 = vmatpush.xpose.msk.msrb.mxu1 %vm925_vm0, %v287_v53  ;;  %v387_v43 = vld [vmem:[%s8797_s2 + $0x778] sm:$0xff]  ;;  %v1360_v53 = vadd.f32 %v1359_v52, %v1318_v3 }
  0xf3   :  { %1727 = vmatmul.f32.gmra.mxu2 %v4834_v8  ;;  %1768 = vmatmul.f32.gmra.mxu3 %v5222_v16  ;;  %v266_v16 = vld [vmem:[%s8797_s2 + $0x3b0] sm:$0xff] }
  0xf4   :  { %1869 = vmatpush.xpose.msrb.mxu2 %v393_v13  ;;  %1910 = vmatpush.xpose.msrb.mxu3 %v394_v17 }
  0xf6   :  { %1788 = vmatpush.xpose.msrb.mxu0 %v279_v40  ;;  %4055 = vmatpush.xpose.msk.msrb.mxu1 %vm925_vm0, %v280_v12  ;;  %v1400_v13 = vpop.f32.mrf.mxu2  ;;  %v1441_v17 = vpop.f32.mrf.mxu3  ;;  %v380_v12 = vld [vmem:[%s8797_s2 + $0x740] sm:$0xff] }
  0xf7   :  { %v1401_v3 = vadd.f32 %v1400_v13, %v1360_v53  ;;  %v1321_v52 = vpop.f32.mrf.mxu0  ;;  %v1362_v40 = vpop.f32.mrf.mxu1  ;;  %v372_v53 = vld [vmem:[%s8797_s2 + $0x700] sm:$0xff] }
  0xf8   :  { %1870 = vmatpush.xpose.msrb.mxu2 %v386_v27  ;;  %1911 = vmatpush.xpose.msrb.mxu3 %v387_v43  ;;  %v265_v43 = vld [vmem:[%s8797_s2 + $0x3a8] sm:$0xff]  ;;  %v480_v13 = vld [vmem:[%s8797_s2 + $0xa60] sm:$0xff] }
  0xf9   :  { %v5535_v27 = vadd.f32 %v1441_v17, %v1401_v3  ;;  %1648 = vmatmul.f32.gmra.mxu0 %v4876_v32  ;;  %1689 = vmatmul.f32.gmra.mxu1 %v4885_v35  ;;  %v481_v17 = vld [vmem:[%s8797_s2 + $0xa68] sm:$0xff] }
  0xfa   :  { %1789 = vmatpush.xpose.msrb.mxu0 %v272_v63  ;;  %4056 = vmatpush.xpose.msk.msrb.mxu1 %vm925_vm0, %v273_v62  ;;  %v373_v63 = vld [vmem:[%s8797_s2 + $0x708] sm:$0xff]  ;;  %v479_v62 = vld [vmem:[%s8797_s2 + $0xa58] sm:$0xff] }
  0xfb   :  { %1730 = vmatmul.f32.gmra.mxu2 %v4888_v36  ;;  %1771 = vmatmul.f32.gmra.mxu3 %v5269_v37 }
  0xfc   :  { %1871 = vmatpush.xpose.msrb.mxu2 %v379_v6  ;;  %1912 = vmatpush.xpose.msrb.mxu3 %v380_v12  ;;  %v482_v6 = vld [vmem:[%s8797_s2 + $0xa70] sm:$0xff]  ;;  %v1363_v12 = vadd.f32 %v1362_v40, %v1321_v52  ;;  %v473_v52 = vld [vmem:[%s8797_s2 + $0xa28] sm:$0xff] }
  0xfe   :  { %1790 = vmatpush.xpose.msrb.mxu0 %v265_v43  ;;  %4057 = vmatpush.xpose.msk.msrb.mxu1 %vm925_vm0, %v266_v16  ;;  %v1403_v3 = vpop.f32.mrf.mxu2  ;;  %v1444_v37 = vpop.f32.mrf.mxu3 }
  0xff   :  { %v1404_v36 = vadd.f32 %v1403_v3, %v1363_v12  ;;  %v1464_v35 = vpop.f32.mrf.mxu0  ;;  %v1505_v43 = vpop.f32.mrf.mxu1  ;;  %v458_v3 = vld [vmem:[%s8797_s2 + $0x9b0] sm:$0xff] }
 0x100   :  { %1872 = vmatpush.xpose.msrb.mxu2 %v372_v53  ;;  %1913 = vmatpush.xpose.msrb.mxu3 %v373_v63  ;;  %v1465_v16 = vadd.f32 %v1464_v35, %v5343_v49  ;;  %v474_v35 = vld [vmem:[%s8797_s2 + $0xa30] sm:$0xff] }
 0x101   :  { %v5567_v8 = vadd.f32 %v1444_v37, %v1404_v36  ;;  %1791 = vmatmul.f32.vlgmr.msrb.gmra.mxu0 %v4942_v55  ;;  %4058 = vmatmul.msk.f32.vlgmr.msrb.gmra.mxu1 %vm925_vm0, %v4951_v5  ;;  %v475_v36 = vld [vmem:[%s8797_s2 + $0xa38] sm:$0xff]  ;;  %v465_v37 = vld [vmem:[%s8797_s2 + $0x9e8] sm:$0xff]  ;;  %v466_v49 = vld [vmem:[%s8797_s2 + $0x9f0] sm:$0xff] }
 0x102   :  { %1939 = vmatpush.xpose.msra.mxu0 %v479_v62  ;;  %1980 = vmatpush.xpose.msra.mxu1 %v480_v13  ;;  %v1506_v40 = vadd.f32 %v1505_v43, %v1465_v16  ;;  %v467_v62 = vld [vmem:[%s8797_s2 + $0x9f8] sm:$0xff] }
 0x103   :  { %1873 = vmatmul.f32.vlgmr.msrb.gmra.mxu2 %v4496_v9  ;;  %1914 = vmatmul.f32.vlgmr.msrb.gmra.mxu3 %v4499_v10  ;;  %v459_v43 = vld [vmem:[%s8797_s2 + $0x9b8] sm:$0xff] }
 0x104   :  { %2021 = vmatpush.xpose.msra.mxu2 %v481_v17  ;;  %2062 = vmatpush.xpose.msra.mxu3 %v482_v6 }
 0x106   :  { %1940 = vmatpush.xpose.msra.mxu0 %v472_v7  ;;  %1981 = vmatpush.xpose.msra.mxu1 %v473_v52  ;;  %v1546_v53 = vpop.f32.mrf.mxu2  ;;  %v5592_v63 = vpop.f32.mrf.mxu3  ;;  %v468_v7 = vld [vmem:[%s8797_s2 + $0xa00] sm:$0xff]  ;;  %v461_v52 = vld [vmem:[%s8797_s2 + $0x9c8] sm:$0xff] }
 0x107   :  { %v5600_v13 = vadd.f32 %v1546_v53, %v1506_v40  ;;  %v1467_v17 = vpop.f32.mrf.mxu0  ;;  %v1508_v6 = vpop.f32.mrf.mxu1  ;;  %v451_v40 = vld [vmem:[%s8797_s2 + $0x978] sm:$0xff]  ;;  %v454_v53 = vld [vmem:[%s8797_s2 + $0x990] sm:$0xff] }
 0x108   :  { %2022 = vmatpush.xpose.msra.mxu2 %v474_v35  ;;  %2063 = vmatpush.xpose.msra.mxu3 %v475_v36  ;;  %v1468_v12 = vadd.f32 %v1467_v17, %v5375_v60  ;;  %v460_v60 = vld [vmem:[%s8797_s2 + $0x9c0] sm:$0xff] }
 0x109   :  { %8967 = vst [vmem:[#allocation33_spill] sm:$0xff] %v5600_v13  ;;  %1794 = vmatmul.f32.gmra.mxu0 %v4990_v28  ;;  %4059 = vmatmul.msk.f32.gmra.mxu1 %vm925_vm0, %v4999_v61  ;;  %v452_v35 = vld [vmem:[%s8797_s2 + $0x980] sm:$0xff] }
 0x10a   :  { %1941 = vmatpush.xpose.msra.mxu0 %v465_v37  ;;  %1982 = vmatpush.xpose.msra.mxu1 %v466_v49  ;;  %v1509_v16 = vadd.f32 %v1508_v6, %v1468_v12  ;;  %v453_v49 = vld [vmem:[%s8797_s2 + $0x988] sm:$0xff]  ;;  %v444_v12 = vld [vmem:[%s8797_s2 + $0x940] sm:$0xff] }
 0x10b   :  { %1876 = vmatmul.f32.gmra.mxu2 %v4549_v25  ;;  %1917 = vmatmul.f32.gmra.mxu3 %v4552_v26 }
 0x10c   :  { %2023 = vmatpush.xpose.msra.mxu2 %v467_v62  ;;  %2064 = vmatpush.xpose.msra.mxu3 %v468_v7 }
 0x10e   :  { %1942 = vmatpush.xpose.msra.mxu0 %v458_v3  ;;  %1983 = vmatpush.xpose.msra.mxu1 %v459_v43  ;;  %v1549_v36 = vpop.f32.mrf.mxu2  ;;  %v5626_v37 = vpop.f32.mrf.mxu3  ;;  %v445_v3 = vld [vmem:[%s8797_s2 + $0x948] sm:$0xff]  ;;  %v446_v43 = vld [vmem:[%s8797_s2 + $0x950] sm:$0xff] }
 0x10f   :  { %v5634_v62 = vadd.f32 %v1549_v36, %v1509_v16  ;;  %v1470_v7 = vpop.f32.mrf.mxu0  ;;  %v1511_v17 = vpop.f32.mrf.mxu1  ;;  %v439_v36 = vld [vmem:[%s8797_s2 + $0x918] sm:$0xff] }
 0x110   :  { %2024 = vmatpush.xpose.msra.mxu2 %v460_v60  ;;  %2065 = vmatpush.xpose.msra.mxu3 %v461_v52  ;;  %v1471_v6 = vadd.f32 %v1470_v7, %v5407_v54  ;;  %v447_v54 = vld [vmem:[%s8797_s2 + $0x958] sm:$0xff]  ;;  %v437_v60 = vld [vmem:[%s8797_s2 + $0x908] sm:$0xff]  ;;  %v438_v52 = vld [vmem:[%s8797_s2 + $0x910] sm:$0xff] }
 0x111   :  { %8968 = vst [vmem:[#allocation34_spill] sm:$0xff] %v5634_v62  ;;  %1797 = vmatmul.f32.gmra.mxu0 %v5037_v57  ;;  %4060 = vmatmul.msk.f32.gmra.mxu1 %vm925_vm0, %v5046_v11 }
 0x112   :  { %1943 = vmatpush.xpose.msra.mxu0 %v451_v40  ;;  %1984 = vmatpush.xpose.msra.mxu1 %v452_v35  ;;  %v1512_v16 = vadd.f32 %v1511_v17, %v1471_v6 }
 0x113   :  { %1879 = vmatmul.f32.gmra.mxu2 %v4603_v41  ;;  %1920 = vmatmul.f32.gmra.mxu3 %v4606_v42 }
 0x114   :  { %2025 = vmatpush.xpose.msra.mxu2 %v453_v49  ;;  %2066 = vmatpush.xpose.msra.mxu3 %v454_v53  ;;  %v440_v49 = vld [vmem:[%s8797_s2 + $0x920] sm:$0xff] }
 0x116   :  { %1944 = vmatpush.xpose.msra.mxu0 %v444_v12  ;;  %1985 = vmatpush.xpose.msra.mxu1 %v445_v3  ;;  %v1552_v40 = vpop.f32.mrf.mxu2  ;;  %v5660_v35 = vpop.f32.mrf.mxu3  ;;  %v430_v12 = vld [vmem:[%s8797_s2 + $0x8d0] sm:$0xff]  ;;  %v431_v3 = vld [vmem:[%s8797_s2 + $0x8d8] sm:$0xff] }
 0x117   :  { %v5668_v53 = vadd.f32 %v1552_v40, %v1512_v16  ;;  %v1473_v7 = vpop.f32.mrf.mxu0  ;;  %v1514_v17 = vpop.f32.mrf.mxu1  ;;  %v423_v16 = vld [vmem:[%s8797_s2 + $0x898] sm:$0xff] }
 0x118   :  { %2026 = vmatpush.xpose.msra.mxu2 %v446_v43  ;;  %2067 = vmatpush.xpose.msra.mxu3 %v447_v54  ;;  %v1474_v6 = vadd.f32 %v1473_v7, %v5439_v34  ;;  %v432_v43 = vld [vmem:[%s8797_s2 + $0x8e0] sm:$0xff]  ;;  %v433_v34 = vld [vmem:[%s8797_s2 + $0x8e8] sm:$0xff] }
 0x119   :  { %8969 = vst [vmem:[#allocation35_spill] sm:$0xff] %v5668_v53  ;;  %1800 = vmatmul.f32.gmra.mxu0 %v5084_v2  ;;  %4061 = vmatmul.msk.f32.gmra.mxu1 %vm925_vm0, %v5093_v48  ;;  %v375_v53 = vld [vmem:[%s8797_s2 + $0x718] sm:$0xff] }
 0x11a   :  { %1945 = vmatpush.xpose.msra.mxu0 %v437_v60  ;;  %1986 = vmatpush.xpose.msra.mxu1 %v438_v52  ;;  %v1515_v54 = vadd.f32 %v1514_v17, %v1474_v6  ;;  %v424_v60 = vld [vmem:[%s8797_s2 + $0x8a0] sm:$0xff] }
 0x11b   :  { %1882 = vmatmul.f32.gmra.mxu2 %v4657_v58  ;;  %1923 = vmatmul.f32.gmra.mxu3 %v4660_v59 }
 0x11c   :  { %2027 = vmatpush.xpose.msra.mxu2 %v439_v36  ;;  %2068 = vmatpush.xpose.msra.mxu3 %v440_v49  ;;  %v425_v36 = vld [vmem:[%s8797_s2 + $0x8a8] sm:$0xff]  ;;  %v426_v49 = vld [vmem:[%s8797_s2 + $0x8b0] sm:$0xff] }
 0x11e   :  { %1946 = vmatpush.xpose.msra.mxu0 %v430_v12  ;;  %1987 = vmatpush.xpose.msra.mxu1 %v431_v3  ;;  %v1555_v52 = vpop.f32.mrf.mxu2  ;;  %v5694_v40 = vpop.f32.mrf.mxu3  ;;  %v416_v3 = vld [vmem:[%s8797_s2 + $0x860] sm:$0xff] }
 0x11f   :  { %v5702_v7 = vadd.f32 %v1555_v52, %v1515_v54  ;;  %v1476_v17 = vpop.f32.mrf.mxu0  ;;  %v1517_v6 = vpop.f32.mrf.mxu1 }
 0x120   :  { %2028 = vmatpush.xpose.msra.mxu2 %v432_v43  ;;  %2069 = vmatpush.xpose.msra.mxu3 %v433_v34  ;;  %v1477_v12 = vadd.f32 %v1476_v17, %v5471_v51  ;;  %v417_v43 = vld [vmem:[%s8797_s2 + $0x868] sm:$0xff]  ;;  %v418_v34 = vld [vmem:[%s8797_s2 + $0x870] sm:$0xff]  ;;  %v419_v51 = vld [vmem:[%s8797_s2 + $0x878] sm:$0xff] }
 0x121   :  { %8970 = vst [vmem:[#allocation36_spill] sm:$0xff] %v5702_v7  ;;  %1803 = vmatmul.f32.gmra.mxu0 %v5131_v20  ;;  %4062 = vmatmul.msk.f32.gmra.mxu1 %vm925_vm0, %v5140_v33  ;;  %v412_v17 = vld [vmem:[%s8797_s2 + $0x840] sm:$0xff]  ;;  %v383_v7 = vld [vmem:[%s8797_s2 + $0x758] sm:$0xff] }
 0x122   :  { %1947 = vmatpush.xpose.msra.mxu0 %v423_v16  ;;  %1988 = vmatpush.xpose.msra.mxu1 %v424_v60  ;;  %v1518_v54 = vadd.f32 %v1517_v6, %v1477_v12  ;;  %v409_v16 = vld [vmem:[%s8797_s2 + $0x828] sm:$0xff]  ;;  %v410_v60 = vld [vmem:[%s8797_s2 + $0x830] sm:$0xff] }
 0x123   :  { %1885 = vmatmul.f32.gmra.mxu2 %v4711_v18  ;;  %1926 = vmatmul.f32.gmra.mxu3 %v4714_v19 }
 0x124   :  { %2029 = vmatpush.xpose.msra.mxu2 %v425_v36  ;;  %2070 = vmatpush.xpose.msra.mxu3 %v426_v49  ;;  %v411_v49 = vld [vmem:[%s8797_s2 + $0x838] sm:$0xff] }
 0x126   :  { %1948 = vmatpush.xpose.msra.mxu0 %v416_v3  ;;  %1989 = vmatpush.xpose.msra.mxu1 %v417_v43  ;;  %v1558_v52 = vpop.f32.mrf.mxu2  ;;  %v5728_v36 = vpop.f32.mrf.mxu3 }
 0x127   :  { %v5736_v6 = vadd.f32 %v1558_v52, %v1518_v54  ;;  %v1479_v12 = vpop.f32.mrf.mxu0  ;;  %v1520_v3 = vpop.f32.mrf.mxu1  ;;  %v404_v54 = vld [vmem:[%s8797_s2 + $0x800] sm:$0xff] }
 0x128   :  { %2030 = vmatpush.xpose.msra.mxu2 %v418_v34  ;;  %2071 = vmatpush.xpose.msra.mxu3 %v419_v51  ;;  %v1480_v43 = vadd.f32 %v1479_v12, %v5503_v14  ;;  %v402_v34 = vld [vmem:[%s8797_s2 + $0x7f0] sm:$0xff]  ;;  %v403_v51 = vld [vmem:[%s8797_s2 + $0x7f8] sm:$0xff]  ;;  %v405_v14 = vld [vmem:[%s8797_s2 + $0x808] sm:$0xff] }
 0x129   :  { %8971 = vst [vmem:[#allocation37_spill] sm:$0xff] %v5736_v6  ;;  %1806 = vmatmul.f32.gmra.mxu0 %v5178_v15  ;;  %4063 = vmatmul.msk.f32.gmra.mxu1 %vm925_vm0, %v5187_v24  ;;  %v396_v52 = vld [vmem:[%s8797_s2 + $0x7c0] sm:$0xff]  ;;  %v397_v12 = vld [vmem:[%s8797_s2 + $0x7c8] sm:$0xff] }
 0x12a   :  { %1949 = vmatpush.xpose.msra.mxu0 %v409_v16  ;;  %1990 = vmatpush.xpose.msra.mxu1 %v410_v60  ;;  %v1521_v16 = vadd.f32 %v1520_v3, %v1480_v43  ;;  %v395_v60 = vld [vmem:[%s8797_s2 + $0x7b8] sm:$0xff]  ;;  %v398_v3 = vld [vmem:[%s8797_s2 + $0x7d0] sm:$0xff]  ;;  %v389_v6 = vld [vmem:[%s8797_s2 + $0x788] sm:$0xff] }
 0x12b   :  { %1888 = vmatmul.f32.gmra.mxu2 %v4765_v38  ;;  %1929 = vmatmul.f32.gmra.mxu3 %v4768_v39 }
 0x12c   :  { %2031 = vmatpush.xpose.msra.mxu2 %v411_v49  ;;  %2072 = vmatpush.xpose.msra.mxu3 %v412_v17 }
 0x12e   :  { %1950 = vmatpush.xpose.msra.mxu0 %v402_v34  ;;  %1991 = vmatpush.xpose.msra.mxu1 %v403_v51  ;;  %v1561_v49 = vpop.f32.mrf.mxu2  ;;  %v5762_v17 = vpop.f32.mrf.mxu3 }
 0x12f   :  { %v5770_v43 = vadd.f32 %v1561_v49, %v1521_v16  ;;  %v1482_v34 = vpop.f32.mrf.mxu0  ;;  %v1523_v51 = vpop.f32.mrf.mxu1  ;;  %v8973_v16 = vld [vmem:[#allocation30_spill] sm:$0xff] }
 0x130   :  { %2032 = vmatpush.xpose.msra.mxu2 %v404_v54  ;;  %2073 = vmatpush.xpose.msra.mxu3 %v405_v14  ;;  %v1483_v54 = vadd.f32 %v1482_v34, %v5535_v27  ;;  %v388_v14 = vld [vmem:[%s8797_s2 + $0x780] sm:$0xff]  ;;  %v391_v27 = vld [vmem:[%s8797_s2 + $0x798] sm:$0xff] }
 0x131   :  { %8972 = vst [vmem:[#allocation38_spill] sm:$0xff] %v5770_v43  ;;  %1809 = vmatmul.f32.gmra.mxu0 %v5225_v21  ;;  %4064 = vmatmul.msk.f32.gmra.mxu1 %vm925_vm0, %v8973_v16 }
 0x132   :  { %1951 = vmatpush.xpose.msra.mxu0 %v395_v60  ;;  %1992 = vmatpush.xpose.msra.mxu1 %v396_v52  ;;  %v390_v60 = vld [vmem:[%s8797_s2 + $0x790] sm:$0xff]  ;;  %v8974_v52 = vld [vmem:[#allocation11_spill] sm:$0xff]  ;;  %v1524_v49 = vadd.f32 %v1523_v51, %v1483_v54 }
 0x133   :  { %1891 = vmatmul.f32.gmra.mxu2 %v8974_v52  ;;  %1932 = vmatmul.f32.gmra.mxu3 %v4822_v4 }
 0x134   :  { %2033 = vmatpush.xpose.msra.mxu2 %v397_v12  ;;  %2074 = vmatpush.xpose.msra.mxu3 %v398_v3  ;;  %v381_v12 = vld [vmem:[%s8797_s2 + $0x748] sm:$0xff]  ;;  %v382_v3 = vld [vmem:[%s8797_s2 + $0x750] sm:$0xff] }
 0x136   :  { %1952 = vmatpush.xpose.msra.mxu0 %v388_v14  ;;  %1993 = vmatpush.xpose.msra.mxu1 %v389_v6  ;;  %v1564_v34 = vpop.f32.mrf.mxu2  ;;  %v5796_v43 = vpop.f32.mrf.mxu3  ;;  %v384_v6 = vld [vmem:[%s8797_s2 + $0x760] sm:$0xff] }
 0x137   :  { %v5804_v51 = vadd.f32 %v1564_v34, %v1524_v49  ;;  %v1485_v54 = vpop.f32.mrf.mxu0  ;;  %v1526_v14 = vpop.f32.mrf.mxu1  ;;  %v376_v49 = vld [vmem:[%s8797_s2 + $0x720] sm:$0xff]  ;;  %v591_v34 = vld [vmem:[%s8797_s2 + $0xdd8] sm:$0xff] }
 0x138   :  { %2034 = vmatpush.xpose.msra.mxu2 %v390_v60  ;;  %2075 = vmatpush.xpose.msra.mxu3 %v391_v27  ;;  %v1486_v60 = vadd.f32 %v1485_v54, %v5567_v8  ;;  %v374_v27 = vld [vmem:[%s8797_s2 + $0x710] sm:$0xff]  ;;  %v377_v8 = vld [vmem:[%s8797_s2 + $0x728] sm:$0xff] }
 0x139   :  { %8975 = vst [vmem:[#allocation30_spill] sm:$0xff] %v5804_v51  ;;  %1812 = vmatmul.f32.gmra.mxu0 %v5272_v50  ;;  %4065 = vmatmul.msk.f32.gmra.mxu1 %vm925_vm0, %v5281_v56 }
 0x13a   :  { %1953 = vmatpush.xpose.msra.mxu0 %v381_v12  ;;  %1994 = vmatpush.xpose.msra.mxu1 %v382_v3  ;;  %v589_v12 = vld [vmem:[%s8797_s2 + $0xdc8] sm:$0xff]  ;;  %v590_v3 = vld [vmem:[%s8797_s2 + $0xdd0] sm:$0xff] }
 0x13b   :  { %1894 = vmatmul.f32.gmra.mxu2 %v4873_v31  ;;  %1935 = vmatmul.f32.gmra.mxu3 %v4876_v32 }
 0x13c   :  { %2035 = vmatpush.xpose.msra.mxu2 %v383_v7  ;;  %2076 = vmatpush.xpose.msra.mxu3 %v384_v6  ;;  %v483_v7 = vld [vmem:[%s8797_s2 + $0xa78] sm:$0xff]  ;;  %v1527_v6 = vadd.f32 %v1526_v14, %v1486_v60  ;;  %v476_v14 = vld [vmem:[%s8797_s2 + $0xa40] sm:$0xff]  ;;  %v582_v60 = vld [vmem:[%s8797_s2 + $0xd90] sm:$0xff] }
 0x13e   :  { %1954 = vmatpush.xpose.msra.mxu0 %v374_v27  ;;  %1995 = vmatpush.xpose.msra.mxu1 %v375_v53  ;;  %v1567_v54 = vpop.f32.mrf.mxu2  ;;  %v5836_v51 = vpop.f32.mrf.mxu3 }
 0x13f   :  { %v5839_v62 = vadd.f32 %v1567_v54, %v1527_v6  ;;  %v1628_v53 = vpop.f32.mrf.mxu0  ;;  %v1669_v27 = vpop.f32.mrf.mxu1  ;;  %v575_v6 = vld [vmem:[%s8797_s2 + $0xd58] sm:$0xff] }
 0x140   :  { %2036 = vmatpush.xpose.msra.mxu2 %v376_v49  ;;  %2077 = vmatpush.xpose.msra.mxu3 %v377_v8  ;;  %v1629_v13 = vadd.f32 %v1628_v53, %v5592_v63  ;;  %v8977_v49 = vld [vmem:[#allocation3_spill] sm:$0xff]  ;;  %v8978_v8 = vld [vmem:[#allocation4_spill] sm:$0xff]  ;;  %v584_v63 = vld [vmem:[%s8797_s2 + $0xda0] sm:$0xff] }
 0x141   :  { %8976 = vst [vmem:[#allocation11_spill] sm:$0xff] %v5839_v62  ;;  %1955 = vmatmul.f32.vlgmr.msra.gmra.mxu0 %v8977_v49  ;;  %1996 = vmatmul.f32.vlgmr.msra.gmra.mxu1 %v8978_v8  ;;  %v576_v62 = vld [vmem:[%s8797_s2 + $0xd60] sm:$0xff] }
 0x142   :  { %4066 = vmatpush.xpose.msk.msrb.mxu0 %vm925_vm0, %v483_v7  ;;  %2144 = vmatpush.xpose.msrb.mxu1 %v589_v12  ;;  %v583_v7 = vld [vmem:[%s8797_s2 + $0xd98] sm:$0xff]  ;;  %v8979_v12 = vld [vmem:[#allocation19_spill] sm:$0xff] }
 0x143   :  { %2037 = vmatmul.f32.vlgmr.msra.gmra.mxu2 %v8979_v12  ;;  %2078 = vmatmul.f32.vlgmr.msra.gmra.mxu3 %v4942_v55  ;;  %v462_v55 = vld [vmem:[%s8797_s2 + $0x9d0] sm:$0xff]  ;;  %v568_v12 = vld [vmem:[%s8797_s2 + $0xd20] sm:$0xff] }
 0x144   :  { %2185 = vmatpush.xpose.msrb.mxu2 %v590_v3  ;;  %2226 = vmatpush.xpose.msrb.mxu3 %v591_v34  ;;  %v1670_v3 = vadd.f32 %v1669_v27, %v1629_v13  ;;  %v469_v34 = vld [vmem:[%s8797_s2 + $0xa08] sm:$0xff] }
 0x145   :  { %v577_v13 = vld [vmem:[%s8797_s2 + $0xd68] sm:$0xff] }
 0x146   :  { %4067 = vmatpush.xpose.msk.msrb.mxu0 %vm925_vm0, %v476_v14  ;;  %2145 = vmatpush.xpose.msrb.mxu1 %v582_v60  ;;  %v1710_v54 = vpop.f32.mrf.mxu2  ;;  %v1751_v53 = vpop.f32.mrf.mxu3 }
 0x147   :  { %v1711_v27 = vadd.f32 %v1710_v54, %v1670_v3  ;;  %v1631_v14 = vpop.f32.mrf.mxu0  ;;  %v1672_v60 = vpop.f32.mrf.mxu1  ;;  %v569_v3 = vld [vmem:[%s8797_s2 + $0xd28] sm:$0xff] }
 0x148   :  { %2186 = vmatpush.xpose.msrb.mxu2 %v583_v7  ;;  %2227 = vmatpush.xpose.msrb.mxu3 %v584_v63  ;;  %v1632_v63 = vadd.f32 %v1631_v14, %v5626_v37  ;;  %v570_v37 = vld [vmem:[%s8797_s2 + $0xd30] sm:$0xff]  ;;  %v561_v54 = vld [vmem:[%s8797_s2 + $0xce8] sm:$0xff] }
 0x149   :  { %v5872_v7 = vadd.f32 %v1751_v53, %v1711_v27  ;;  %1958 = vmatmul.f32.gmra.mxu0 %v4561_v29  ;;  %1999 = vmatmul.f32.gmra.mxu1 %v4564_v30  ;;  %v562_v27 = vld [vmem:[%s8797_s2 + $0xcf0] sm:$0xff] }
 0x14a   :  { %4068 = vmatpush.xpose.msk.msrb.mxu0 %vm925_vm0, %v469_v34  ;;  %2146 = vmatpush.xpose.msrb.mxu1 %v575_v6  ;;  %v1673_v34 = vadd.f32 %v1672_v60, %v1632_v63  ;;  %v455_v6 = vld [vmem:[%s8797_s2 + $0x998] sm:$0xff] }
 0x14b   :  { %8980 = vst [vmem:[#allocation3_spill] sm:$0xff] %v5872_v7  ;;  %2081 = vmatmul.f32.gmra.mxu3 %v4990_v28 }
 0x14c   :  { %2187 = vmatpush.xpose.msrb.mxu2 %v576_v62  ;;  %2228 = vmatpush.xpose.msrb.mxu3 %v577_v13  ;;  %v8981_v62 = vld [vmem:[#allocation22_spill] sm:$0xff] }
 0x14d   :  { %2040 = vmatmul.f32.gmra.mxu2 %v8981_v62 }
 0x14e   :  { %4069 = vmatpush.xpose.msk.msrb.mxu0 %vm925_vm0, %v462_v55  ;;  %2147 = vmatpush.xpose.msrb.mxu1 %v568_v12  ;;  %v1713_v53 = vpop.f32.mrf.mxu2  ;;  %v1754_v13 = vpop.f32.mrf.mxu3 }
 0x14f   :  { %v1714_v14 = vadd.f32 %v1713_v53, %v1673_v34  ;;  %v1634_v55 = vpop.f32.mrf.mxu0  ;;  %v1675_v12 = vpop.f32.mrf.mxu1  ;;  %v555_v34 = vld [vmem:[%s8797_s2 + $0xcb8] sm:$0xff] }
 0x150   :  { %2188 = vmatpush.xpose.msrb.mxu2 %v569_v3  ;;  %2229 = vmatpush.xpose.msrb.mxu3 %v570_v37  ;;  %v1635_v60 = vadd.f32 %v1634_v55, %v5660_v35  ;;  %v563_v3 = vld [vmem:[%s8797_s2 + $0xcf8] sm:$0xff]  ;;  %v448_v37 = vld [vmem:[%s8797_s2 + $0x960] sm:$0xff]  ;;  %v554_v35 = vld [vmem:[%s8797_s2 + $0xcb0] sm:$0xff] }
 0x151   :  { %v5903_v63 = vadd.f32 %v1754_v13, %v1714_v14  ;;  %1961 = vmatmul.f32.gmra.mxu0 %v4615_v45  ;;  %2002 = vmatmul.f32.gmra.mxu1 %v4618_v46  ;;  %v441_v14 = vld [vmem:[%s8797_s2 + $0x928] sm:$0xff] }
 0x152   :  { %4070 = vmatpush.xpose.msk.msrb.mxu0 %vm925_vm0, %v455_v6  ;;  %2148 = vmatpush.xpose.msrb.mxu1 %v561_v54  ;;  %v1676_v6 = vadd.f32 %v1675_v12, %v1635_v60  ;;  %v8982_v54 = vld [vmem:[#allocation23_spill] sm:$0xff] }
 0x153   :  { %2084 = vmatmul.f32.gmra.mxu3 %v5037_v57 }
 0x154   :  { %2189 = vmatpush.xpose.msrb.mxu2 %v562_v27  ;;  %2230 = vmatpush.xpose.msrb.mxu3 %v563_v3  ;;  %v556_v27 = vld [vmem:[%s8797_s2 + $0xcc0] sm:$0xff]  ;;  %v547_v3 = vld [vmem:[%s8797_s2 + $0xc78] sm:$0xff] }
 0x155   :  { %2043 = vmatmul.f32.gmra.mxu2 %v8982_v54 }
 0x156   :  { %4071 = vmatpush.xpose.msk.msrb.mxu0 %vm925_vm0, %v448_v37  ;;  %v1716_v53 = vpop.f32.mrf.mxu2  ;;  %v1757_v13 = vpop.f32.mrf.mxu3  ;;  %2149 = vmatpush.xpose.msrb.mxu1 %v554_v35  ;;  %v548_v37 = vld [vmem:[%s8797_s2 + $0xc80] sm:$0xff] }
 0x157   :  { %v1717_v55 = vadd.f32 %v1716_v53, %v1676_v6  ;;  %v1637_v12 = vpop.f32.mrf.mxu0  ;;  %v1678_v60 = vpop.f32.mrf.mxu1  ;;  %v549_v6 = vld [vmem:[%s8797_s2 + $0xc88] sm:$0xff]  ;;  %v434_v53 = vld [vmem:[%s8797_s2 + $0x8f0] sm:$0xff] }
 0x158   :  { %2190 = vmatpush.xpose.msrb.mxu2 %v555_v34  ;;  %v1638_v34 = vadd.f32 %v1637_v12, %v5694_v40  ;;  %2231 = vmatpush.xpose.msrb.mxu3 %v556_v27  ;;  %v540_v40 = vld [vmem:[%s8797_s2 + $0xc40] sm:$0xff]  ;;  %v541_v27 = vld [vmem:[%s8797_s2 + $0xc48] sm:$0xff] }
 0x159   :  { %v5934_v35 = vadd.f32 %v1757_v13, %v1717_v55  ;;  %1964 = vmatmul.f32.gmra.mxu0 %v4669_v0  ;;  %2005 = vmatmul.f32.gmra.mxu1 %v4672_v1  ;;  %v8984_v13 = vld [vmem:[#allocation24_spill] sm:$0xff] }
 0x15a   :  { %4072 = vmatpush.xpose.msk.msrb.mxu0 %vm925_vm0, %v441_v14  ;;  %2150 = vmatpush.xpose.msrb.mxu1 %v547_v3  ;;  %v1679_v14 = vadd.f32 %v1678_v60, %v1638_v34  ;;  %v542_v3 = vld [vmem:[%s8797_s2 + $0xc50] sm:$0xff]  ;;  %v533_v60 = vld [vmem:[%s8797_s2 + $0xc08] sm:$0xff] }
 0x15b   :  { %8983 = vst [vmem:[#allocation4_spill] sm:$0xff] %v5934_v35  ;;  %2087 = vmatmul.f32.gmra.mxu3 %v5084_v2  ;;  %v534_v34 = vld [vmem:[%s8797_s2 + $0xc10] sm:$0xff] }
 0x15c   :  { %2191 = vmatpush.xpose.msrb.mxu2 %v548_v37  ;;  %2232 = vmatpush.xpose.msrb.mxu3 %v549_v6  ;;  %v427_v37 = vld [vmem:[%s8797_s2 + $0x8b8] sm:$0xff] }
 0x15d   :  { %2046 = vmatmul.f32.gmra.mxu2 %v8984_v13 }
 0x15e   :  { %4073 = vmatpush.xpose.msk.msrb.mxu0 %vm925_vm0, %v434_v53  ;;  %v1719_v55 = vpop.f32.mrf.mxu2  ;;  %v1760_v12 = vpop.f32.mrf.mxu3  ;;  %2151 = vmatpush.xpose.msrb.mxu1 %v540_v40  ;;  %v535_v40 = vld [vmem:[%s8797_s2 + $0xc18] sm:$0xff] }
 0x15f   :  { %v1720_v35 = vadd.f32 %v1719_v55, %v1679_v14  ;;  %v1640_v7 = vpop.f32.mrf.mxu0  ;;  %v1681_v2 = vpop.f32.mrf.mxu1 }
 0x160   :  { %2192 = vmatpush.xpose.msrb.mxu2 %v541_v27  ;;  %v1641_v53 = vadd.f32 %v1640_v7, %v5728_v36  ;;  %2233 = vmatpush.xpose.msrb.mxu3 %v542_v3  ;;  %v420_v27 = vld [vmem:[%s8797_s2 + $0x880] sm:$0xff]  ;;  %v526_v36 = vld [vmem:[%s8797_s2 + $0xbd0] sm:$0xff] }
 0x161   :  { %v5967_v6 = vadd.f32 %v1760_v12, %v1720_v35  ;;  %1967 = vmatmul.f32.gmra.mxu0 %v4723_v22  ;;  %2008 = vmatmul.f32.gmra.mxu1 %v4726_v23  ;;  %v8986_v7 = vld [vmem:[#allocation26_spill] sm:$0xff]  ;;  %v527_v35 = vld [vmem:[%s8797_s2 + $0xbd8] sm:$0xff] }
 0x162   :  { %4074 = vmatpush.xpose.msk.msrb.mxu0 %vm925_vm0, %v427_v37  ;;  %2152 = vmatpush.xpose.msrb.mxu1 %v533_v60  ;;  %v1682_v14 = vadd.f32 %v1681_v2, %v1641_v53  ;;  %v528_v3 = vld [vmem:[%s8797_s2 + $0xbe0] sm:$0xff]  ;;  %v413_v37 = vld [vmem:[%s8797_s2 + $0x848] sm:$0xff]  ;;  %v519_v2 = vld [vmem:[%s8797_s2 + $0xb98] sm:$0xff] }
 0x163   :  { %8985 = vst [vmem:[#allocation22_spill] sm:$0xff] %v5967_v6  ;;  %2090 = vmatmul.f32.gmra.mxu3 %v5131_v20  ;;  %v520_v53 = vld [vmem:[%s8797_s2 + $0xba0] sm:$0xff] }
 0x164   :  { %2193 = vmatpush.xpose.msrb.mxu2 %v534_v34  ;;  %2234 = vmatpush.xpose.msrb.mxu3 %v535_v40 }
 0x165   :  { %2049 = vmatmul.f32.gmra.mxu2 %v8986_v7 }
 0x166   :  { %4075 = vmatpush.xpose.msk.msrb.mxu0 %vm925_vm0, %v420_v27  ;;  %v1722_v55 = vpop.f32.mrf.mxu2  ;;  %v1763_v12 = vpop.f32.mrf.mxu3  ;;  %2153 = vmatpush.xpose.msrb.mxu1 %v526_v36  ;;  %v521_v36 = vld [vmem:[%s8797_s2 + $0xba8] sm:$0xff] }
 0x167   :  { %v1723_v60 = vadd.f32 %v1722_v55, %v1682_v14  ;;  %v1643_v34 = vpop.f32.mrf.mxu0  ;;  %v1684_v6 = vpop.f32.mrf.mxu1  ;;  %v8988_v14 = vld [vmem:[#allocation27_spill] sm:$0xff] }
 0x168   :  { %2194 = vmatpush.xpose.msrb.mxu2 %v527_v35  ;;  %v1644_v27 = vadd.f32 %v1643_v34, %v5762_v17  ;;  %2235 = vmatpush.xpose.msrb.mxu3 %v528_v3  ;;  %v406_v35 = vld [vmem:[%s8797_s2 + $0x810] sm:$0xff]  ;;  %v512_v17 = vld [vmem:[%s8797_s2 + $0xb60] sm:$0xff]  ;;  %v513_v55 = vld [vmem:[%s8797_s2 + $0xb68] sm:$0xff] }
 0x169   :  { %v6000_v40 = vadd.f32 %v1763_v12, %v1723_v60  ;;  %1970 = vmatmul.f32.gmra.mxu0 %v4777_v44  ;;  %2011 = vmatmul.f32.gmra.mxu1 %v4780_v47  ;;  %v514_v60 = vld [vmem:[%s8797_s2 + $0xb70] sm:$0xff]  ;;  %v399_v34 = vld [vmem:[%s8797_s2 + $0x7d8] sm:$0xff] }
 0x16a   :  { %4076 = vmatpush.xpose.msk.msrb.mxu0 %vm925_vm0, %v413_v37  ;;  %2154 = vmatpush.xpose.msrb.mxu1 %v519_v2  ;;  %v1685_v12 = vadd.f32 %v1684_v6, %v1644_v27  ;;  %v505_v6 = vld [vmem:[%s8797_s2 + $0xb28] sm:$0xff]  ;;  %v506_v27 = vld [vmem:[%s8797_s2 + $0xb30] sm:$0xff] }
 0x16b   :  { %8987 = vst [vmem:[#allocation23_spill] sm:$0xff] %v6000_v40  ;;  %2093 = vmatmul.f32.gmra.mxu3 %v5178_v15 }
 0x16c   :  { %2195 = vmatpush.xpose.msrb.mxu2 %v520_v53  ;;  %2236 = vmatpush.xpose.msrb.mxu3 %v521_v36 }
 0x16d   :  { %2052 = vmatmul.f32.gmra.mxu2 %v8988_v14 }
 0x16e   :  { %4077 = vmatpush.xpose.msk.msrb.mxu0 %vm925_vm0, %v406_v35  ;;  %v1725_v3 = vpop.f32.mrf.mxu2  ;;  %v1766_v37 = vpop.f32.mrf.mxu3  ;;  %2155 = vmatpush.xpose.msrb.mxu1 %v512_v17  ;;  %v8990_v17 = vld [vmem:[#allocation13_spill] sm:$0xff] }
 0x16f   :  { %v1726_v2 = vadd.f32 %v1725_v3, %v1685_v12  ;;  %v1646_v53 = vpop.f32.mrf.mxu0  ;;  %v1687_v40 = vpop.f32.mrf.mxu1  ;;  %v392_v12 = vld [vmem:[%s8797_s2 + $0x7a0] sm:$0xff] }
 0x170   :  { %2196 = vmatpush.xpose.msrb.mxu2 %v513_v55  ;;  %v1647_v35 = vadd.f32 %v1646_v53, %v5796_v43  ;;  %2237 = vmatpush.xpose.msrb.mxu3 %v514_v60  ;;  %v507_v55 = vld [vmem:[%s8797_s2 + $0xb38] sm:$0xff]  ;;  %v8991_v3 = vld [vmem:[#allocation14_spill] sm:$0xff]  ;;  %v498_v43 = vld [vmem:[%s8797_s2 + $0xaf0] sm:$0xff] }
 0x171   :  { %v6033_v36 = vadd.f32 %v1766_v37, %v1726_v2  ;;  %1973 = vmatmul.f32.gmra.mxu0 %v8990_v17  ;;  %2014 = vmatmul.f32.gmra.mxu1 %v8991_v3  ;;  %v8992_v37 = vld [vmem:[#allocation28_spill] sm:$0xff]  ;;  %v499_v60 = vld [vmem:[%s8797_s2 + $0xaf8] sm:$0xff] }
 0x172   :  { %4078 = vmatpush.xpose.msk.msrb.mxu0 %vm925_vm0, %v399_v34  ;;  %2156 = vmatpush.xpose.msrb.mxu1 %v505_v6  ;;  %v1688_v34 = vadd.f32 %v1687_v40, %v1647_v35  ;;  %v500_v6 = vld [vmem:[%s8797_s2 + $0xb00] sm:$0xff]  ;;  %v491_v40 = vld [vmem:[%s8797_s2 + $0xab8] sm:$0xff] }
 0x173   :  { %8989 = vst [vmem:[#allocation39_spill] sm:$0xff] %v6033_v36  ;;  %2096 = vmatmul.f32.gmra.mxu3 %v5225_v21  ;;  %v492_v35 = vld [vmem:[%s8797_s2 + $0xac0] sm:$0xff] }
 0x174   :  { %2197 = vmatpush.xpose.msrb.mxu2 %v506_v27  ;;  %2238 = vmatpush.xpose.msrb.mxu3 %v507_v55  ;;  %v385_v27 = vld [vmem:[%s8797_s2 + $0x768] sm:$0xff] }
 0x175   :  { %2055 = vmatmul.f32.gmra.mxu2 %v8992_v37 }
 0x176   :  { %4079 = vmatpush.xpose.msk.msrb.mxu0 %vm925_vm0, %v392_v12  ;;  %v1728_v2 = vpop.f32.mrf.mxu2  ;;  %v1769_v53 = vpop.f32.mrf.mxu3  ;;  %2157 = vmatpush.xpose.msrb.mxu1 %v498_v43  ;;  %v8994_v43 = vld [vmem:[#allocation17_spill] sm:$0xff] }
 0x177   :  { %v1729_v36 = vadd.f32 %v1728_v2, %v1688_v34  ;;  %v1649_v21 = vpop.f32.mrf.mxu0  ;;  %v1690_v37 = vpop.f32.mrf.mxu1  ;;  %v378_v34 = vld [vmem:[%s8797_s2 + $0x730] sm:$0xff]  ;;  %v8995_v2 = vld [vmem:[#allocation18_spill] sm:$0xff] }
 0x178   :  { %2198 = vmatpush.xpose.msrb.mxu2 %v499_v60  ;;  %v1650_v12 = vadd.f32 %v1649_v21, %v5836_v51  ;;  %2239 = vmatpush.xpose.msrb.mxu3 %v500_v6  ;;  %v493_v60 = vld [vmem:[%s8797_s2 + $0xac8] sm:$0xff]  ;;  %v484_v21 = vld [vmem:[%s8797_s2 + $0xa80] sm:$0xff] }
 0x179   :  { %v6066_v55 = vadd.f32 %v1769_v53, %v1729_v36  ;;  %1976 = vmatmul.f32.gmra.mxu0 %v8994_v43  ;;  %2017 = vmatmul.f32.gmra.mxu1 %v8995_v2  ;;  %v592_v51 = vld [vmem:[%s8797_s2 + $0xde0] sm:$0xff]  ;;  %v8996_v36 = vld [vmem:[#allocation31_spill] sm:$0xff] }
 0x17a   :  { %4080 = vmatpush.xpose.msk.msrb.mxu0 %vm925_vm0, %v385_v27  ;;  %2158 = vmatpush.xpose.msrb.mxu1 %v491_v40  ;;  %v485_v53 = vld [vmem:[%s8797_s2 + $0xa88] sm:$0xff]  ;;  %v1691_v27 = vadd.f32 %v1690_v37, %v1650_v12  ;;  %v594_v40 = vld [vmem:[%s8797_s2 + $0xdf0] sm:$0xff]  ;;  %v595_v37 = vld [vmem:[%s8797_s2 + $0xdf8] sm:$0xff] }
 0x17b   :  { %8993 = vst [vmem:[#allocation40_spill] sm:$0xff] %v6066_v55  ;;  %2099 = vmatmul.f32.gmra.mxu3 %v5272_v50  ;;  %v593_v6 = vld [vmem:[%s8797_s2 + $0xde8] sm:$0xff]  ;;  %v486_v50 = vld [vmem:[%s8797_s2 + $0xa90] sm:$0xff] }
 0x17c   :  { %2199 = vmatpush.xpose.msrb.mxu2 %v492_v35  ;;  %2240 = vmatpush.xpose.msrb.mxu3 %v493_v60  ;;  %v585_v12 = vld [vmem:[%s8797_s2 + $0xda8] sm:$0xff] }
 0x17d   :  { %2058 = vmatmul.f32.gmra.mxu2 %v8996_v36 }
 0x17e   :  { %4081 = vmatpush.xpose.msk.msrb.mxu0 %vm925_vm0, %v378_v34  ;;  %v1731_v35 = vpop.f32.mrf.mxu2  ;;  %v1772_v55 = vpop.f32.mrf.mxu3  ;;  %2159 = vmatpush.xpose.msrb.mxu1 %v484_v21  ;;  %v586_v34 = vld [vmem:[%s8797_s2 + $0xdb0] sm:$0xff]  ;;  %v587_v21 = vld [vmem:[%s8797_s2 + $0xdb8] sm:$0xff] }
 0x17f   :  { %v1732_v36 = vadd.f32 %v1731_v35, %v1691_v27  ;;  %v6099_v2 = vpop.f32.mrf.mxu0  ;;  %v6101_v3 = vpop.f32.mrf.mxu1  ;;  %v581_v35 = vld [vmem:[%s8797_s2 + $0xd88] sm:$0xff] }
 0x180   :  { %8997 = vst [vmem:[#allocation41_spill] sm:$0xff] %v6099_v2  ;;  %2200 = vmatpush.xpose.msrb.mxu2 %v485_v53  ;;  %2241 = vmatpush.xpose.msrb.mxu3 %v486_v50  ;;  %v588_v50 = vld [vmem:[%s8797_s2 + $0xdc0] sm:$0xff]  ;;  %v579_v53 = vld [vmem:[%s8797_s2 + $0xd78] sm:$0xff] }
 0x181   :  { %8998 = vst [vmem:[#allocation42_spill] sm:$0xff] %v6101_v3  ;;  %v6109_v60 = vadd.f32 %v1772_v55, %v1732_v36  ;;  %4082 = vmatmul.msk.f32.vlgmr.msrb.gmra.mxu0 %vm925_vm0, %v4951_v5  ;;  %2160 = vmatmul.f32.vlgmr.msrb.gmra.mxu1 %v4496_v9  ;;  %v578_v55 = vld [vmem:[%s8797_s2 + $0xd70] sm:$0xff] }
 0x182   :  { %2267 = vmatpush.xpose.msra.mxu0 %v592_v51  ;;  %2308 = vmatpush.xpose.msra.mxu1 %v593_v6  ;;  %v580_v6 = vld [vmem:[%s8797_s2 + $0xd80] sm:$0xff] }
 0x183   :  { %8999 = vst [vmem:[#allocation43_spill] sm:$0xff] %v6109_v60  ;;  %2242 = vmatmul.f32.vlgmr.msrb.gmra.mxu3 %v8977_v49 }
 0x184   :  { %2349 = vmatpush.xpose.msra.mxu2 %v594_v40  ;;  %4090 = vmatpush.xpose.msk.msra.mxu3 %vm925_vm0, %v595_v37  ;;  %v571_v37 = vld [vmem:[%s8797_s2 + $0xd38] sm:$0xff] }
 0x185   :  { %2201 = vmatmul.f32.vlgmr.msrb.gmra.mxu2 %v4499_v10 }
 0x186   :  { %2268 = vmatpush.xpose.msra.mxu0 %v585_v12  ;;  %2309 = vmatpush.xpose.msra.mxu1 %v586_v34  ;;  %v1874_v51 = vpop.f32.mrf.mxu2  ;;  %v1915_v36 = vpop.f32.mrf.mxu3 }
 0x187   :  { %v1795_v27 = vpop.f32.mrf.mxu0  ;;  %v1836_v40 = vpop.f32.mrf.mxu1  ;;  %v6142_v12 = vadd.f32 %v1915_v36, %v1874_v51  ;;  %v564_v51 = vld [vmem:[%s8797_s2 + $0xd00] sm:$0xff] }
 0x188   :  { %2350 = vmatpush.xpose.msra.mxu2 %v587_v21  ;;  %4091 = vmatpush.xpose.msk.msra.mxu3 %vm925_vm0, %v588_v50  ;;  %v1796_v34 = vadd.f32 %v1795_v27, %v5903_v63  ;;  %v572_v21 = vld [vmem:[%s8797_s2 + $0xd40] sm:$0xff]  ;;  %v573_v50 = vld [vmem:[%s8797_s2 + $0xd48] sm:$0xff]  ;;  %v574_v63 = vld [vmem:[%s8797_s2 + $0xd50] sm:$0xff] }
 0x189   :  { %4083 = vmatmul.msk.f32.gmra.mxu0 %vm925_vm0, %v4999_v61  ;;  %2163 = vmatmul.f32.gmra.mxu1 %v4549_v25  ;;  %v566_v27 = vld [vmem:[%s8797_s2 + $0xd10] sm:$0xff] }
 0x18a   :  { %2269 = vmatpush.xpose.msra.mxu0 %v578_v55  ;;  %2310 = vmatpush.xpose.msra.mxu1 %v579_v53  ;;  %v6154_v55 = vadd.f32 %v1836_v40, %v1796_v34  ;;  %v567_v34 = vld [vmem:[%s8797_s2 + $0xd18] sm:$0xff] }
 0x18b   :  { %2245 = vmatmul.f32.gmra.mxu3 %v4561_v29 }
 0x18c   :  { %2351 = vmatpush.xpose.msra.mxu2 %v580_v6  ;;  %4092 = vmatpush.xpose.msk.msra.mxu3 %vm925_vm0, %v581_v35  ;;  %9000 = vst [vmem:[#allocation44_spill] sm:$0xff] %v6154_v55  ;;  %v565_v6 = vld [vmem:[%s8797_s2 + $0xd08] sm:$0xff] }
 0x18d   :  { %2204 = vmatmul.f32.gmra.mxu2 %v4552_v26 }
 0x18e   :  { %2270 = vmatpush.xpose.msra.mxu0 %v571_v37  ;;  %2311 = vmatpush.xpose.msra.mxu1 %v572_v21  ;;  %v1877_v36 = vpop.f32.mrf.mxu2  ;;  %v1918_v53 = vpop.f32.mrf.mxu3  ;;  %v557_v21 = vld [vmem:[%s8797_s2 + $0xcc8] sm:$0xff] }
 0x18f   :  { %v6172_v40 = vadd.f32 %v1918_v53, %v1877_v36  ;;  %v6174_v35 = vpop.f32.mrf.mxu0  ;;  %v6176_v37 = vpop.f32.mrf.mxu1  ;;  %v550_v36 = vld [vmem:[%s8797_s2 + $0xc90] sm:$0xff] }
 0x190   :  { %2352 = vmatpush.xpose.msra.mxu2 %v573_v50  ;;  %4093 = vmatpush.xpose.msk.msra.mxu3 %vm925_vm0, %v574_v63  ;;  %9001 = vst [vmem:[#allocation45_spill] sm:$0xff] %v6174_v35  ;;  %v558_v50 = vld [vmem:[%s8797_s2 + $0xcd0] sm:$0xff]  ;;  %v559_v63 = vld [vmem:[%s8797_s2 + $0xcd8] sm:$0xff] }
 0x191   :  { %9002 = vst [vmem:[#allocation46_spill] sm:$0xff] %v6176_v37  ;;  %4084 = vmatmul.msk.f32.gmra.mxu0 %vm925_vm0, %v5046_v11  ;;  %2166 = vmatmul.f32.gmra.mxu1 %v4603_v41 }
 0x192   :  { %2271 = vmatpush.xpose.msra.mxu0 %v564_v51  ;;  %2312 = vmatpush.xpose.msra.mxu1 %v565_v6  ;;  %v560_v51 = vld [vmem:[%s8797_s2 + $0xce0] sm:$0xff] }
 0x193   :  { %2248 = vmatmul.f32.gmra.mxu3 %v4615_v45 }
 0x194   :  { %2353 = vmatpush.xpose.msra.mxu2 %v566_v27  ;;  %4094 = vmatpush.xpose.msk.msra.mxu3 %vm925_vm0, %v567_v34  ;;  %v551_v27 = vld [vmem:[%s8797_s2 + $0xc98] sm:$0xff]  ;;  %v552_v34 = vld [vmem:[%s8797_s2 + $0xca0] sm:$0xff] }
 0x195   :  { %2207 = vmatmul.f32.gmra.mxu2 %v4606_v42 }
 0x196   :  { %2272 = vmatpush.xpose.msra.mxu0 %v557_v21  ;;  %2313 = vmatpush.xpose.msra.mxu1 %v558_v50  ;;  %v1880_v53 = vpop.f32.mrf.mxu2  ;;  %v1921_v6 = vpop.f32.mrf.mxu3  ;;  %v553_v50 = vld [vmem:[%s8797_s2 + $0xca8] sm:$0xff] }
 0x197   :  { %v6209_v21 = vadd.f32 %v1921_v6, %v1880_v53  ;;  %v6211_v60 = vpop.f32.mrf.mxu0  ;;  %v6213_v55 = vpop.f32.mrf.mxu1  ;;  %v546_v53 = vld [vmem:[%s8797_s2 + $0xc70] sm:$0xff]  ;;  %v536_v6 = vld [vmem:[%s8797_s2 + $0xc20] sm:$0xff] }
 0x198   :  { %2354 = vmatpush.xpose.msra.mxu2 %v559_v63  ;;  %4095 = vmatpush.xpose.msk.msra.mxu3 %vm925_vm0, %v560_v51  ;;  %9003 = vst [vmem:[#allocation47_spill] sm:$0xff] %v6211_v60  ;;  %v543_v63 = vld [vmem:[%s8797_s2 + $0xc58] sm:$0xff]  ;;  %v544_v51 = vld [vmem:[%s8797_s2 + $0xc60] sm:$0xff] }
 0x199   :  { %9004 = vst [vmem:[#allocation48_spill] sm:$0xff] %v6213_v55  ;;  %4085 = vmatmul.msk.f32.gmra.mxu0 %vm925_vm0, %v5093_v48  ;;  %2169 = vmatmul.f32.gmra.mxu1 %v4657_v58 }
 0x19a   :  { %2273 = vmatpush.xpose.msra.mxu0 %v550_v36  ;;  %2314 = vmatpush.xpose.msra.mxu1 %v551_v27  ;;  %v545_v36 = vld [vmem:[%s8797_s2 + $0xc68] sm:$0xff] }
 0x19b   :  { %2251 = vmatmul.f32.gmra.mxu3 %v4669_v0 }
 0x19c   :  { %2355 = vmatpush.xpose.msra.mxu2 %v552_v34  ;;  %4096 = vmatpush.xpose.msk.msra.mxu3 %vm925_vm0, %v553_v50  ;;  %v537_v50 = vld [vmem:[%s8797_s2 + $0xc28] sm:$0xff] }
 0x19d   :  { %2210 = vmatmul.f32.gmra.mxu2 %v4660_v59 }
 0x19e   :  { %2274 = vmatpush.xpose.msra.mxu0 %v543_v63  ;;  %2315 = vmatpush.xpose.msra.mxu1 %v544_v51  ;;  %v1883_v27 = vpop.f32.mrf.mxu2  ;;  %v1924_v34 = vpop.f32.mrf.mxu3  ;;  %v538_v63 = vld [vmem:[%s8797_s2 + $0xc30] sm:$0xff]  ;;  %v539_v51 = vld [vmem:[%s8797_s2 + $0xc38] sm:$0xff] }
 0x19f   :  { %v6246_v55 = vadd.f32 %v1924_v34, %v1883_v27  ;;  %v6248_v37 = vpop.f32.mrf.mxu0  ;;  %v6250_v3 = vpop.f32.mrf.mxu1  ;;  %v532_v27 = vld [vmem:[%s8797_s2 + $0xc00] sm:$0xff]  ;;  %v522_v34 = vld [vmem:[%s8797_s2 + $0xbb0] sm:$0xff] }
 0x1a0   :  { %2356 = vmatpush.xpose.msra.mxu2 %v545_v36  ;;  %4097 = vmatpush.xpose.msk.msra.mxu3 %vm925_vm0, %v546_v53  ;;  %9005 = vst [vmem:[#allocation49_spill] sm:$0xff] %v6248_v37  ;;  %v529_v36 = vld [vmem:[%s8797_s2 + $0xbe8] sm:$0xff]  ;;  %v530_v53 = vld [vmem:[%s8797_s2 + $0xbf0] sm:$0xff] }
 0x1a1   :  { %9006 = vst [vmem:[#allocation50_spill] sm:$0xff] %v6250_v3  ;;  %4086 = vmatmul.msk.f32.gmra.mxu0 %vm925_vm0, %v5140_v33  ;;  %2172 = vmatmul.f32.gmra.mxu1 %v4711_v18 }
 0x1a2   :  { %2275 = vmatpush.xpose.msra.mxu0 %v536_v6  ;;  %2316 = vmatpush.xpose.msra.mxu1 %v537_v50  ;;  %v531_v6 = vld [vmem:[%s8797_s2 + $0xbf8] sm:$0xff] }
 0x1a3   :  { %2254 = vmatmul.f32.gmra.mxu3 %v4723_v22 }
 0x1a4   :  { %2357 = vmatpush.xpose.msra.mxu2 %v538_v63  ;;  %4098 = vmatpush.xpose.msk.msra.mxu3 %vm925_vm0, %v539_v51  ;;  %v523_v51 = vld [vmem:[%s8797_s2 + $0xbb8] sm:$0xff] }
 0x1a5   :  { %2213 = vmatmul.f32.gmra.mxu2 %v4714_v19 }
 0x1a6   :  { %2276 = vmatpush.xpose.msra.mxu0 %v529_v36  ;;  %2317 = vmatpush.xpose.msra.mxu1 %v530_v53  ;;  %v1886_v50 = vpop.f32.mrf.mxu2  ;;  %v1927_v63 = vpop.f32.mrf.mxu3  ;;  %v524_v36 = vld [vmem:[%s8797_s2 + $0xbc0] sm:$0xff]  ;;  %v525_v53 = vld [vmem:[%s8797_s2 + $0xbc8] sm:$0xff] }
 0x1a7   :  { %v6283_v3 = vadd.f32 %v1927_v63, %v1886_v50  ;;  %v6285_v37 = vpop.f32.mrf.mxu0  ;;  %v6287_v60 = vpop.f32.mrf.mxu1  ;;  %v518_v50 = vld [vmem:[%s8797_s2 + $0xb90] sm:$0xff]  ;;  %v508_v63 = vld [vmem:[%s8797_s2 + $0xb40] sm:$0xff] }
 0x1a8   :  { %2358 = vmatpush.xpose.msra.mxu2 %v531_v6  ;;  %4099 = vmatpush.xpose.msk.msra.mxu3 %vm925_vm0, %v532_v27  ;;  %9007 = vst [vmem:[#allocation51_spill] sm:$0xff] %v6285_v37  ;;  %v515_v6 = vld [vmem:[%s8797_s2 + $0xb78] sm:$0xff]  ;;  %v516_v27 = vld [vmem:[%s8797_s2 + $0xb80] sm:$0xff] }
 0x1a9   :  { %9008 = vst [vmem:[#allocation52_spill] sm:$0xff] %v6287_v60  ;;  %4087 = vmatmul.msk.f32.gmra.mxu0 %vm925_vm0, %v5187_v24  ;;  %2175 = vmatmul.f32.gmra.mxu1 %v4765_v38 }
 0x1aa   :  { %2277 = vmatpush.xpose.msra.mxu0 %v522_v34  ;;  %2318 = vmatpush.xpose.msra.mxu1 %v523_v51  ;;  %v517_v34 = vld [vmem:[%s8797_s2 + $0xb88] sm:$0xff] }
 0x1ab   :  { %2257 = vmatmul.f32.gmra.mxu3 %v4777_v44 }
 0x1ac   :  { %2359 = vmatpush.xpose.msra.mxu2 %v524_v36  ;;  %4100 = vmatpush.xpose.msk.msra.mxu3 %vm925_vm0, %v525_v53  ;;  %v509_v53 = vld [vmem:[%s8797_s2 + $0xb48] sm:$0xff] }
 0x1ad   :  { %2216 = vmatmul.f32.gmra.mxu2 %v4768_v39 }
 0x1ae   :  { %2278 = vmatpush.xpose.msra.mxu0 %v515_v6  ;;  %2319 = vmatpush.xpose.msra.mxu1 %v516_v27  ;;  %v1889_v51 = vpop.f32.mrf.mxu2  ;;  %v1930_v36 = vpop.f32.mrf.mxu3  ;;  %v510_v6 = vld [vmem:[%s8797_s2 + $0xb50] sm:$0xff]  ;;  %v511_v27 = vld [vmem:[%s8797_s2 + $0xb58] sm:$0xff] }
 0x1af   :  { %v6320_v60 = vadd.f32 %v1930_v36, %v1889_v51  ;;  %v6322_v37 = vpop.f32.mrf.mxu0  ;;  %v6324_v35 = vpop.f32.mrf.mxu1  ;;  %v504_v51 = vld [vmem:[%s8797_s2 + $0xb20] sm:$0xff]  ;;  %v494_v36 = vld [vmem:[%s8797_s2 + $0xad0] sm:$0xff] }
 0x1b0   :  { %2360 = vmatpush.xpose.msra.mxu2 %v517_v34  ;;  %4101 = vmatpush.xpose.msk.msra.mxu3 %vm925_vm0, %v518_v50  ;;  %9009 = vst [vmem:[#allocation53_spill] sm:$0xff] %v6322_v37  ;;  %v501_v34 = vld [vmem:[%s8797_s2 + $0xb08] sm:$0xff]  ;;  %v502_v50 = vld [vmem:[%s8797_s2 + $0xb10] sm:$0xff] }
 0x1b1   :  { %9010 = vst [vmem:[#allocation54_spill] sm:$0xff] %v6324_v35  ;;  %4088 = vmatmul.msk.f32.gmra.mxu0 %vm925_vm0, %v8973_v16  ;;  %2178 = vmatmul.f32.gmra.mxu1 %v8974_v52 }
 0x1b2   :  { %2279 = vmatpush.xpose.msra.mxu0 %v508_v63  ;;  %2320 = vmatpush.xpose.msra.mxu1 %v509_v53  ;;  %v503_v63 = vld [vmem:[%s8797_s2 + $0xb18] sm:$0xff] }
 0x1b3   :  { %2260 = vmatmul.f32.gmra.mxu3 %v8990_v17 }
 0x1b4   :  { %2361 = vmatpush.xpose.msra.mxu2 %v510_v6  ;;  %4102 = vmatpush.xpose.msk.msra.mxu3 %vm925_vm0, %v511_v27  ;;  %v495_v27 = vld [vmem:[%s8797_s2 + $0xad8] sm:$0xff] }
 0x1b5   :  { %2219 = vmatmul.f32.gmra.mxu2 %v4822_v4 }
 0x1b6   :  { %2280 = vmatpush.xpose.msra.mxu0 %v501_v34  ;;  %2321 = vmatpush.xpose.msra.mxu1 %v502_v50  ;;  %v1892_v53 = vpop.f32.mrf.mxu2  ;;  %v1933_v6 = vpop.f32.mrf.mxu3  ;;  %v496_v34 = vld [vmem:[%s8797_s2 + $0xae0] sm:$0xff]  ;;  %v497_v50 = vld [vmem:[%s8797_s2 + $0xae8] sm:$0xff] }
 0x1b7   :  { %v6357_v35 = vadd.f32 %v1933_v6, %v1892_v53  ;;  %v6359_v37 = vpop.f32.mrf.mxu0  ;;  %v6361_v2 = vpop.f32.mrf.mxu1  ;;  %v490_v53 = vld [vmem:[%s8797_s2 + $0xab0] sm:$0xff]  ;;  %v701_v6 = vld [vmem:[%s8797_s2 + $0x1148] sm:$0xff] }
 0x1b8   :  { %2362 = vmatpush.xpose.msra.mxu2 %v503_v63  ;;  %4103 = vmatpush.xpose.msk.msra.mxu3 %vm925_vm0, %v504_v51  ;;  %9011 = vst [vmem:[#allocation55_spill] sm:$0xff] %v6359_v37  ;;  %v487_v63 = vld [vmem:[%s8797_s2 + $0xa98] sm:$0xff]  ;;  %v488_v51 = vld [vmem:[%s8797_s2 + $0xaa0] sm:$0xff] }
 0x1b9   :  { %9012 = vst [vmem:[#allocation56_spill] sm:$0xff] %v6361_v2  ;;  %4089 = vmatmul.msk.f32.gmra.mxu0 %vm925_vm0, %v5281_v56  ;;  %2181 = vmatmul.f32.gmra.mxu1 %v4873_v31 }
 0x1ba   :  { %2281 = vmatpush.xpose.msra.mxu0 %v494_v36  ;;  %2322 = vmatpush.xpose.msra.mxu1 %v495_v27  ;;  %v489_v36 = vld [vmem:[%s8797_s2 + $0xaa8] sm:$0xff]  ;;  %v702_v27 = vld [vmem:[%s8797_s2 + $0x1150] sm:$0xff] }
 0x1bb   :  { %2263 = vmatmul.f32.gmra.mxu3 %v8994_v43 }
 0x1bc   :  { %2363 = vmatpush.xpose.msra.mxu2 %v496_v34  ;;  %4104 = vmatpush.xpose.msk.msra.mxu3 %vm925_vm0, %v497_v50  ;;  %v703_v34 = vld [vmem:[%s8797_s2 + $0x1158] sm:$0xff]  ;;  %v704_v50 = vld [vmem:[%s8797_s2 + $0x1160] sm:$0xff] }
 0x1bd   :  { %2222 = vmatmul.f32.gmra.mxu2 %v4876_v32 }
 0x1be   :  { %2282 = vmatpush.xpose.msra.mxu0 %v487_v63  ;;  %2323 = vmatpush.xpose.msra.mxu1 %v488_v51  ;;  %v1895_v63 = vpop.f32.mrf.mxu2  ;;  %v1936_v2 = vpop.f32.mrf.mxu3  ;;  %v694_v51 = vld [vmem:[%s8797_s2 + $0x1110] sm:$0xff] }
 0x1bf   :  { %v6397_v37 = vadd.f32 %v1936_v2, %v1895_v63  ;;  %v1956_v43 = vpop.f32.mrf.mxu0  ;;  %v1997_v32 = vpop.f32.mrf.mxu1  ;;  %v696_v2 = vld [vmem:[%s8797_s2 + $0x1120] sm:$0xff] }
 0x1c0   :  { %2364 = vmatpush.xpose.msra.mxu2 %v489_v36  ;;  %4105 = vmatpush.xpose.msk.msra.mxu3 %vm925_vm0, %v490_v53  ;;  %v1957_v36 = vadd.f32 %v1956_v43, %v6142_v12  ;;  %v695_v53 = vld [vmem:[%s8797_s2 + $0x1118] sm:$0xff] }
 0x1c1   :  { %2283 = vmatmul.f32.vlgmr.msra.gmra.mxu0 %v8978_v8  ;;  %v687_v43 = vld [vmem:[%s8797_s2 + $0x10d8] sm:$0xff] }
 0x1c2   :  { %2431 = vmatpush.xpose.msrb.mxu0 %v701_v6  ;;  %2472 = vmatpush.xpose.msrb.mxu1 %v702_v27  ;;  %v9013_v6 = vld [vmem:[#allocation19_spill] sm:$0xff]  ;;  %v1998_v12 = vadd.f32 %v1997_v32, %v1957_v36  ;;  %v690_v32 = vld [vmem:[%s8797_s2 + $0x10f0] sm:$0xff]  ;;  %v680_v36 = vld [vmem:[%s8797_s2 + $0x10a0] sm:$0xff] }
 0x1c3   :  { %2324 = vmatmul.f32.vlgmr.msra.gmra.mxu1 %v9013_v6  ;;  %v697_v27 = vld [vmem:[%s8797_s2 + $0x1128] sm:$0xff]  ;;  %4106 = vmatmul.msk.f32.vlgmr.msra.gmra.mxu3 %vm925_vm0, %v4951_v5 }
 0x1c4   :  { %2513 = vmatpush.xpose.msrb.mxu2 %v703_v34  ;;  %2554 = vmatpush.xpose.msrb.mxu3 %v704_v50  ;;  %v9014_v34 = vld [vmem:[#allocation20_spill] sm:$0xff] }
 0x1c5   :  { %2365 = vmatmul.f32.vlgmr.msra.gmra.mxu2 %v9014_v34  ;;  %v689_v34 = vld [vmem:[%s8797_s2 + $0x10e8] sm:$0xff] }
 0x1c6   :  { %2432 = vmatpush.xpose.msrb.mxu0 %v694_v51  ;;  %2473 = vmatpush.xpose.msrb.mxu1 %v695_v53  ;;  %v2038_v50 = vpop.f32.mrf.mxu2  ;;  %v2079_v63 = vpop.f32.mrf.mxu3  ;;  %v688_v51 = vld [vmem:[%s8797_s2 + $0x10e0] sm:$0xff] }
 0x1c7   :  { %v2039_v6 = vadd.f32 %v2038_v50, %v1998_v12  ;;  %v1959_v5 = vpop.f32.mrf.mxu0  ;;  %v2000_v31 = vpop.f32.mrf.mxu1  ;;  %v674_v50 = vld [vmem:[%s8797_s2 + $0x1070] sm:$0xff] }
 0x1c8   :  { %2514 = vmatpush.xpose.msrb.mxu2 %v696_v2  ;;  %2555 = vmatpush.xpose.msrb.mxu3 %v697_v27  ;;  %v1960_v2 = vadd.f32 %v1959_v5, %v6172_v40  ;;  %v681_v27 = vld [vmem:[%s8797_s2 + $0x10a8] sm:$0xff]  ;;  %v683_v5 = vld [vmem:[%s8797_s2 + $0x10b8] sm:$0xff] }
 0x1c9   :  { %v6432_v53 = vadd.f32 %v2079_v63, %v2039_v6  ;;  %2286 = vmatmul.f32.gmra.mxu0 %v4564_v30  ;;  %v673_v40 = vld [vmem:[%s8797_s2 + $0x1068] sm:$0xff] }
 0x1ca   :  { %2433 = vmatpush.xpose.msrb.mxu0 %v687_v43  ;;  %2474 = vmatpush.xpose.msrb.mxu1 %v688_v51  ;;  %v682_v43 = vld [vmem:[%s8797_s2 + $0x10b0] sm:$0xff]  ;;  %v2001_v6 = vadd.f32 %v2000_v31, %v1960_v2 }
 0x1cb   :  { %9015 = vst [vmem:[#allocation57_spill] sm:$0xff] %v6432_v53  ;;  %2327 = vmatmul.f32.gmra.mxu1 %v8981_v62  ;;  %4107 = vmatmul.msk.f32.gmra.mxu3 %vm925_vm0, %v4999_v61 }
 0x1cc   :  { %2515 = vmatpush.xpose.msrb.mxu2 %v689_v34  ;;  %2556 = vmatpush.xpose.msrb.mxu3 %v690_v32  ;;  %v675_v32 = vld [vmem:[%s8797_s2 + $0x1078] sm:$0xff] }
 0x1cd   :  { %2368 = vmatmul.f32.gmra.mxu2 %v4990_v28 }
 0x1ce   :  { %2434 = vmatpush.xpose.msrb.mxu0 %v680_v36  ;;  %2475 = vmatpush.xpose.msrb.mxu1 %v681_v27  ;;  %v2082_v12 = vpop.f32.mrf.mxu3  ;;  %v676_v36 = vld [vmem:[%s8797_s2 + $0x1080] sm:$0xff]  ;;  %v666_v27 = vld [vmem:[%s8797_s2 + $0x1030] sm:$0xff] }
 0x1cf   :  { %v1962_v51 = vpop.f32.mrf.mxu0  ;;  %v2003_v31 = vpop.f32.mrf.mxu1 }
 0x1d0   :  { %v2041_v34 = vpop.f32.mrf.mxu2  ;;  %2516 = vmatpush.xpose.msrb.mxu2 %v682_v43  ;;  %2557 = vmatpush.xpose.msrb.mxu3 %v683_v5  ;;  %v1963_v43 = vadd.f32 %v1962_v51, %v6209_v21  ;;  %v667_v5 = vld [vmem:[%s8797_s2 + $0x1038] sm:$0xff]  ;;  %v669_v21 = vld [vmem:[%s8797_s2 + $0x1048] sm:$0xff] }
 0x1d1   :  { %v2042_v63 = vadd.f32 %v2041_v34, %v2001_v6  ;;  %2289 = vmatmul.f32.gmra.mxu0 %v4618_v46  ;;  %v659_v6 = vld [vmem:[%s8797_s2 + $0xff8] sm:$0xff]  ;;  %v661_v51 = vld [vmem:[%s8797_s2 + $0x1008] sm:$0xff] }
 0x1d2   :  { %2435 = vmatpush.xpose.msrb.mxu0 %v673_v40  ;;  %2476 = vmatpush.xpose.msrb.mxu1 %v674_v50  ;;  %v668_v40 = vld [vmem:[%s8797_s2 + $0x1040] sm:$0xff]  ;;  %v2004_v34 = vadd.f32 %v2003_v31, %v1963_v43  ;;  %v662_v31 = vld [vmem:[%s8797_s2 + $0x1010] sm:$0xff] }
 0x1d3   :  { %v6461_v2 = vadd.f32 %v2082_v12, %v2042_v63  ;;  %2330 = vmatmul.f32.gmra.mxu1 %v8982_v54  ;;  %4108 = vmatmul.msk.f32.gmra.mxu3 %vm925_vm0, %v5046_v11  ;;  %v660_v12 = vld [vmem:[%s8797_s2 + $0x1000] sm:$0xff] }
 0x1d4   :  { %2517 = vmatpush.xpose.msrb.mxu2 %v675_v32  ;;  %2558 = vmatpush.xpose.msrb.mxu3 %v676_v36 }
 0x1d5   :  { %9016 = vst [vmem:[#allocation58_spill] sm:$0xff] %v6461_v2  ;;  %2371 = vmatmul.f32.gmra.mxu2 %v5037_v57 }
 0x1d6   :  { %2436 = vmatpush.xpose.msrb.mxu0 %v666_v27  ;;  %2477 = vmatpush.xpose.msrb.mxu1 %v667_v5  ;;  %v2085_v63 = vpop.f32.mrf.mxu3  ;;  %v652_v5 = vld [vmem:[%s8797_s2 + $0xfc0] sm:$0xff] }
 0x1d7   :  { %v1965_v36 = vpop.f32.mrf.mxu0  ;;  %v2006_v27 = vpop.f32.mrf.mxu1 }
 0x1d8   :  { %2518 = vmatpush.xpose.msrb.mxu2 %v668_v40  ;;  %v2044_v50 = vpop.f32.mrf.mxu2  ;;  %2559 = vmatpush.xpose.msrb.mxu3 %v669_v21  ;;  %v1966_v43 = vadd.f32 %v1965_v36, %v6246_v55  ;;  %v653_v21 = vld [vmem:[%s8797_s2 + $0xfc8] sm:$0xff]  ;;  %v654_v55 = vld [vmem:[%s8797_s2 + $0xfd0] sm:$0xff]  ;;  %v647_v36 = vld [vmem:[%s8797_s2 + $0xf98] sm:$0xff] }
 0x1d9   :  { %v2045_v32 = vadd.f32 %v2044_v50, %v2004_v34  ;;  %2292 = vmatmul.f32.gmra.mxu0 %v4672_v1  ;;  %v9018_v34 = vld [vmem:[#allocation25_spill] sm:$0xff]  ;;  %v645_v50 = vld [vmem:[%s8797_s2 + $0xf88] sm:$0xff] }
 0x1da   :  { %2437 = vmatpush.xpose.msrb.mxu0 %v659_v6  ;;  %2478 = vmatpush.xpose.msrb.mxu1 %v660_v12  ;;  %v2007_v6 = vadd.f32 %v2006_v27, %v1966_v43  ;;  %v655_v12 = vld [vmem:[%s8797_s2 + $0xfd8] sm:$0xff] }
 0x1db   :  { %v6497_v40 = vadd.f32 %v2085_v63, %v2045_v32  ;;  %2333 = vmatmul.f32.gmra.mxu1 %v8984_v13  ;;  %4109 = vmatmul.msk.f32.gmra.mxu3 %vm925_vm0, %v5093_v48  ;;  %v646_v63 = vld [vmem:[%s8797_s2 + $0xf90] sm:$0xff] }
 0x1dc   :  { %2519 = vmatpush.xpose.msrb.mxu2 %v661_v51  ;;  %2560 = vmatpush.xpose.msrb.mxu3 %v662_v31 }
 0x1dd   :  { %9017 = vst [vmem:[#allocation59_spill] sm:$0xff] %v6497_v40  ;;  %2374 = vmatmul.f32.gmra.mxu2 %v9018_v34  ;;  %v9026_v40 = vld [vmem:[#allocation18_spill] sm:$0xff] }
 0x1de   :  { %2438 = vmatpush.xpose.msrb.mxu0 %v652_v5  ;;  %2479 = vmatpush.xpose.msrb.mxu1 %v653_v21  ;;  %v2088_v32 = vpop.f32.mrf.mxu3  ;;  %v648_v5 = vld [vmem:[%s8797_s2 + $0xfa0] sm:$0xff] }
 0x1df   :  { %v1968_v31 = vpop.f32.mrf.mxu0  ;;  %v2009_v43 = vpop.f32.mrf.mxu1 }
 0x1e0   :  { %2520 = vmatpush.xpose.msrb.mxu2 %v654_v55  ;;  %v2047_v51 = vpop.f32.mrf.mxu2  ;;  %2561 = vmatpush.xpose.msrb.mxu3 %v655_v12  ;;  %v1969_v21 = vadd.f32 %v1968_v31, %v6283_v3  ;;  %v638_v55 = vld [vmem:[%s8797_s2 + $0xf50] sm:$0xff]  ;;  %v640_v3 = vld [vmem:[%s8797_s2 + $0xf60] sm:$0xff]  ;;  %v633_v31 = vld [vmem:[%s8797_s2 + $0xf28] sm:$0xff] }
 0x1e1   :  { %v2048_v27 = vadd.f32 %v2047_v51, %v2007_v6  ;;  %2295 = vmatmul.f32.gmra.mxu0 %v4726_v23  ;;  %v639_v6 = vld [vmem:[%s8797_s2 + $0xf58] sm:$0xff] }
 0x1e2   :  { %2439 = vmatpush.xpose.msrb.mxu0 %v645_v50  ;;  %2480 = vmatpush.xpose.msrb.mxu1 %v646_v63  ;;  %v2010_v50 = vadd.f32 %v2009_v43, %v1969_v21  ;;  %v641_v63 = vld [vmem:[%s8797_s2 + $0xf68] sm:$0xff]  ;;  %v631_v51 = vld [vmem:[%s8797_s2 + $0xf18] sm:$0xff] }
 0x1e3   :  { %v6529_v12 = vadd.f32 %v2088_v32, %v2048_v27  ;;  %2336 = vmatmul.f32.gmra.mxu1 %v8986_v7  ;;  %4110 = vmatmul.msk.f32.gmra.mxu3 %vm925_vm0, %v5140_v33  ;;  %v632_v32 = vld [vmem:[%s8797_s2 + $0xf20] sm:$0xff] }
 0x1e4   :  { %2521 = vmatpush.xpose.msrb.mxu2 %v647_v36  ;;  %2562 = vmatpush.xpose.msrb.mxu3 %v648_v5 }
 0x1e5   :  { %9019 = vst [vmem:[#allocation25_spill] sm:$0xff] %v6529_v12  ;;  %2377 = vmatmul.f32.gmra.mxu2 %v5131_v20  ;;  %v596_v12 = vld [vmem:[%s8797_s2 + $0xe00] sm:$0xff] }
 0x1e6   :  { %2440 = vmatpush.xpose.msrb.mxu0 %v638_v55  ;;  %2481 = vmatpush.xpose.msrb.mxu1 %v639_v6  ;;  %v2091_v27 = vpop.f32.mrf.mxu3  ;;  %v634_v55 = vld [vmem:[%s8797_s2 + $0xf30] sm:$0xff] }
 0x1e7   :  { %v1971_v5 = vpop.f32.mrf.mxu0  ;;  %v2012_v21 = vpop.f32.mrf.mxu1 }
 0x1e8   :  { %2522 = vmatpush.xpose.msrb.mxu2 %v640_v3  ;;  %v2050_v36 = vpop.f32.mrf.mxu2  ;;  %2563 = vmatpush.xpose.msrb.mxu3 %v641_v63  ;;  %v1972_v6 = vadd.f32 %v1971_v5, %v6320_v60  ;;  %v624_v3 = vld [vmem:[%s8797_s2 + $0xee0] sm:$0xff]  ;;  %v626_v60 = vld [vmem:[%s8797_s2 + $0xef0] sm:$0xff]  ;;  %v619_v5 = vld [vmem:[%s8797_s2 + $0xeb8] sm:$0xff] }
 0x1e9   :  { %v2051_v43 = vadd.f32 %v2050_v36, %v2010_v50  ;;  %2298 = vmatmul.f32.gmra.mxu0 %v4780_v47  ;;  %v625_v50 = vld [vmem:[%s8797_s2 + $0xee8] sm:$0xff] }
 0x1ea   :  { %2441 = vmatpush.xpose.msrb.mxu0 %v631_v51  ;;  %2482 = vmatpush.xpose.msrb.mxu1 %v632_v32  ;;  %v2013_v51 = vadd.f32 %v2012_v21, %v1972_v6  ;;  %v627_v32 = vld [vmem:[%s8797_s2 + $0xef8] sm:$0xff]  ;;  %v617_v36 = vld [vmem:[%s8797_s2 + $0xea8] sm:$0xff] }
 0x1eb   :  { %v6561_v63 = vadd.f32 %v2091_v27, %v2051_v43  ;;  %2339 = vmatmul.f32.gmra.mxu1 %v8988_v14  ;;  %4111 = vmatmul.msk.f32.gmra.mxu3 %vm925_vm0, %v5187_v24  ;;  %v618_v27 = vld [vmem:[%s8797_s2 + $0xeb0] sm:$0xff] }
 0x1ec   :  { %2523 = vmatpush.xpose.msrb.mxu2 %v633_v31  ;;  %2564 = vmatpush.xpose.msrb.mxu3 %v634_v55 }
 0x1ed   :  { %9020 = vst [vmem:[#allocation60_spill] sm:$0xff] %v6561_v63  ;;  %2380 = vmatmul.f32.gmra.mxu2 %v5178_v15  ;;  %v9022_v63 = vld [vmem:[#allocation14_spill] sm:$0xff] }
 0x1ee   :  { %2442 = vmatpush.xpose.msrb.mxu0 %v624_v3  ;;  %2483 = vmatpush.xpose.msrb.mxu1 %v625_v50  ;;  %v2094_v43 = vpop.f32.mrf.mxu3  ;;  %v620_v3 = vld [vmem:[%s8797_s2 + $0xec0] sm:$0xff] }
 0x1ef   :  { %v1974_v55 = vpop.f32.mrf.mxu0  ;;  %v2015_v6 = vpop.f32.mrf.mxu1 }
 0x1f0   :  { %2524 = vmatpush.xpose.msrb.mxu2 %v626_v60  ;;  %v2053_v31 = vpop.f32.mrf.mxu2  ;;  %2565 = vmatpush.xpose.msrb.mxu3 %v627_v32  ;;  %v1975_v50 = vadd.f32 %v1974_v55, %v6357_v35  ;;  %v610_v60 = vld [vmem:[%s8797_s2 + $0xe70] sm:$0xff]  ;;  %v612_v35 = vld [vmem:[%s8797_s2 + $0xe80] sm:$0xff] }
 0x1f1   :  { %v2054_v21 = vadd.f32 %v2053_v31, %v2013_v51  ;;  %2301 = vmatmul.f32.gmra.mxu0 %v9022_v63  ;;  %v611_v51 = vld [vmem:[%s8797_s2 + $0xe78] sm:$0xff]  ;;  %v9023_v31 = vld [vmem:[#allocation28_spill] sm:$0xff] }
 0x1f2   :  { %2443 = vmatpush.xpose.msrb.mxu0 %v617_v36  ;;  %2484 = vmatpush.xpose.msrb.mxu1 %v618_v27  ;;  %v2016_v36 = vadd.f32 %v2015_v6, %v1975_v50  ;;  %v9024_v27 = vld [vmem:[#allocation29_spill] sm:$0xff] }
 0x1f3   :  { %v6593_v32 = vadd.f32 %v2094_v43, %v2054_v21  ;;  %2342 = vmatmul.f32.gmra.mxu1 %v9023_v31  ;;  %v613_v43 = vld [vmem:[%s8797_s2 + $0xe88] sm:$0xff]  ;;  %4112 = vmatmul.msk.f32.gmra.mxu3 %vm925_vm0, %v8973_v16  ;;  %v604_v21 = vld [vmem:[%s8797_s2 + $0xe40] sm:$0xff] }
 0x1f4   :  { %2525 = vmatpush.xpose.msrb.mxu2 %v619_v5  ;;  %2566 = vmatpush.xpose.msrb.mxu3 %v620_v3  ;;  %v603_v5 = vld [vmem:[%s8797_s2 + $0xe38] sm:$0xff]  ;;  %v605_v3 = vld [vmem:[%s8797_s2 + $0xe48] sm:$0xff] }
 0x1f5   :  { %9021 = vst [vmem:[#allocation61_spill] sm:$0xff] %v6593_v32  ;;  %2383 = vmatmul.f32.gmra.mxu2 %v9024_v27 }
 0x1f6   :  { %2444 = vmatpush.xpose.msrb.mxu0 %v610_v60  ;;  %2485 = vmatpush.xpose.msrb.mxu1 %v611_v51  ;;  %v2097_v6 = vpop.f32.mrf.mxu3  ;;  %v606_v51 = vld [vmem:[%s8797_s2 + $0xe50] sm:$0xff] }
 0x1f7   :  { %v1977_v60 = vpop.f32.mrf.mxu0  ;;  %v2018_v32 = vpop.f32.mrf.mxu1 }
 0x1f8   :  { %2526 = vmatpush.xpose.msrb.mxu2 %v612_v35  ;;  %v2056_v55 = vpop.f32.mrf.mxu2  ;;  %2567 = vmatpush.xpose.msrb.mxu3 %v613_v43  ;;  %v1978_v35 = vadd.f32 %v1977_v60, %v6397_v37  ;;  %v598_v37 = vld [vmem:[%s8797_s2 + $0xe10] sm:$0xff] }
 0x1f9   :  { %v2057_v50 = vadd.f32 %v2056_v55, %v2016_v36  ;;  %2304 = vmatmul.f32.gmra.mxu0 %v9026_v40  ;;  %v597_v36 = vld [vmem:[%s8797_s2 + $0xe08] sm:$0xff] }
 0x1fa   :  { %2445 = vmatpush.xpose.msrb.mxu0 %v603_v5  ;;  %2486 = vmatpush.xpose.msrb.mxu1 %v604_v21  ;;  %v2019_v5 = vadd.f32 %v2018_v32, %v1978_v35  ;;  %v9027_v55 = vld [vmem:[#allocation31_spill] sm:$0xff]  ;;  %v706_v32 = vld [vmem:[%s8797_s2 + $0x1170] sm:$0xff] }
 0x1fb   :  { %v6625_v43 = vadd.f32 %v2097_v6, %v2057_v50  ;;  %2345 = vmatmul.f32.gmra.mxu1 %v9027_v55  ;;  %v705_v21 = vld [vmem:[%s8797_s2 + $0x1168] sm:$0xff]  ;;  %v9028_v6 = vld [vmem:[#allocation32_spill] sm:$0xff]  ;;  %4113 = vmatmul.msk.f32.gmra.mxu3 %vm925_vm0, %v5281_v56  ;;  %v707_v50 = vld [vmem:[%s8797_s2 + $0x1178] sm:$0xff] }
 0x1fc   :  { %2527 = vmatpush.xpose.msrb.mxu2 %v605_v3  ;;  %2568 = vmatpush.xpose.msrb.mxu3 %v606_v51  ;;  %v599_v3 = vld [vmem:[%s8797_s2 + $0xe18] sm:$0xff] }
 0x1fd   :  { %9025 = vst [vmem:[#allocation29_spill] sm:$0xff] %v6625_v43  ;;  %2386 = vmatmul.f32.gmra.mxu2 %v9028_v6 }
 0x1fe   :  { %2446 = vmatpush.xpose.msrb.mxu0 %v596_v12  ;;  %2487 = vmatpush.xpose.msrb.mxu1 %v597_v36  ;;  %v813_v12 = vld [vmem:[%s8797_s2 + $0x14c8] sm:$0xff]  ;;  %v2100_v51 = vpop.f32.mrf.mxu3  ;;  %v698_v36 = vld [vmem:[%s8797_s2 + $0x1130] sm:$0xff] }
 0x1ff   :  { %v6653_v43 = vpop.f32.mrf.mxu0  ;;  %v2161_v53 = vpop.f32.mrf.mxu1 }
 0x200   :  { %2528 = vmatpush.xpose.msrb.mxu2 %v598_v37  ;;  %v2059_v60 = vpop.f32.mrf.mxu2  ;;  %2569 = vmatpush.xpose.msrb.mxu3 %v599_v3  ;;  %9029 = vst [vmem:[#allocation32_spill] sm:$0xff] %v6653_v43  ;;  %v699_v37 = vld [vmem:[%s8797_s2 + $0x1138] sm:$0xff] }
 0x201   :  { %v2060_v35 = vadd.f32 %v2059_v60, %v2019_v5  ;;  %2447 = vmatmul.f32.vlgmr.msrb.gmra.mxu0 %v4496_v9  ;;  %v700_v5 = vld [vmem:[%s8797_s2 + $0x1140] sm:$0xff] }
 0x202   :  { %2595 = vmatpush.xpose.msra.mxu0 %v705_v21  ;;  %2636 = vmatpush.xpose.msra.mxu1 %v706_v32  ;;  %v806_v21 = vld [vmem:[%s8797_s2 + $0x1490] sm:$0xff]  ;;  %v691_v32 = vld [vmem:[%s8797_s2 + $0x10f8] sm:$0xff] }
 0x203   :  { %2488 = vmatmul.f32.vlgmr.msrb.gmra.mxu1 %v4499_v10  ;;  %v6670_v3 = vadd.f32 %v2100_v51, %v2060_v35  ;;  %2570 = vmatmul.f32.vlgmr.msrb.gmra.mxu3 %v8978_v8  ;;  %v693_v51 = vld [vmem:[%s8797_s2 + $0x1108] sm:$0xff] }
 0x204   :  { %4114 = vmatpush.xpose.msk.msra.mxu2 %vm925_vm0, %v707_v50  ;;  %2718 = vmatpush.xpose.msra.mxu3 %v813_v12  ;;  %v692_v50 = vld [vmem:[%s8797_s2 + $0x1100] sm:$0xff] }
 0x205   :  { %9030 = vst [vmem:[#allocation62_spill] sm:$0xff] %v6670_v3  ;;  %2529 = vmatmul.f32.vlgmr.msrb.gmra.mxu2 %v8977_v49 }
 0x206   :  { %2596 = vmatpush.xpose.msra.mxu0 %v698_v36  ;;  %2637 = vmatpush.xpose.msra.mxu1 %v699_v37  ;;  %v2243_v60 = vpop.f32.mrf.mxu3 }
 0x207   :  { %v6684_v36 = vpop.f32.mrf.mxu0  ;;  %v2164_v37 = vpop.f32.mrf.mxu1 }
 0x208   :  { %4115 = vmatpush.xpose.msk.msra.mxu2 %vm925_vm0, %v700_v5  ;;  %2719 = vmatpush.xpose.msra.mxu3 %v806_v21  ;;  %v2202_v12 = vpop.f32.mrf.mxu2  ;;  %9031 = vst [vmem:[#allocation63_spill] sm:$0xff] %v6684_v36  ;;  %v799_v5 = vld [vmem:[%s8797_s2 + $0x1458] sm:$0xff]  ;;  %v684_v21 = vld [vmem:[%s8797_s2 + $0x10c0] sm:$0xff]  ;;  %v670_v36 = vld [vmem:[%s8797_s2 + $0x1050] sm:$0xff] }
 0x209   :  { %v2203_v35 = vadd.f32 %v2202_v12, %v2161_v53  ;;  %2450 = vmatmul.f32.gmra.mxu0 %v4549_v25  ;;  %v685_v53 = vld [vmem:[%s8797_s2 + $0x10c8] sm:$0xff] }
 0x20a   :  { %2597 = vmatpush.xpose.msra.mxu0 %v691_v32  ;;  %2638 = vmatpush.xpose.msra.mxu1 %v692_v50  ;;  %v686_v32 = vld [vmem:[%s8797_s2 + $0x10d0] sm:$0xff]  ;;  %v792_v50 = vld [vmem:[%s8797_s2 + $0x1420] sm:$0xff]  ;;  %v677_v12 = vld [vmem:[%s8797_s2 + $0x1088] sm:$0xff] }
 0x20b   :  { %v6692_v3 = vadd.f32 %v2243_v60, %v2203_v35  ;;  %2491 = vmatmul.f32.gmra.mxu1 %v4552_v26  ;;  %2573 = vmatmul.f32.gmra.mxu3 %v4564_v30  ;;  %v678_v60 = vld [vmem:[%s8797_s2 + $0x1090] sm:$0xff] }
 0x20c   :  { %4116 = vmatpush.xpose.msk.msra.mxu2 %vm925_vm0, %v693_v51  ;;  %2720 = vmatpush.xpose.msra.mxu3 %v799_v5  ;;  %v679_v5 = vld [vmem:[%s8797_s2 + $0x1098] sm:$0xff] }
 0x20d   :  { %2532 = vmatmul.f32.gmra.mxu2 %v4561_v29 }
 0x20e   :  { %2598 = vmatpush.xpose.msra.mxu0 %v684_v21  ;;  %2639 = vmatpush.xpose.msra.mxu1 %v685_v53  ;;  %v2246_v35 = vpop.f32.mrf.mxu3 }
 0x20f   :  { %v6718_v43 = vpop.f32.mrf.mxu0  ;;  %v2167_v53 = vpop.f32.mrf.mxu1 }
 0x210   :  { %4117 = vmatpush.xpose.msk.msra.mxu2 %vm925_vm0, %v686_v32  ;;  %v2205_v51 = vpop.f32.mrf.mxu2  ;;  %2721 = vmatpush.xpose.msra.mxu3 %v792_v50  ;;  %9032 = vst [vmem:[#allocation64_spill] sm:$0xff] %v6718_v43  ;;  %v785_v32 = vld [vmem:[%s8797_s2 + $0x13e8] sm:$0xff]  ;;  %v672_v50 = vld [vmem:[%s8797_s2 + $0x1060] sm:$0xff] }
 0x211   :  { %v2206_v21 = vadd.f32 %v2205_v51, %v2164_v37  ;;  %2453 = vmatmul.f32.gmra.mxu0 %v4603_v41  ;;  %v671_v37 = vld [vmem:[%s8797_s2 + $0x1058] sm:$0xff]  ;;  %v664_v51 = vld [vmem:[%s8797_s2 + $0x1020] sm:$0xff] }
 0x212   :  { %2599 = vmatpush.xpose.msra.mxu0 %v677_v12  ;;  %2640 = vmatpush.xpose.msra.mxu1 %v678_v60  ;;  %v778_v12 = vld [vmem:[%s8797_s2 + $0x13b0] sm:$0xff]  ;;  %v663_v60 = vld [vmem:[%s8797_s2 + $0x1018] sm:$0xff]  ;;  %v656_v43 = vld [vmem:[%s8797_s2 + $0xfe0] sm:$0xff] }
 0x213   :  { %v6726_v2 = vadd.f32 %v2246_v35, %v2206_v21  ;;  %2494 = vmatmul.f32.gmra.mxu1 %v4606_v42  ;;  %2576 = vmatmul.f32.gmra.mxu3 %v4618_v46 }
 0x214   :  { %4118 = vmatpush.xpose.msk.msra.mxu2 %vm925_vm0, %v679_v5  ;;  %2722 = vmatpush.xpose.msra.mxu3 %v785_v32 }
 0x215   :  { %2535 = vmatmul.f32.gmra.mxu2 %v4615_v45 }
 0x216   :  { %2600 = vmatpush.xpose.msra.mxu0 %v670_v36  ;;  %2641 = vmatpush.xpose.msra.mxu1 %v671_v37  ;;  %v2249_v5 = vpop.f32.mrf.mxu3  ;;  %v665_v36 = vld [vmem:[%s8797_s2 + $0x1028] sm:$0xff] }
 0x217   :  { %v6752_v32 = vpop.f32.mrf.mxu0  ;;  %v2170_v37 = vpop.f32.mrf.mxu1 }
 0x218   :  { %4119 = vmatpush.xpose.msk.msra.mxu2 %vm925_vm0, %v672_v50  ;;  %v2208_v35 = vpop.f32.mrf.mxu2  ;;  %2723 = vmatpush.xpose.msra.mxu3 %v778_v12  ;;  %9033 = vst [vmem:[#allocation65_spill] sm:$0xff] %v6752_v32  ;;  %v771_v50 = vld [vmem:[%s8797_s2 + $0x1378] sm:$0xff]  ;;  %v658_v12 = vld [vmem:[%s8797_s2 + $0xff0] sm:$0xff] }
 0x219   :  { %v2209_v21 = vadd.f32 %v2208_v35, %v2167_v53  ;;  %2456 = vmatmul.f32.gmra.mxu0 %v4657_v58  ;;  %v657_v53 = vld [vmem:[%s8797_s2 + $0xfe8] sm:$0xff]  ;;  %v650_v35 = vld [vmem:[%s8797_s2 + $0xfb0] sm:$0xff] }
 0x21a   :  { %2601 = vmatpush.xpose.msra.mxu0 %v663_v60  ;;  %2642 = vmatpush.xpose.msra.mxu1 %v664_v51  ;;  %v764_v60 = vld [vmem:[%s8797_s2 + $0x1340] sm:$0xff]  ;;  %v649_v51 = vld [vmem:[%s8797_s2 + $0xfa8] sm:$0xff]  ;;  %v642_v32 = vld [vmem:[%s8797_s2 + $0xf70] sm:$0xff] }
 0x21b   :  { %v6760_v46 = vadd.f32 %v2249_v5, %v2209_v21  ;;  %2497 = vmatmul.f32.gmra.mxu1 %v4660_v59  ;;  %2579 = vmatmul.f32.gmra.mxu3 %v4672_v1 }
 0x21c   :  { %4120 = vmatpush.xpose.msk.msra.mxu2 %vm925_vm0, %v665_v36  ;;  %2724 = vmatpush.xpose.msra.mxu3 %v771_v50 }
 0x21d   :  { %2538 = vmatmul.f32.gmra.mxu2 %v4669_v0 }
 0x21e   :  { %2602 = vmatpush.xpose.msra.mxu0 %v656_v43  ;;  %2643 = vmatpush.xpose.msra.mxu1 %v657_v53  ;;  %v2252_v36 = vpop.f32.mrf.mxu3  ;;  %v651_v43 = vld [vmem:[%s8797_s2 + $0xfb8] sm:$0xff] }
 0x21f   :  { %v6786_v50 = vpop.f32.mrf.mxu0  ;;  %v2173_v53 = vpop.f32.mrf.mxu1 }
 0x220   :  { %4121 = vmatpush.xpose.msk.msra.mxu2 %vm925_vm0, %v658_v12  ;;  %v2211_v5 = vpop.f32.mrf.mxu2  ;;  %2725 = vmatpush.xpose.msra.mxu3 %v764_v60  ;;  %9034 = vst [vmem:[#allocation66_spill] sm:$0xff] %v6786_v50  ;;  %v757_v12 = vld [vmem:[%s8797_s2 + $0x1308] sm:$0xff]  ;;  %v644_v60 = vld [vmem:[%s8797_s2 + $0xf80] sm:$0xff] }
 0x221   :  { %v2212_v21 = vadd.f32 %v2211_v5, %v2170_v37  ;;  %2459 = vmatmul.f32.gmra.mxu0 %v4711_v18  ;;  %v643_v37 = vld [vmem:[%s8797_s2 + $0xf78] sm:$0xff]  ;;  %v636_v5 = vld [vmem:[%s8797_s2 + $0xf40] sm:$0xff] }
 0x222   :  { %2603 = vmatpush.xpose.msra.mxu0 %v649_v51  ;;  %2644 = vmatpush.xpose.msra.mxu1 %v650_v35  ;;  %v750_v51 = vld [vmem:[%s8797_s2 + $0x12d0] sm:$0xff]  ;;  %v635_v35 = vld [vmem:[%s8797_s2 + $0xf38] sm:$0xff]  ;;  %v628_v50 = vld [vmem:[%s8797_s2 + $0xf00] sm:$0xff] }
 0x223   :  { %v6794_v1 = vadd.f32 %v2252_v36, %v2212_v21  ;;  %2500 = vmatmul.f32.gmra.mxu1 %v4714_v19  ;;  %2582 = vmatmul.f32.gmra.mxu3 %v4726_v23 }
 0x224   :  { %4122 = vmatpush.xpose.msk.msra.mxu2 %vm925_vm0, %v651_v43  ;;  %2726 = vmatpush.xpose.msra.mxu3 %v757_v12 }
 0x225   :  { %2541 = vmatmul.f32.gmra.mxu2 %v4723_v22 }
 0x226   :  { %2604 = vmatpush.xpose.msra.mxu0 %v642_v32  ;;  %2645 = vmatpush.xpose.msra.mxu1 %v643_v37  ;;  %v2255_v43 = vpop.f32.mrf.mxu3  ;;  %v637_v32 = vld [vmem:[%s8797_s2 + $0xf48] sm:$0xff] }
 0x227   :  { %v6820_v12 = vpop.f32.mrf.mxu0  ;;  %v2176_v37 = vpop.f32.mrf.mxu1 }
 0x228   :  { %4123 = vmatpush.xpose.msk.msra.mxu2 %vm925_vm0, %v644_v60  ;;  %v2214_v36 = vpop.f32.mrf.mxu2  ;;  %2727 = vmatpush.xpose.msra.mxu3 %v750_v51  ;;  %9035 = vst [vmem:[#allocation67_spill] sm:$0xff] %v6820_v12  ;;  %v743_v60 = vld [vmem:[%s8797_s2 + $0x1298] sm:$0xff]  ;;  %v630_v51 = vld [vmem:[%s8797_s2 + $0xf10] sm:$0xff] }
 0x229   :  { %v2215_v21 = vadd.f32 %v2214_v36, %v2173_v53  ;;  %2462 = vmatmul.f32.gmra.mxu0 %v4765_v38  ;;  %v629_v53 = vld [vmem:[%s8797_s2 + $0xf08] sm:$0xff]  ;;  %v622_v36 = vld [vmem:[%s8797_s2 + $0xed0] sm:$0xff] }
 0x22a   :  { %2605 = vmatpush.xpose.msra.mxu0 %v635_v35  ;;  %2646 = vmatpush.xpose.msra.mxu1 %v636_v5  ;;  %v736_v35 = vld [vmem:[%s8797_s2 + $0x1260] sm:$0xff]  ;;  %v621_v5 = vld [vmem:[%s8797_s2 + $0xec8] sm:$0xff]  ;;  %v614_v12 = vld [vmem:[%s8797_s2 + $0xe90] sm:$0xff] }
 0x22b   :  { %v6828_v23 = vadd.f32 %v2255_v43, %v2215_v21  ;;  %2503 = vmatmul.f32.gmra.mxu1 %v4768_v39  ;;  %2585 = vmatmul.f32.gmra.mxu3 %v4780_v47 }
 0x22c   :  { %4124 = vmatpush.xpose.msk.msra.mxu2 %vm925_vm0, %v637_v32  ;;  %2728 = vmatpush.xpose.msra.mxu3 %v743_v60 }
 0x22d   :  { %2544 = vmatmul.f32.gmra.mxu2 %v4777_v44  ;;  %v9041_v44 = vld [vmem:[#allocation19_spill] sm:$0xff] }
 0x22e   :  { %2606 = vmatpush.xpose.msra.mxu0 %v628_v50  ;;  %2647 = vmatpush.xpose.msra.mxu1 %v629_v53  ;;  %v2258_v32 = vpop.f32.mrf.mxu3  ;;  %v623_v50 = vld [vmem:[%s8797_s2 + $0xed8] sm:$0xff] }
 0x22f   :  { %v6854_v60 = vpop.f32.mrf.mxu0  ;;  %v2179_v53 = vpop.f32.mrf.mxu1 }
 0x230   :  { %4125 = vmatpush.xpose.msk.msra.mxu2 %vm925_vm0, %v630_v51  ;;  %v2217_v43 = vpop.f32.mrf.mxu2  ;;  %2729 = vmatpush.xpose.msra.mxu3 %v736_v35  ;;  %9036 = vst [vmem:[#allocation68_spill] sm:$0xff] %v6854_v60  ;;  %v729_v51 = vld [vmem:[%s8797_s2 + $0x1228] sm:$0xff]  ;;  %v616_v35 = vld [vmem:[%s8797_s2 + $0xea0] sm:$0xff] }
 0x231   :  { %v2218_v21 = vadd.f32 %v2217_v43, %v2176_v37  ;;  %2465 = vmatmul.f32.gmra.mxu0 %v8974_v52  ;;  %v615_v37 = vld [vmem:[%s8797_s2 + $0xe98] sm:$0xff]  ;;  %v608_v43 = vld [vmem:[%s8797_s2 + $0xe60] sm:$0xff] }
 0x232   :  { %2607 = vmatpush.xpose.msra.mxu0 %v621_v5  ;;  %2648 = vmatpush.xpose.msra.mxu1 %v622_v36  ;;  %v722_v5 = vld [vmem:[%s8797_s2 + $0x11f0] sm:$0xff]  ;;  %v607_v36 = vld [vmem:[%s8797_s2 + $0xe58] sm:$0xff]  ;;  %v600_v60 = vld [vmem:[%s8797_s2 + $0xe20] sm:$0xff] }
 0x233   :  { %v6862_v47 = vadd.f32 %v2258_v32, %v2218_v21  ;;  %2506 = vmatmul.f32.gmra.mxu1 %v4822_v4  ;;  %2588 = vmatmul.f32.gmra.mxu3 %v9022_v63 }
 0x234   :  { %4126 = vmatpush.xpose.msk.msra.mxu2 %vm925_vm0, %v623_v50  ;;  %2730 = vmatpush.xpose.msra.mxu3 %v729_v51 }
 0x235   :  { %2547 = vmatmul.f32.gmra.mxu2 %v8990_v17 }
 0x236   :  { %2608 = vmatpush.xpose.msra.mxu0 %v614_v12  ;;  %2649 = vmatpush.xpose.msra.mxu1 %v615_v37  ;;  %v2261_v50 = vpop.f32.mrf.mxu3  ;;  %v609_v12 = vld [vmem:[%s8797_s2 + $0xe68] sm:$0xff] }
 0x237   :  { %v6888_v51 = vpop.f32.mrf.mxu0  ;;  %v2182_v37 = vpop.f32.mrf.mxu1 }
 0x238   :  { %4127 = vmatpush.xpose.msk.msra.mxu2 %vm925_vm0, %v616_v35  ;;  %v2220_v32 = vpop.f32.mrf.mxu2  ;;  %2731 = vmatpush.xpose.msra.mxu3 %v722_v5  ;;  %9037 = vst [vmem:[#allocation69_spill] sm:$0xff] %v6888_v51  ;;  %v715_v35 = vld [vmem:[%s8797_s2 + $0x11b8] sm:$0xff]  ;;  %v9038_v5 = vld [vmem:[#allocation15_spill] sm:$0xff] }
 0x239   :  { %v2221_v21 = vadd.f32 %v2220_v32, %v2179_v53  ;;  %2468 = vmatmul.f32.gmra.mxu0 %v9038_v5  ;;  %v601_v53 = vld [vmem:[%s8797_s2 + $0xe28] sm:$0xff]  ;;  %v814_v32 = vld [vmem:[%s8797_s2 + $0x14d0] sm:$0xff] }
 0x23a   :  { %2609 = vmatpush.xpose.msra.mxu0 %v607_v36  ;;  %2650 = vmatpush.xpose.msra.mxu1 %v608_v43  ;;  %v9039_v36 = vld [vmem:[#allocation16_spill] sm:$0xff]  ;;  %v817_v51 = vld [vmem:[%s8797_s2 + $0x14e8] sm:$0xff] }
 0x23b   :  { %v6896_v63 = vadd.f32 %v2261_v50, %v2221_v21  ;;  %2509 = vmatmul.f32.gmra.mxu1 %v9039_v36  ;;  %v602_v43 = vld [vmem:[%s8797_s2 + $0xe30] sm:$0xff]  ;;  %v9040_v50 = vld [vmem:[#allocation17_spill] sm:$0xff]  ;;  %2591 = vmatmul.f32.gmra.mxu3 %v9026_v40 }
 0x23c   :  { %4128 = vmatpush.xpose.msk.msra.mxu2 %vm925_vm0, %v609_v12  ;;  %2732 = vmatpush.xpose.msra.mxu3 %v715_v35  ;;  %v708_v12 = vld [vmem:[%s8797_s2 + $0x1180] sm:$0xff]  ;;  %v815_v21 = vld [vmem:[%s8797_s2 + $0x14d8] sm:$0xff] }
 0x23d   :  { %2550 = vmatmul.f32.gmra.mxu2 %v9040_v50  ;;  %v816_v35 = vld [vmem:[%s8797_s2 + $0x14e0] sm:$0xff] }
 0x23e   :  { %2610 = vmatpush.xpose.msra.mxu0 %v600_v60  ;;  %2651 = vmatpush.xpose.msra.mxu1 %v601_v53  ;;  %v2264_v50 = vpop.f32.mrf.mxu3  ;;  %v807_v53 = vld [vmem:[%s8797_s2 + $0x1498] sm:$0xff] }
 0x23f   :  { %v2284_v17 = vpop.f32.mrf.mxu0 }
 0x240   :  { %4129 = vmatpush.xpose.msk.msra.mxu2 %vm925_vm0, %v602_v43  ;;  %v2223_v60 = vpop.f32.mrf.mxu2  ;;  %2733 = vmatpush.xpose.msra.mxu3 %v708_v12  ;;  %v2325_v4 = vpop.f32.mrf.mxu1  ;;  %v2285_v40 = vadd.f32 %v2284_v17, %v6692_v3  ;;  %v808_v43 = vld [vmem:[%s8797_s2 + $0x14a0] sm:$0xff]  ;;  %v810_v17 = vld [vmem:[%s8797_s2 + $0x14b0] sm:$0xff]  ;;  %v9043_v3 = vld [vmem:[#allocation21_spill] sm:$0xff] }
 0x241   :  { %v2224_v36 = vadd.f32 %v2223_v60, %v2182_v37  ;;  %2611 = vmatmul.f32.vlgmr.msra.gmra.mxu0 %v9041_v44  ;;  %v809_v37 = vld [vmem:[%s8797_s2 + $0x14a8] sm:$0xff] }
 0x242   :  { %2759 = vmatpush.xpose.msrb.mxu0 %v814_v32  ;;  %2800 = vmatpush.xpose.msrb.mxu1 %v815_v21  ;;  %v2326_v12 = vadd.f32 %v2325_v4, %v2285_v40  ;;  %v801_v4 = vld [vmem:[%s8797_s2 + $0x1468] sm:$0xff]  ;;  %v802_v40 = vld [vmem:[%s8797_s2 + $0x1470] sm:$0xff] }
 0x243   :  { %v6932_v32 = vadd.f32 %v2264_v50, %v2224_v36  ;;  %v800_v36 = vld [vmem:[%s8797_s2 + $0x1460] sm:$0xff]  ;;  %2734 = vmatmul.f32.vlgmr.msra.gmra.mxu3 %v4496_v9 }
 0x244   :  { %2841 = vmatpush.xpose.msrb.mxu2 %v816_v35  ;;  %2882 = vmatpush.xpose.msrb.mxu3 %v817_v51  ;;  %v9042_v51 = vld [vmem:[#allocation20_spill] sm:$0xff]  ;;  %v803_v35 = vld [vmem:[%s8797_s2 + $0x1478] sm:$0xff] }
 0x245   :  { %2652 = vmatmul.f32.vlgmr.msra.gmra.mxu1 %v9042_v51  ;;  %4130 = vmatmul.msk.f32.vlgmr.msra.gmra.mxu2 %vm925_vm0, %v9043_v3 }
 0x246   :  { %2760 = vmatpush.xpose.msrb.mxu0 %v807_v53  ;;  %2801 = vmatpush.xpose.msrb.mxu1 %v808_v43  ;;  %v2407_v21 = vpop.f32.mrf.mxu3 }
 0x247   :  { %v2287_v53 = vpop.f32.mrf.mxu0 }
 0x248   :  { %2842 = vmatpush.xpose.msrb.mxu2 %v809_v37  ;;  %2883 = vmatpush.xpose.msrb.mxu3 %v810_v17  ;;  %v2366_v50 = vpop.f32.mrf.mxu2  ;;  %v2328_v43 = vpop.f32.mrf.mxu1  ;;  %v2288_v37 = vadd.f32 %v2287_v53, %v6726_v2  ;;  %v793_v17 = vld [vmem:[%s8797_s2 + $0x1428] sm:$0xff]  ;;  %v795_v2 = vld [vmem:[%s8797_s2 + $0x1438] sm:$0xff]  ;;  %v786_v53 = vld [vmem:[%s8797_s2 + $0x13f0] sm:$0xff] }
 0x249   :  { %v2367_v60 = vadd.f32 %v2366_v50, %v2326_v12  ;;  %2614 = vmatmul.f32.gmra.mxu0 %v8981_v62  ;;  %v794_v12 = vld [vmem:[%s8797_s2 + $0x1430] sm:$0xff]  ;;  %v787_v50 = vld [vmem:[%s8797_s2 + $0x13f8] sm:$0xff] }
 0x24a   :  { %2761 = vmatpush.xpose.msrb.mxu0 %v800_v36  ;;  %2802 = vmatpush.xpose.msrb.mxu1 %v801_v4  ;;  %v2329_v36 = vadd.f32 %v2328_v43, %v2288_v37  ;;  %v796_v4 = vld [vmem:[%s8797_s2 + $0x1440] sm:$0xff] }
 0x24b   :  { %v6958_v9 = vadd.f32 %v2407_v21, %v2367_v60  ;;  %2737 = vmatmul.f32.gmra.mxu3 %v4549_v25 }
 0x24c   :  { %2843 = vmatpush.xpose.msrb.mxu2 %v802_v40  ;;  %2884 = vmatpush.xpose.msrb.mxu3 %v803_v35 }
 0x24d   :  { %9044 = vst [vmem:[#allocation15_spill] sm:$0xff] %v6958_v9  ;;  %2655 = vmatmul.f32.gmra.mxu1 %v4990_v28  ;;  %4131 = vmatmul.msk.f32.gmra.mxu2 %vm925_vm0, %v4999_v61 }
 0x24e   :  { %2762 = vmatpush.xpose.msrb.mxu0 %v793_v17  ;;  %2803 = vmatpush.xpose.msrb.mxu1 %v794_v12  ;;  %v2410_v35 = vpop.f32.mrf.mxu3  ;;  %v789_v17 = vld [vmem:[%s8797_s2 + $0x1408] sm:$0xff] }
 0x24f   :  { %v2290_v60 = vpop.f32.mrf.mxu0 }
 0x250   :  { %v2369_v40 = vpop.f32.mrf.mxu2  ;;  %2844 = vmatpush.xpose.msrb.mxu2 %v795_v2  ;;  %2885 = vmatpush.xpose.msrb.mxu3 %v796_v4  ;;  %v2291_v43 = vadd.f32 %v2290_v60, %v6760_v46  ;;  %v2331_v37 = vpop.f32.mrf.mxu1  ;;  %v780_v46 = vld [vmem:[%s8797_s2 + $0x13c0] sm:$0xff]  ;;  %v779_v4 = vld [vmem:[%s8797_s2 + $0x13b8] sm:$0xff] }
 0x251   :  { %v2370_v21 = vadd.f32 %v2369_v40, %v2329_v36  ;;  %2617 = vmatmul.f32.gmra.mxu0 %v8982_v54  ;;  %v788_v36 = vld [vmem:[%s8797_s2 + $0x1400] sm:$0xff]  ;;  %v782_v40 = vld [vmem:[%s8797_s2 + $0x13d0] sm:$0xff] }
 0x252   :  { %2804 = vmatpush.xpose.msrb.mxu1 %v787_v50  ;;  %v2332_v2 = vadd.f32 %v2331_v37, %v2291_v43  ;;  %2763 = vmatpush.xpose.msrb.mxu0 %v786_v53  ;;  %v781_v50 = vld [vmem:[%s8797_s2 + $0x13c8] sm:$0xff]  ;;  %v772_v37 = vld [vmem:[%s8797_s2 + $0x1380] sm:$0xff] }
 0x253   :  { %v6987_v12 = vadd.f32 %v2410_v35, %v2370_v21  ;;  %2740 = vmatmul.f32.gmra.mxu3 %v4603_v41  ;;  %v773_v35 = vld [vmem:[%s8797_s2 + $0x1388] sm:$0xff] }
 0x254   :  { %2886 = vmatpush.xpose.msrb.mxu3 %v789_v17  ;;  %2845 = vmatpush.xpose.msrb.mxu2 %v788_v36 }
 0x255   :  { %9045 = vst [vmem:[#allocation19_spill] sm:$0xff] %v6987_v12  ;;  %2658 = vmatmul.f32.gmra.mxu1 %v5037_v57  ;;  %4132 = vmatmul.msk.f32.gmra.mxu2 %vm925_vm0, %v5046_v11 }
 0x256   :  { %2805 = vmatpush.xpose.msrb.mxu1 %v780_v46  ;;  %2764 = vmatpush.xpose.msrb.mxu0 %v779_v4  ;;  %v2413_v53 = vpop.f32.mrf.mxu3  ;;  %v775_v46 = vld [vmem:[%s8797_s2 + $0x1398] sm:$0xff] }
 0x257   :  { %v2293_v43 = vpop.f32.mrf.mxu0 }
 0x258   :  { %v2372_v21 = vpop.f32.mrf.mxu2  ;;  %2887 = vmatpush.xpose.msrb.mxu3 %v782_v40  ;;  %v2294_v17 = vadd.f32 %v2293_v43, %v6794_v1  ;;  %v2334_v36 = vpop.f32.mrf.mxu1  ;;  %2846 = vmatpush.xpose.msrb.mxu2 %v781_v50  ;;  %v766_v1 = vld [vmem:[%s8797_s2 + $0x1350] sm:$0xff]  ;;  %v765_v50 = vld [vmem:[%s8797_s2 + $0x1348] sm:$0xff] }
 0x259   :  { %v2373_v60 = vadd.f32 %v2372_v21, %v2332_v2  ;;  %2620 = vmatmul.f32.gmra.mxu0 %v8984_v13  ;;  %v774_v2 = vld [vmem:[%s8797_s2 + $0x1390] sm:$0xff]  ;;  %v768_v21 = vld [vmem:[%s8797_s2 + $0x1360] sm:$0xff] }
 0x25a   :  { %2806 = vmatpush.xpose.msrb.mxu1 %v773_v35  ;;  %v2335_v40 = vadd.f32 %v2334_v36, %v2294_v17  ;;  %2765 = vmatpush.xpose.msrb.mxu0 %v772_v37  ;;  %v767_v35 = vld [vmem:[%s8797_s2 + $0x1358] sm:$0xff]  ;;  %v758_v36 = vld [vmem:[%s8797_s2 + $0x1310] sm:$0xff] }
 0x25b   :  { %v7019_v4 = vadd.f32 %v2413_v53, %v2373_v60  ;;  %2743 = vmatmul.f32.gmra.mxu3 %v4657_v58  ;;  %v759_v53 = vld [vmem:[%s8797_s2 + $0x1318] sm:$0xff] }
 0x25c   :  { %2888 = vmatpush.xpose.msrb.mxu3 %v775_v46  ;;  %2847 = vmatpush.xpose.msrb.mxu2 %v774_v2 }
 0x25d   :  { %9046 = vst [vmem:[#allocation20_spill] sm:$0xff] %v7019_v4  ;;  %2661 = vmatmul.f32.gmra.mxu1 %v9018_v34  ;;  %4133 = vmatmul.msk.f32.gmra.mxu2 %vm925_vm0, %v5093_v48  ;;  %v870_v4 = vld [vmem:[%s8797_s2 + $0x1690] sm:$0xff] }
 0x25e   :  { %2807 = vmatpush.xpose.msrb.mxu1 %v766_v1  ;;  %2766 = vmatpush.xpose.msrb.mxu0 %v765_v50  ;;  %v2416_v37 = vpop.f32.mrf.mxu3  ;;  %v761_v1 = vld [vmem:[%s8797_s2 + $0x1328] sm:$0xff] }
 0x25f   :  { %v2296_v17 = vpop.f32.mrf.mxu0 }
 0x260   :  { %v2375_v60 = vpop.f32.mrf.mxu2  ;;  %2889 = vmatpush.xpose.msrb.mxu3 %v768_v21  ;;  %v2297_v46 = vadd.f32 %v2296_v17, %v6828_v23  ;;  %v2337_v2 = vpop.f32.mrf.mxu1  ;;  %2848 = vmatpush.xpose.msrb.mxu2 %v767_v35  ;;  %v752_v23 = vld [vmem:[%s8797_s2 + $0x12e0] sm:$0xff]  ;;  %v751_v35 = vld [vmem:[%s8797_s2 + $0x12d8] sm:$0xff] }
 0x261   :  { %v2376_v43 = vadd.f32 %v2375_v60, %v2335_v40  ;;  %2623 = vmatmul.f32.gmra.mxu0 %v8986_v7  ;;  %v760_v40 = vld [vmem:[%s8797_s2 + $0x1320] sm:$0xff]  ;;  %v754_v60 = vld [vmem:[%s8797_s2 + $0x12f0] sm:$0xff] }
 0x262   :  { %2808 = vmatpush.xpose.msrb.mxu1 %v759_v53  ;;  %v2338_v21 = vadd.f32 %v2337_v2, %v2297_v46  ;;  %2767 = vmatpush.xpose.msrb.mxu0 %v758_v36  ;;  %v753_v53 = vld [vmem:[%s8797_s2 + $0x12e8] sm:$0xff]  ;;  %v744_v2 = vld [vmem:[%s8797_s2 + $0x12a0] sm:$0xff] }
 0x263   :  { %v7051_v50 = vadd.f32 %v2416_v37, %v2376_v43  ;;  %2746 = vmatmul.f32.gmra.mxu3 %v4711_v18  ;;  %v745_v37 = vld [vmem:[%s8797_s2 + $0x12a8] sm:$0xff] }
 0x264   :  { %2890 = vmatpush.xpose.msrb.mxu3 %v761_v1  ;;  %2849 = vmatpush.xpose.msrb.mxu2 %v760_v40 }
 0x265   :  { %9047 = vst [vmem:[#allocation21_spill] sm:$0xff] %v7051_v50  ;;  %2664 = vmatmul.f32.gmra.mxu1 %v5131_v20  ;;  %4134 = vmatmul.msk.f32.gmra.mxu2 %vm925_vm0, %v5140_v33 }
 0x266   :  { %2809 = vmatpush.xpose.msrb.mxu1 %v752_v23  ;;  %2768 = vmatpush.xpose.msrb.mxu0 %v751_v35  ;;  %v2419_v36 = vpop.f32.mrf.mxu3  ;;  %v747_v23 = vld [vmem:[%s8797_s2 + $0x12b8] sm:$0xff] }
 0x267   :  { %v2299_v46 = vpop.f32.mrf.mxu0 }
 0x268   :  { %v2378_v43 = vpop.f32.mrf.mxu2  ;;  %2891 = vmatpush.xpose.msrb.mxu3 %v754_v60  ;;  %v2300_v1 = vadd.f32 %v2299_v46, %v6862_v47  ;;  %v2340_v40 = vpop.f32.mrf.mxu1  ;;  %2850 = vmatpush.xpose.msrb.mxu2 %v753_v53  ;;  %v738_v47 = vld [vmem:[%s8797_s2 + $0x1270] sm:$0xff]  ;;  %v737_v53 = vld [vmem:[%s8797_s2 + $0x1268] sm:$0xff] }
 0x269   :  { %v2379_v17 = vadd.f32 %v2378_v43, %v2338_v21  ;;  %2626 = vmatmul.f32.gmra.mxu0 %v8988_v14  ;;  %v746_v21 = vld [vmem:[%s8797_s2 + $0x12b0] sm:$0xff]  ;;  %v740_v43 = vld [vmem:[%s8797_s2 + $0x1280] sm:$0xff] }
 0x26a   :  { %2810 = vmatpush.xpose.msrb.mxu1 %v745_v37  ;;  %v2341_v60 = vadd.f32 %v2340_v40, %v2300_v1  ;;  %2769 = vmatpush.xpose.msrb.mxu0 %v744_v2  ;;  %v739_v37 = vld [vmem:[%s8797_s2 + $0x1278] sm:$0xff]  ;;  %v730_v40 = vld [vmem:[%s8797_s2 + $0x1230] sm:$0xff] }
 0x26b   :  { %v7083_v35 = vadd.f32 %v2419_v36, %v2379_v17  ;;  %2749 = vmatmul.f32.gmra.mxu3 %v4765_v38  ;;  %v731_v36 = vld [vmem:[%s8797_s2 + $0x1238] sm:$0xff] }
 0x26c   :  { %2892 = vmatpush.xpose.msrb.mxu3 %v747_v23  ;;  %2851 = vmatpush.xpose.msrb.mxu2 %v746_v21 }
 0x26d   :  { %9048 = vst [vmem:[#allocation70_spill] sm:$0xff] %v7083_v35  ;;  %2667 = vmatmul.f32.gmra.mxu1 %v5178_v15  ;;  %4135 = vmatmul.msk.f32.gmra.mxu2 %vm925_vm0, %v5187_v24  ;;  %v876_v35 = vld [vmem:[%s8797_s2 + $0x16c0] sm:$0xff] }
 0x26e   :  { %2811 = vmatpush.xpose.msrb.mxu1 %v738_v47  ;;  %2770 = vmatpush.xpose.msrb.mxu0 %v737_v53  ;;  %v2422_v2 = vpop.f32.mrf.mxu3  ;;  %v733_v47 = vld [vmem:[%s8797_s2 + $0x1248] sm:$0xff] }
 0x26f   :  { %v2302_v1 = vpop.f32.mrf.mxu0 }
 0x270   :  { %v2381_v17 = vpop.f32.mrf.mxu2  ;;  %2893 = vmatpush.xpose.msrb.mxu3 %v740_v43  ;;  %v2303_v23 = vadd.f32 %v2302_v1, %v6896_v63  ;;  %v2343_v21 = vpop.f32.mrf.mxu1  ;;  %2852 = vmatpush.xpose.msrb.mxu2 %v739_v37  ;;  %v724_v63 = vld [vmem:[%s8797_s2 + $0x1200] sm:$0xff]  ;;  %v723_v37 = vld [vmem:[%s8797_s2 + $0x11f8] sm:$0xff] }
 0x271   :  { %v2382_v46 = vadd.f32 %v2381_v17, %v2341_v60  ;;  %2629 = vmatmul.f32.gmra.mxu0 %v9023_v31  ;;  %v732_v60 = vld [vmem:[%s8797_s2 + $0x1240] sm:$0xff]  ;;  %v726_v17 = vld [vmem:[%s8797_s2 + $0x1210] sm:$0xff] }
 0x272   :  { %2812 = vmatpush.xpose.msrb.mxu1 %v731_v36  ;;  %v2344_v43 = vadd.f32 %v2343_v21, %v2303_v23  ;;  %2771 = vmatpush.xpose.msrb.mxu0 %v730_v40  ;;  %v725_v36 = vld [vmem:[%s8797_s2 + $0x1208] sm:$0xff]  ;;  %v716_v21 = vld [vmem:[%s8797_s2 + $0x11c0] sm:$0xff] }
 0x273   :  { %v7115_v53 = vadd.f32 %v2422_v2, %v2382_v46  ;;  %2752 = vmatmul.f32.gmra.mxu3 %v8974_v52  ;;  %v717_v2 = vld [vmem:[%s8797_s2 + $0x11c8] sm:$0xff] }
 0x274   :  { %2894 = vmatpush.xpose.msrb.mxu3 %v733_v47  ;;  %2853 = vmatpush.xpose.msrb.mxu2 %v732_v60 }
 0x275   :  { %9049 = vst [vmem:[#allocation71_spill] sm:$0xff] %v7115_v53  ;;  %2670 = vmatmul.f32.gmra.mxu1 %v9024_v27  ;;  %4136 = vmatmul.msk.f32.gmra.mxu2 %vm925_vm0, %v8973_v16 }
 0x276   :  { %2813 = vmatpush.xpose.msrb.mxu1 %v724_v63  ;;  %2772 = vmatpush.xpose.msrb.mxu0 %v723_v37  ;;  %v2425_v40 = vpop.f32.mrf.mxu3  ;;  %v719_v63 = vld [vmem:[%s8797_s2 + $0x11d8] sm:$0xff] }
 0x277   :  { %v2305_v23 = vpop.f32.mrf.mxu0 }
 0x278   :  { %v2384_v46 = vpop.f32.mrf.mxu2  ;;  %2895 = vmatpush.xpose.msrb.mxu3 %v726_v17  ;;  %v2306_v47 = vadd.f32 %v2305_v23, %v6932_v32  ;;  %v2346_v60 = vpop.f32.mrf.mxu1  ;;  %2854 = vmatpush.xpose.msrb.mxu2 %v725_v36  ;;  %v710_v32 = vld [vmem:[%s8797_s2 + $0x1190] sm:$0xff]  ;;  %v709_v36 = vld [vmem:[%s8797_s2 + $0x1188] sm:$0xff]  ;;  %v919_v23 = vld [vmem:[%s8797_s2 + $0x1818] sm:$0xff] }
 0x279   :  { %v2385_v1 = vadd.f32 %v2384_v46, %v2344_v43  ;;  %2632 = vmatmul.f32.gmra.mxu0 %v9027_v55  ;;  %v718_v43 = vld [vmem:[%s8797_s2 + $0x11d0] sm:$0xff]  ;;  %v819_v46 = vld [vmem:[%s8797_s2 + $0x14f8] sm:$0xff] }
 0x27a   :  { %2814 = vmatpush.xpose.msrb.mxu1 %v717_v2  ;;  %v2347_v17 = vadd.f32 %v2346_v60, %v2306_v47  ;;  %2773 = vmatpush.xpose.msrb.mxu0 %v716_v21  ;;  %v712_v2 = vld [vmem:[%s8797_s2 + $0x11a0] sm:$0xff] }
 0x27b   :  { %v7147_v37 = vadd.f32 %v2425_v40, %v2385_v1  ;;  %2755 = vmatmul.f32.gmra.mxu3 %v9038_v5  ;;  %v818_v1 = vld [vmem:[%s8797_s2 + $0x14f0] sm:$0xff]  ;;  %v711_v40 = vld [vmem:[%s8797_s2 + $0x1198] sm:$0xff] }
 0x27c   :  { %2896 = vmatpush.xpose.msrb.mxu3 %v719_v63  ;;  %2855 = vmatpush.xpose.msrb.mxu2 %v718_v43  ;;  %v918_v43 = vld [vmem:[%s8797_s2 + $0x1810] sm:$0xff] }
 0x27d   :  { %9050 = vst [vmem:[#allocation72_spill] sm:$0xff] %v7147_v37  ;;  %2673 = vmatmul.f32.gmra.mxu1 %v9028_v6  ;;  %4137 = vmatmul.msk.f32.gmra.mxu2 %vm925_vm0, %v5281_v56  ;;  %v811_v37 = vld [vmem:[%s8797_s2 + $0x14b8] sm:$0xff] }
 0x27e   :  { %2815 = vmatpush.xpose.msrb.mxu1 %v710_v32  ;;  %2774 = vmatpush.xpose.msrb.mxu0 %v709_v36  ;;  %v2428_v60 = vpop.f32.mrf.mxu3 }
 0x27f   :  { %v2448_v63 = vpop.f32.mrf.mxu0 }
 0x280   :  { %v2387_v21 = vpop.f32.mrf.mxu2  ;;  %2897 = vmatpush.xpose.msrb.mxu3 %v712_v2  ;;  %v2489_v32 = vpop.f32.mrf.mxu1  ;;  %2856 = vmatpush.xpose.msrb.mxu2 %v711_v40  ;;  %v912_v2 = vld [vmem:[%s8797_s2 + $0x17e0] sm:$0xff] }
 0x281   :  { %v2388_v47 = vadd.f32 %v2387_v21, %v2347_v17  ;;  %2775 = vmatmul.f32.vlgmr.msrb.gmra.mxu0 %v4499_v10  ;;  %v812_v17 = vld [vmem:[%s8797_s2 + $0x14c0] sm:$0xff] }
 0x282   :  { %4138 = vmatpush.xpose.msk.msra.mxu1 %vm925_vm0, %v819_v46  ;;  %2923 = vmatpush.xpose.msra.mxu0 %v818_v1  ;;  %v2490_v46 = vadd.f32 %v2489_v32, %v2448_v63  ;;  %v911_v1 = vld [vmem:[%s8797_s2 + $0x17d8] sm:$0xff]  ;;  %v804_v40 = vld [vmem:[%s8797_s2 + $0x1480] sm:$0xff] }
 0x283   :  { %v7189_v36 = vadd.f32 %v2428_v60, %v2388_v47  ;;  %2898 = vmatmul.f32.vlgmr.msrb.gmra.mxu3 %v9041_v44 }
 0x284   :  { %3047 = vmatpush.xpose.msra.mxu3 %v919_v23  ;;  %3006 = vmatpush.xpose.msra.mxu2 %v918_v43  ;;  %v805_v23 = vld [vmem:[%s8797_s2 + $0x1488] sm:$0xff]  ;;  %v904_v43 = vld [vmem:[%s8797_s2 + $0x17a0] sm:$0xff] }
 0x285   :  { %9051 = vst [vmem:[#allocation73_spill] sm:$0xff] %v7189_v36  ;;  %2816 = vmatmul.f32.vlgmr.msrb.gmra.mxu1 %v8977_v49  ;;  %2857 = vmatmul.f32.vlgmr.msrb.gmra.mxu2 %v8978_v8 }
 0x286   :  { %2924 = vmatpush.xpose.msra.mxu0 %v811_v37  ;;  %4139 = vmatpush.xpose.msk.msra.mxu1 %vm925_vm0, %v812_v17  ;;  %v905_v37 = vld [vmem:[%s8797_s2 + $0x17a8] sm:$0xff]  ;;  %v2571_v60 = vpop.f32.mrf.mxu3 }
 0x287   :  { %v2451_v63 = vpop.f32.mrf.mxu0  ;;  %v797_v17 = vld [vmem:[%s8797_s2 + $0x1448] sm:$0xff] }
 0x288   :  { %3048 = vmatpush.xpose.msra.mxu3 %v912_v2  ;;  %v2530_v21 = vpop.f32.mrf.mxu2  ;;  %3007 = vmatpush.xpose.msra.mxu2 %v911_v1  ;;  %v2492_v32 = vpop.f32.mrf.mxu1  ;;  %v898_v1 = vld [vmem:[%s8797_s2 + $0x1770] sm:$0xff] }
 0x289   :  { %v2531_v47 = vadd.f32 %v2530_v21, %v2490_v46  ;;  %2778 = vmatmul.f32.gmra.mxu0 %v4552_v26  ;;  %v798_v46 = vld [vmem:[%s8797_s2 + $0x1450] sm:$0xff]  ;;  %v2493_v21 = vadd.f32 %v2492_v32, %v2451_v63  ;;  %v783_v32 = vld [vmem:[%s8797_s2 + $0x13d8] sm:$0xff] }
 0x28a   :  { %2925 = vmatpush.xpose.msra.mxu0 %v804_v40  ;;  %4140 = vmatpush.xpose.msk.msra.mxu1 %vm925_vm0, %v805_v23  ;;  %v897_v40 = vld [vmem:[%s8797_s2 + $0x1768] sm:$0xff]  ;;  %v790_v23 = vld [vmem:[%s8797_s2 + $0x1410] sm:$0xff] }
 0x28b   :  { %v7217_v2 = vadd.f32 %v2571_v60, %v2531_v47  ;;  %2901 = vmatmul.f32.gmra.mxu3 %v8981_v62  ;;  %v891_v60 = vld [vmem:[%s8797_s2 + $0x1738] sm:$0xff] }
 0x28c   :  { %3049 = vmatpush.xpose.msra.mxu3 %v905_v37  ;;  %3008 = vmatpush.xpose.msra.mxu2 %v904_v43  ;;  %v791_v37 = vld [vmem:[%s8797_s2 + $0x1418] sm:$0xff] }
 0x28d   :  { %2819 = vmatmul.f32.gmra.mxu1 %v4561_v29  ;;  %2860 = vmatmul.f32.gmra.mxu2 %v4564_v30 }
 0x28e   :  { %2926 = vmatpush.xpose.msra.mxu0 %v797_v17  ;;  %4141 = vmatpush.xpose.msk.msra.mxu1 %vm925_vm0, %v798_v46  ;;  %v2574_v17 = vpop.f32.mrf.mxu3  ;;  %v890_v46 = vld [vmem:[%s8797_s2 + $0x1730] sm:$0xff] }
 0x28f   :  { %v2454_v36 = vpop.f32.mrf.mxu0 }
 0x290   :  { %3050 = vmatpush.xpose.msra.mxu3 %v898_v1  ;;  %v2533_v47 = vpop.f32.mrf.mxu2  ;;  %3009 = vmatpush.xpose.msra.mxu2 %v897_v40  ;;  %v2495_v63 = vpop.f32.mrf.mxu1  ;;  %v784_v40 = vld [vmem:[%s8797_s2 + $0x13e0] sm:$0xff] }
 0x291   :  { %v2534_v43 = vadd.f32 %v2533_v47, %v2493_v21  ;;  %2781 = vmatmul.f32.gmra.mxu0 %v4606_v42  ;;  %v9052_v21 = vld [vmem:[#allocation5_spill] sm:$0xff]  ;;  %v776_v47 = vld [vmem:[%s8797_s2 + $0x13a0] sm:$0xff] }
 0x292   :  { %2927 = vmatpush.xpose.msra.mxu0 %v790_v23  ;;  %4142 = vmatpush.xpose.msk.msra.mxu1 %vm925_vm0, %v791_v37  ;;  %v884_v23 = vld [vmem:[%s8797_s2 + $0x1700] sm:$0xff]  ;;  %v883_v37 = vld [vmem:[%s8797_s2 + $0x16f8] sm:$0xff] }
 0x293   :  { %v7249_v1 = vadd.f32 %v2574_v17, %v2534_v43  ;;  %2904 = vmatmul.f32.gmra.mxu3 %v8982_v54  ;;  %v777_v17 = vld [vmem:[%s8797_s2 + $0x13a8] sm:$0xff] }
 0x294   :  { %3051 = vmatpush.xpose.msra.mxu3 %v891_v60  ;;  %3010 = vmatpush.xpose.msra.mxu2 %v890_v46  ;;  %v2496_v60 = vadd.f32 %v2495_v63, %v2454_v36  ;;  %v769_v36 = vld [vmem:[%s8797_s2 + $0x1368] sm:$0xff] }
 0x295   :  { %2822 = vmatmul.f32.gmra.mxu1 %v4615_v45  ;;  %2863 = vmatmul.f32.gmra.mxu2 %v9052_v21 }
 0x296   :  { %2928 = vmatpush.xpose.msra.mxu0 %v783_v32  ;;  %4143 = vmatpush.xpose.msk.msra.mxu1 %vm925_vm0, %v784_v40  ;;  %v2577_v32 = vpop.f32.mrf.mxu3  ;;  %v770_v40 = vld [vmem:[%s8797_s2 + $0x1370] sm:$0xff] }
 0x297   :  { %v2457_v53 = vpop.f32.mrf.mxu0 }
 0x298   :  { %3052 = vmatpush.xpose.msra.mxu3 %v884_v23  ;;  %v2536_v43 = vpop.f32.mrf.mxu2  ;;  %3011 = vmatpush.xpose.msra.mxu2 %v883_v37  ;;  %v2498_v50 = vpop.f32.mrf.mxu1  ;;  %v877_v23 = vld [vmem:[%s8797_s2 + $0x16c8] sm:$0xff]  ;;  %v9053_v37 = vld [vmem:[#allocation6_spill] sm:$0xff] }
 0x299   :  { %v2537_v46 = vadd.f32 %v2536_v43, %v2496_v60  ;;  %2784 = vmatmul.f32.gmra.mxu0 %v4660_v59  ;;  %v2499_v60 = vadd.f32 %v2498_v50, %v2457_v53  ;;  %v755_v50 = vld [vmem:[%s8797_s2 + $0x12f8] sm:$0xff] }
 0x29a   :  { %2929 = vmatpush.xpose.msra.mxu0 %v776_v47  ;;  %4144 = vmatpush.xpose.msk.msra.mxu1 %vm925_vm0, %v777_v17  ;;  %v869_v47 = vld [vmem:[%s8797_s2 + $0x1688] sm:$0xff]  ;;  %v763_v17 = vld [vmem:[%s8797_s2 + $0x1338] sm:$0xff] }
 0x29b   :  { %v7277_v63 = vadd.f32 %v2577_v32, %v2537_v46  ;;  %2907 = vmatmul.f32.gmra.mxu3 %v8984_v13 }
 0x29c   :  { %3012 = vmatpush.xpose.msra.mxu2 %v876_v35  ;;  %v762_v35 = vld [vmem:[%s8797_s2 + $0x1330] sm:$0xff]  ;;  %3053 = vmatpush.xpose.msra.mxu3 %v877_v23  ;;  %v756_v23 = vld [vmem:[%s8797_s2 + $0x1300] sm:$0xff] }
 0x29d   :  { %2825 = vmatmul.f32.gmra.mxu1 %v4669_v0  ;;  %2866 = vmatmul.f32.gmra.mxu2 %v9053_v37 }
 0x29e   :  { %2930 = vmatpush.xpose.msra.mxu0 %v769_v36  ;;  %4145 = vmatpush.xpose.msk.msra.mxu1 %vm925_vm0, %v770_v40  ;;  %v2580_v32 = vpop.f32.mrf.mxu3  ;;  %v862_v40 = vld [vmem:[%s8797_s2 + $0x1650] sm:$0xff] }
 0x29f   :  { %v2460_v36 = vpop.f32.mrf.mxu0 }
 0x2a0   :  { %v2539_v43 = vpop.f32.mrf.mxu2  ;;  %3013 = vmatpush.xpose.msra.mxu2 %v869_v47  ;;  %v2501_v12 = vpop.f32.mrf.mxu1  ;;  %3054 = vmatpush.xpose.msra.mxu3 %v870_v4  ;;  %v9054_v47 = vld [vmem:[#allocation8_spill] sm:$0xff]  ;;  %v855_v4 = vld [vmem:[%s8797_s2 + $0x1618] sm:$0xff] }
 0x2a1   :  { %v2540_v46 = vadd.f32 %v2539_v43, %v2499_v60  ;;  %2787 = vmatmul.f32.gmra.mxu0 %v4714_v19  ;;  %v748_v60 = vld [vmem:[%s8797_s2 + $0x12c0] sm:$0xff]  ;;  %v2502_v43 = vadd.f32 %v2501_v12, %v2460_v36 }
 0x2a2   :  { %2931 = vmatpush.xpose.msra.mxu0 %v762_v35  ;;  %4146 = vmatpush.xpose.msk.msra.mxu1 %vm925_vm0, %v763_v17  ;;  %v863_v35 = vld [vmem:[%s8797_s2 + $0x1658] sm:$0xff]  ;;  %v856_v12 = vld [vmem:[%s8797_s2 + $0x1620] sm:$0xff] }
 0x2a3   :  { %v7306_v53 = vadd.f32 %v2580_v32, %v2540_v46  ;;  %2910 = vmatmul.f32.gmra.mxu3 %v8986_v7  ;;  %v749_v46 = vld [vmem:[%s8797_s2 + $0x12c8] sm:$0xff] }
 0x2a4   :  { %3014 = vmatpush.xpose.msra.mxu2 %v862_v40  ;;  %3055 = vmatpush.xpose.msra.mxu3 %v863_v35  ;;  %v848_v35 = vld [vmem:[%s8797_s2 + $0x15e0] sm:$0xff] }
 0x2a5   :  { %2828 = vmatmul.f32.gmra.mxu1 %v4723_v22  ;;  %2869 = vmatmul.f32.gmra.mxu2 %v9054_v47 }
 0x2a6   :  { %2932 = vmatpush.xpose.msra.mxu0 %v755_v50  ;;  %4147 = vmatpush.xpose.msk.msra.mxu1 %vm925_vm0, %v756_v23  ;;  %v2583_v50 = vpop.f32.mrf.mxu3  ;;  %v741_v23 = vld [vmem:[%s8797_s2 + $0x1288] sm:$0xff] }
 0x2a7   :  { %v2463_v40 = vpop.f32.mrf.mxu0 }
 0x2a8   :  { %v2542_v17 = vpop.f32.mrf.mxu2  ;;  %v2504_v36 = vpop.f32.mrf.mxu1  ;;  %3015 = vmatpush.xpose.msra.mxu2 %v855_v4  ;;  %3056 = vmatpush.xpose.msra.mxu3 %v856_v12  ;;  %v9056_v4 = vld [vmem:[#allocation10_spill] sm:$0xff] }
 0x2a9   :  { %v2543_v32 = vadd.f32 %v2542_v17, %v2502_v43  ;;  %2790 = vmatmul.f32.gmra.mxu0 %v4768_v39  ;;  %v742_v43 = vld [vmem:[%s8797_s2 + $0x1290] sm:$0xff]  ;;  %v849_v17 = vld [vmem:[%s8797_s2 + $0x15e8] sm:$0xff] }
 0x2aa   :  { %2933 = vmatpush.xpose.msra.mxu0 %v748_v60  ;;  %4148 = vmatpush.xpose.msk.msra.mxu1 %vm925_vm0, %v749_v46  ;;  %v9055_v60 = vld [vmem:[#allocation9_spill] sm:$0xff]  ;;  %v734_v46 = vld [vmem:[%s8797_s2 + $0x1250] sm:$0xff] }
 0x2ab   :  { %v7338_v9 = vadd.f32 %v2583_v50, %v2543_v32  ;;  %2913 = vmatmul.f32.gmra.mxu3 %v8988_v14  ;;  %v2505_v32 = vadd.f32 %v2504_v36, %v2463_v40  ;;  %v841_v50 = vld [vmem:[%s8797_s2 + $0x15a8] sm:$0xff]  ;;  %v842_v40 = vld [vmem:[%s8797_s2 + $0x15b0] sm:$0xff] }
 0x2ac   :  { %3016 = vmatpush.xpose.msra.mxu2 %v848_v35  ;;  %3057 = vmatpush.xpose.msra.mxu3 %v849_v17  ;;  %v9057_v17 = vld [vmem:[#allocation12_spill] sm:$0xff] }
 0x2ad   :  { %2831 = vmatmul.f32.gmra.mxu1 %v9055_v60  ;;  %2872 = vmatmul.f32.gmra.mxu2 %v9056_v4 }
 0x2ae   :  { %2934 = vmatpush.xpose.msra.mxu0 %v741_v23  ;;  %4149 = vmatpush.xpose.msk.msra.mxu1 %vm925_vm0, %v742_v43  ;;  %v735_v23 = vld [vmem:[%s8797_s2 + $0x1258] sm:$0xff]  ;;  %v2586_v14 = vpop.f32.mrf.mxu3 }
 0x2af   :  { %v2466_v35 = vpop.f32.mrf.mxu0  ;;  %v727_v43 = vld [vmem:[%s8797_s2 + $0x1218] sm:$0xff] }
 0x2b0   :  { %v2545_v12 = vpop.f32.mrf.mxu2  ;;  %v2507_v36 = vpop.f32.mrf.mxu1  ;;  %3017 = vmatpush.xpose.msra.mxu2 %v841_v50  ;;  %3058 = vmatpush.xpose.msra.mxu3 %v842_v40  ;;  %v728_v50 = vld [vmem:[%s8797_s2 + $0x1220] sm:$0xff]  ;;  %v827_v40 = vld [vmem:[%s8797_s2 + $0x1538] sm:$0xff] }
 0x2b1   :  { %v2546_v4 = vadd.f32 %v2545_v12, %v2505_v32  ;;  %2793 = vmatmul.f32.gmra.mxu0 %v9057_v17  ;;  %v9058_v32 = vld [vmem:[#allocation13_spill] sm:$0xff]  ;;  %v9059_v12 = vld [vmem:[#allocation14_spill] sm:$0xff] }
 0x2b2   :  { %2935 = vmatpush.xpose.msra.mxu0 %v734_v46  ;;  %4150 = vmatpush.xpose.msk.msra.mxu1 %vm925_vm0, %v735_v23  ;;  %v834_v46 = vld [vmem:[%s8797_s2 + $0x1570] sm:$0xff]  ;;  %v2508_v23 = vadd.f32 %v2507_v36, %v2466_v35  ;;  %v828_v35 = vld [vmem:[%s8797_s2 + $0x1540] sm:$0xff] }
 0x2b3   :  { %v7370_v60 = vadd.f32 %v2586_v14, %v2546_v4  ;;  %v835_v14 = vld [vmem:[%s8797_s2 + $0x1578] sm:$0xff]  ;;  %2916 = vmatmul.f32.gmra.mxu3 %v9023_v31  ;;  %v720_v4 = vld [vmem:[%s8797_s2 + $0x11e0] sm:$0xff] }
 0x2b4   :  { %3018 = vmatpush.xpose.msra.mxu2 %v834_v46  ;;  %3059 = vmatpush.xpose.msra.mxu3 %v835_v14  ;;  %v9060_v14 = vld [vmem:[#allocation16_spill] sm:$0xff] }
 0x2b5   :  { %2834 = vmatmul.f32.gmra.mxu1 %v9058_v32  ;;  %2875 = vmatmul.f32.gmra.mxu2 %v9059_v12 }
 0x2b6   :  { %2936 = vmatpush.xpose.msra.mxu0 %v727_v43  ;;  %4151 = vmatpush.xpose.msk.msra.mxu1 %vm925_vm0, %v728_v50  ;;  %v721_v43 = vld [vmem:[%s8797_s2 + $0x11e8] sm:$0xff]  ;;  %v2589_v31 = vpop.f32.mrf.mxu3 }
 0x2b7   :  { %v2469_v46 = vpop.f32.mrf.mxu0  ;;  %v713_v50 = vld [vmem:[%s8797_s2 + $0x11a8] sm:$0xff] }
 0x2b8   :  { %v2548_v12 = vpop.f32.mrf.mxu2  ;;  %v2510_v36 = vpop.f32.mrf.mxu1  ;;  %3019 = vmatpush.xpose.msra.mxu2 %v827_v40  ;;  %3060 = vmatpush.xpose.msra.mxu3 %v828_v35  ;;  %v821_v40 = vld [vmem:[%s8797_s2 + $0x1508] sm:$0xff] }
 0x2b9   :  { %v2549_v32 = vadd.f32 %v2548_v12, %v2508_v23  ;;  %2796 = vmatmul.f32.gmra.mxu0 %v9060_v14  ;;  %v820_v12 = vld [vmem:[%s8797_s2 + $0x1500] sm:$0xff]  ;;  %v714_v23 = vld [vmem:[%s8797_s2 + $0x11b0] sm:$0xff]  ;;  %v921_v35 = vld [vmem:[%s8797_s2 + $0x1828] sm:$0xff] }
 0x2ba   :  { %2937 = vmatpush.xpose.msra.mxu0 %v720_v4  ;;  %4152 = vmatpush.xpose.msk.msra.mxu1 %vm925_vm0, %v721_v43  ;;  %v9061_v4 = vld [vmem:[#allocation17_spill] sm:$0xff]  ;;  %v922_v43 = vld [vmem:[%s8797_s2 + $0x1830] sm:$0xff] }
 0x2bb   :  { %v7402_v7 = vadd.f32 %v2589_v31, %v2549_v32  ;;  %v920_v31 = vld [vmem:[%s8797_s2 + $0x1820] sm:$0xff]  ;;  %2919 = vmatmul.f32.gmra.mxu3 %v9027_v55 }
 0x2bc   :  { %v9062_v32 = vld [vmem:[#allocation18_spill] sm:$0xff]  ;;  %3020 = vmatpush.xpose.msra.mxu2 %v820_v12  ;;  %3061 = vmatpush.xpose.msra.mxu3 %v821_v40  ;;  %v913_v12 = vld [vmem:[%s8797_s2 + $0x17e8] sm:$0xff] }
 0x2bd   :  { %2837 = vmatmul.f32.gmra.mxu1 %v9061_v4  ;;  %2878 = vmatmul.f32.gmra.mxu2 %v9062_v32  ;;  %v923_v32 = vld [vmem:[%s8797_s2 + $0x1838] sm:$0xff] }
 0x2be   :  { %2938 = vmatpush.xpose.msra.mxu0 %v713_v50  ;;  %v2511_v50 = vadd.f32 %v2510_v36, %v2469_v46  ;;  %4153 = vmatpush.xpose.msk.msra.mxu1 %vm925_vm0, %v714_v23  ;;  %v2592_v22 = vpop.f32.mrf.mxu3  ;;  %v914_v46 = vld [vmem:[%s8797_s2 + $0x17f0] sm:$0xff] }
 0x2bf   :  { %v2612_v13 = vpop.f32.mrf.mxu0 }
 0x2c0   :  { %v2551_v4 = vpop.f32.mrf.mxu2  ;;  %3170 = vmatpush.xpose.msrb.mxu2 %v922_v43  ;;  %3211 = vmatpush.xpose.msrb.mxu3 %v923_v32  ;;  %v2613_v55 = vadd.f32 %v2612_v13, %v7217_v2  ;;  %v916_v13 = vld [vmem:[%s8797_s2 + $0x1800] sm:$0xff]  ;;  %v899_v43 = vld [vmem:[%s8797_s2 + $0x1778] sm:$0xff] }
 0x2c1   :  { %v2552_v47 = vadd.f32 %v2551_v4, %v2511_v50  ;;  %2939 = vmatmul.f32.vlgmr.msra.gmra.mxu0 %v9042_v51  ;;  %v915_v4 = vld [vmem:[%s8797_s2 + $0x17f8] sm:$0xff]  ;;  %v9063_v2 = vld [vmem:[#allocation2_spill] sm:$0xff] }
 0x2c2   :  { %3088 = vmatpush.xpose.msrb.mxu0 %v920_v31  ;;  %3129 = vmatpush.xpose.msrb.mxu1 %v921_v35  ;;  %v2653_v37 = vpop.f32.mrf.mxu1  ;;  %v909_v31 = vld [vmem:[%s8797_s2 + $0x17c8] sm:$0xff] }
 0x2c3   :  { %v7438_v36 = vadd.f32 %v2592_v22, %v2552_v47  ;;  %v2654_v23 = vadd.f32 %v2653_v37, %v2613_v55  ;;  %v906_v22 = vld [vmem:[%s8797_s2 + $0x17b0] sm:$0xff]  ;;  %3062 = vmatmul.f32.vlgmr.msra.gmra.mxu3 %v4499_v10  ;;  %v907_v55 = vld [vmem:[%s8797_s2 + $0x17b8] sm:$0xff]  ;;  %v908_v37 = vld [vmem:[%s8797_s2 + $0x17c0] sm:$0xff] }
 0x2c4   :  { %3171 = vmatpush.xpose.msrb.mxu2 %v915_v4  ;;  %3212 = vmatpush.xpose.msrb.mxu3 %v916_v13  ;;  %v892_v4 = vld [vmem:[%s8797_s2 + $0x1740] sm:$0xff]  ;;  %v894_v13 = vld [vmem:[%s8797_s2 + $0x1750] sm:$0xff] }
 0x2c5   :  { %4154 = vmatmul.msk.f32.vlgmr.msra.gmra.mxu1 %vm925_vm0, %v9043_v3  ;;  %3021 = vmatmul.f32.vlgmr.msra.gmra.mxu2 %v9063_v2 }
 0x2c6   :  { %3089 = vmatpush.xpose.msrb.mxu0 %v913_v12  ;;  %3130 = vmatpush.xpose.msrb.mxu1 %v914_v46  ;;  %v7465_v40 = vpop.f32.mrf.mxu3  ;;  %v901_v12 = vld [vmem:[%s8797_s2 + $0x1788] sm:$0xff]  ;;  %v900_v46 = vld [vmem:[%s8797_s2 + $0x1780] sm:$0xff] }
 0x2c7   :  { %v2615_v10 = vpop.f32.mrf.mxu0 }
 0x2c8   :  { %v2694_v47 = vpop.f32.mrf.mxu2  ;;  %v2616_v35 = vadd.f32 %v2615_v10, %v7249_v1  ;;  %3172 = vmatpush.xpose.msrb.mxu2 %v908_v37  ;;  %3213 = vmatpush.xpose.msrb.mxu3 %v909_v31  ;;  %v902_v1 = vld [vmem:[%s8797_s2 + $0x1790] sm:$0xff]  ;;  %v885_v10 = vld [vmem:[%s8797_s2 + $0x1708] sm:$0xff] }
 0x2c9   :  { %v7463_v32 = vadd.f32 %v2694_v47, %v2654_v23  ;;  %2942 = vmatmul.f32.gmra.mxu0 %v4990_v28 }
 0x2ca   :  { %3090 = vmatpush.xpose.msrb.mxu0 %v906_v22  ;;  %3131 = vmatpush.xpose.msrb.mxu1 %v907_v55  ;;  %v2656_v50 = vpop.f32.mrf.mxu1 }
 0x2cb   :  { %v2657_v23 = vadd.f32 %v2656_v50, %v2616_v35  ;;  %3065 = vmatmul.f32.gmra.mxu3 %v4552_v26  ;;  %v895_v26 = vld [vmem:[%s8797_s2 + $0x1758] sm:$0xff]  ;;  %v888_v50 = vld [vmem:[%s8797_s2 + $0x1720] sm:$0xff] }
 0x2cc   :  { %3173 = vmatpush.xpose.msrb.mxu2 %v901_v12  ;;  %3214 = vmatpush.xpose.msrb.mxu3 %v902_v1  ;;  %v878_v12 = vld [vmem:[%s8797_s2 + $0x16d0] sm:$0xff] }
 0x2cd   :  { %4155 = vmatmul.msk.f32.gmra.mxu1 %vm925_vm0, %v4999_v61  ;;  %3024 = vmatmul.f32.gmra.mxu2 %v4549_v25  ;;  %v893_v25 = vld [vmem:[%s8797_s2 + $0x1748] sm:$0xff] }
 0x2ce   :  { %3091 = vmatpush.xpose.msrb.mxu0 %v899_v43  ;;  %3132 = vmatpush.xpose.msrb.mxu1 %v900_v46  ;;  %v7496_v55 = vpop.f32.mrf.mxu3  ;;  %v887_v43 = vld [vmem:[%s8797_s2 + $0x1718] sm:$0xff]  ;;  %v880_v46 = vld [vmem:[%s8797_s2 + $0x16e0] sm:$0xff] }
 0x2cf   :  { %v2618_v37 = vpop.f32.mrf.mxu0 }
 0x2d0   :  { %v2697_v2 = vpop.f32.mrf.mxu2  ;;  %v2619_v47 = vadd.f32 %v2618_v37, %v7277_v63  ;;  %3174 = vmatpush.xpose.msrb.mxu2 %v894_v13  ;;  %3215 = vmatpush.xpose.msrb.mxu3 %v895_v26  ;;  %v886_v63 = vld [vmem:[%s8797_s2 + $0x1710] sm:$0xff]  ;;  %v881_v13 = vld [vmem:[%s8797_s2 + $0x16e8] sm:$0xff]  ;;  %v871_v37 = vld [vmem:[%s8797_s2 + $0x1698] sm:$0xff] }
 0x2d1   :  { %v7494_v22 = vadd.f32 %v2697_v2, %v2657_v23  ;;  %2945 = vmatmul.f32.gmra.mxu0 %v5037_v57  ;;  %v873_v26 = vld [vmem:[%s8797_s2 + $0x16a8] sm:$0xff] }
 0x2d2   :  { %3092 = vmatpush.xpose.msrb.mxu0 %v892_v4  ;;  %v2659_v31 = vpop.f32.mrf.mxu1  ;;  %3133 = vmatpush.xpose.msrb.mxu1 %v893_v25 }
 0x2d3   :  { %v2660_v35 = vadd.f32 %v2659_v31, %v2619_v47  ;;  %3068 = vmatmul.f32.gmra.mxu3 %v4606_v42  ;;  %v874_v31 = vld [vmem:[%s8797_s2 + $0x16b0] sm:$0xff] }
 0x2d4   :  { %3175 = vmatpush.xpose.msrb.mxu2 %v887_v43  ;;  %3216 = vmatpush.xpose.msrb.mxu3 %v888_v50  ;;  %v866_v43 = vld [vmem:[%s8797_s2 + $0x1670] sm:$0xff] }
 0x2d5   :  { %4156 = vmatmul.msk.f32.gmra.mxu1 %vm925_vm0, %v5046_v11  ;;  %3027 = vmatmul.f32.gmra.mxu2 %v4603_v41  ;;  %v879_v41 = vld [vmem:[%s8797_s2 + $0x16d8] sm:$0xff] }
 0x2d6   :  { %3093 = vmatpush.xpose.msrb.mxu0 %v885_v10  ;;  %3134 = vmatpush.xpose.msrb.mxu1 %v886_v63  ;;  %v7530_v23 = vpop.f32.mrf.mxu3  ;;  %v864_v10 = vld [vmem:[%s8797_s2 + $0x1660] sm:$0xff] }
 0x2d7   :  { %v2621_v42 = vpop.f32.mrf.mxu0 }
 0x2d8   :  { %v2700_v1 = vpop.f32.mrf.mxu2  ;;  %v2622_v2 = vadd.f32 %v2621_v42, %v7306_v53  ;;  %3176 = vmatpush.xpose.msrb.mxu2 %v880_v46  ;;  %3217 = vmatpush.xpose.msrb.mxu3 %v881_v13  ;;  %v872_v53 = vld [vmem:[%s8797_s2 + $0x16a0] sm:$0xff]  ;;  %v859_v42 = vld [vmem:[%s8797_s2 + $0x1638] sm:$0xff] }
 0x2d9   :  { %v7528_v4 = vadd.f32 %v2700_v1, %v2660_v35  ;;  %2948 = vmatmul.f32.gmra.mxu0 %v9018_v34 }
 0x2da   :  { %3094 = vmatpush.xpose.msrb.mxu0 %v878_v12  ;;  %v2662_v25 = vpop.f32.mrf.mxu1  ;;  %3135 = vmatpush.xpose.msrb.mxu1 %v879_v41  ;;  %v867_v12 = vld [vmem:[%s8797_s2 + $0x1678] sm:$0xff]  ;;  %v857_v41 = vld [vmem:[%s8797_s2 + $0x1628] sm:$0xff] }
 0x2db   :  { %v2663_v47 = vadd.f32 %v2662_v25, %v2622_v2  ;;  %3071 = vmatmul.f32.gmra.mxu3 %v4660_v59  ;;  %v860_v2 = vld [vmem:[%s8797_s2 + $0x1640] sm:$0xff]  ;;  %v850_v25 = vld [vmem:[%s8797_s2 + $0x15f0] sm:$0xff] }
 0x2dc   :  { %3177 = vmatpush.xpose.msrb.mxu2 %v873_v26  ;;  %3218 = vmatpush.xpose.msrb.mxu3 %v874_v31  ;;  %v853_v31 = vld [vmem:[%s8797_s2 + $0x1608] sm:$0xff] }
 0x2dd   :  { %4157 = vmatmul.msk.f32.gmra.mxu1 %vm925_vm0, %v5093_v48  ;;  %3030 = vmatmul.f32.gmra.mxu2 %v4657_v58  ;;  %v865_v58 = vld [vmem:[%s8797_s2 + $0x1668] sm:$0xff] }
 0x2de   :  { %3095 = vmatpush.xpose.msrb.mxu0 %v871_v37  ;;  %3136 = vmatpush.xpose.msrb.mxu1 %v872_v53  ;;  %v7564_v50 = vpop.f32.mrf.mxu3  ;;  %v852_v37 = vld [vmem:[%s8797_s2 + $0x1600] sm:$0xff] }
 0x2df   :  { %v2624_v59 = vpop.f32.mrf.mxu0 }
 0x2e0   :  { %v2703_v35 = vpop.f32.mrf.mxu2  ;;  %v2625_v46 = vadd.f32 %v2624_v59, %v7338_v9  ;;  %3178 = vmatpush.xpose.msrb.mxu2 %v866_v43  ;;  %3219 = vmatpush.xpose.msrb.mxu3 %v867_v12  ;;  %v858_v9 = vld [vmem:[%s8797_s2 + $0x1630] sm:$0xff] }
 0x2e1   :  { %v7562_v63 = vadd.f32 %v2703_v35, %v2663_v47  ;;  %2951 = vmatmul.f32.gmra.mxu0 %v5131_v20  ;;  %v843_v35 = vld [vmem:[%s8797_s2 + $0x15b8] sm:$0xff]  ;;  %v846_v12 = vld [vmem:[%s8797_s2 + $0x15d0] sm:$0xff] }
 0x2e2   :  { %3096 = vmatpush.xpose.msrb.mxu0 %v864_v10  ;;  %v2665_v1 = vpop.f32.mrf.mxu1  ;;  %3137 = vmatpush.xpose.msrb.mxu1 %v865_v58  ;;  %v845_v58 = vld [vmem:[%s8797_s2 + $0x15c8] sm:$0xff] }
 0x2e3   :  { %9064 = vst [vmem:[#allocation5_spill] sm:$0xff] %v7562_v63  ;;  %v2666_v13 = vadd.f32 %v2665_v1, %v2625_v46  ;;  %3074 = vmatmul.f32.gmra.mxu3 %v4714_v19  ;;  %v836_v46 = vld [vmem:[%s8797_s2 + $0x1580] sm:$0xff]  ;;  %v838_v1 = vld [vmem:[%s8797_s2 + $0x1590] sm:$0xff] }
 0x2e4   :  { %3179 = vmatpush.xpose.msrb.mxu2 %v859_v42  ;;  %3220 = vmatpush.xpose.msrb.mxu3 %v860_v2 }
 0x2e5   :  { %4158 = vmatmul.msk.f32.gmra.mxu1 %vm925_vm0, %v5140_v33  ;;  %3033 = vmatmul.f32.gmra.mxu2 %v4711_v18  ;;  %v851_v18 = vld [vmem:[%s8797_s2 + $0x15f8] sm:$0xff] }
 0x2e6   :  { %3097 = vmatpush.xpose.msrb.mxu0 %v857_v41  ;;  %3138 = vmatpush.xpose.msrb.mxu1 %v858_v9  ;;  %v7598_v53 = vpop.f32.mrf.mxu3  ;;  %v839_v9 = vld [vmem:[%s8797_s2 + $0x1598] sm:$0xff] }
 0x2e7   :  { %v2627_v19 = vpop.f32.mrf.mxu0 }
 0x2e8   :  { %v2706_v26 = vpop.f32.mrf.mxu2  ;;  %v2628_v10 = vadd.f32 %v2627_v19, %v7370_v60  ;;  %3180 = vmatpush.xpose.msrb.mxu2 %v852_v37  ;;  %3221 = vmatpush.xpose.msrb.mxu3 %v853_v31  ;;  %v844_v60 = vld [vmem:[%s8797_s2 + $0x15c0] sm:$0xff]  ;;  %v829_v37 = vld [vmem:[%s8797_s2 + $0x1548] sm:$0xff]  ;;  %v822_v31 = vld [vmem:[%s8797_s2 + $0x1510] sm:$0xff] }
 0x2e9   :  { %v7596_v47 = vadd.f32 %v2706_v26, %v2666_v13  ;;  %2954 = vmatmul.f32.gmra.mxu0 %v5178_v15  ;;  %v831_v26 = vld [vmem:[%s8797_s2 + $0x1558] sm:$0xff]  ;;  %v832_v19 = vld [vmem:[%s8797_s2 + $0x1560] sm:$0xff] }
 0x2ea   :  { %3098 = vmatpush.xpose.msrb.mxu0 %v850_v25  ;;  %v2668_v43 = vpop.f32.mrf.mxu1  ;;  %3139 = vmatpush.xpose.msrb.mxu1 %v851_v18 }
 0x2eb   :  { %9065 = vst [vmem:[#allocation12_spill] sm:$0xff] %v7596_v47  ;;  %v2669_v59 = vadd.f32 %v2668_v43, %v2628_v10  ;;  %3077 = vmatmul.f32.gmra.mxu3 %v4768_v39  ;;  %v824_v10 = vld [vmem:[%s8797_s2 + $0x1520] sm:$0xff] }
 0x2ec   :  { %3181 = vmatpush.xpose.msrb.mxu2 %v845_v58  ;;  %3222 = vmatpush.xpose.msrb.mxu3 %v846_v12 }
 0x2ed   :  { %4159 = vmatmul.msk.f32.gmra.mxu1 %vm925_vm0, %v5187_v24  ;;  %3036 = vmatmul.f32.gmra.mxu2 %v4765_v38  ;;  %v837_v38 = vld [vmem:[%s8797_s2 + $0x1588] sm:$0xff] }
 0x2ee   :  { %3099 = vmatpush.xpose.msrb.mxu0 %v843_v35  ;;  %3140 = vmatpush.xpose.msrb.mxu1 %v844_v60  ;;  %v7632_v13 = vpop.f32.mrf.mxu3  ;;  %v825_v60 = vld [vmem:[%s8797_s2 + $0x1528] sm:$0xff] }
 0x2ef   :  { %v2630_v39 = vpop.f32.mrf.mxu0 }
 0x2f0   :  { %v2709_v41 = vpop.f32.mrf.mxu2  ;;  %v2631_v2 = vadd.f32 %v2630_v39, %v7402_v7  ;;  %3182 = vmatpush.xpose.msrb.mxu2 %v838_v1  ;;  %3223 = vmatpush.xpose.msrb.mxu3 %v839_v9  ;;  %v830_v7 = vld [vmem:[%s8797_s2 + $0x1550] sm:$0xff] }
 0x2f1   :  { %v7630_v42 = vadd.f32 %v2709_v41, %v2669_v59  ;;  %2957 = vmatmul.f32.gmra.mxu0 %v9024_v27  ;;  %v917_v41 = vld [vmem:[%s8797_s2 + $0x1808] sm:$0xff] }
 0x2f2   :  { %3100 = vmatpush.xpose.msrb.mxu0 %v836_v46  ;;  %v2671_v25 = vpop.f32.mrf.mxu1  ;;  %3141 = vmatpush.xpose.msrb.mxu1 %v837_v38 }
 0x2f3   :  { %9066 = vst [vmem:[#allocation16_spill] sm:$0xff] %v7630_v42  ;;  %v2672_v18 = vadd.f32 %v2671_v25, %v2631_v2  ;;  %3080 = vmatmul.f32.gmra.mxu3 %v9057_v17  ;;  %v823_v17 = vld [vmem:[%s8797_s2 + $0x1518] sm:$0xff] }
 0x2f4   :  { %3183 = vmatpush.xpose.msrb.mxu2 %v831_v26  ;;  %3224 = vmatpush.xpose.msrb.mxu3 %v832_v19 }
 0x2f5   :  { %4160 = vmatmul.msk.f32.gmra.mxu1 %vm925_vm0, %v8973_v16  ;;  %3039 = vmatmul.f32.gmra.mxu2 %v8974_v52  ;;  %v924_v52 = vld [vmem:[%s8797_s2 + $0x1840] sm:$0xff] }
 0x2f6   :  { %3101 = vmatpush.xpose.msrb.mxu0 %v829_v37  ;;  %3142 = vmatpush.xpose.msrb.mxu1 %v830_v7  ;;  %v7669_v58 = vpop.f32.mrf.mxu3 }
 0x2f7   :  { %v2633_v59 = vpop.f32.mrf.mxu0 }
 0x2f8   :  { %v2712_v43 = vpop.f32.mrf.mxu2  ;;  %v2634_v12 = vadd.f32 %v2633_v59, %v7438_v36  ;;  %3184 = vmatpush.xpose.msrb.mxu2 %v824_v10  ;;  %3225 = vmatpush.xpose.msrb.mxu3 %v825_v60 }
 0x2f9   :  { %v7667_v35 = vadd.f32 %v2712_v43, %v2672_v18  ;;  %2960 = vmatmul.f32.gmra.mxu0 %v9028_v6 }
 0x2fa   :  { %3102 = vmatpush.xpose.msrb.mxu0 %v822_v31  ;;  %v2674_v46 = vpop.f32.mrf.mxu1  ;;  %3143 = vmatpush.xpose.msrb.mxu1 %v823_v17 }
 0x2fb   :  { %9067 = vst [vmem:[#allocation2_spill] sm:$0xff] %v7667_v35  ;;  %v2675_v1 = vadd.f32 %v2674_v46, %v2634_v12  ;;  %3083 = vmatmul.f32.gmra.mxu3 %v9060_v14  ;;  %v868_v46 = vld [vmem:[%s8797_s2 + $0x1680] sm:$0xff] }
 0x2fc   :  { %4186 = vmatpush.xpose.msk.msra.mxu2 %vm925_vm0, %v924_v52  ;;  %4187 = vmatpush.xpose.msk.msra.mxu3 %vm925_vm0, %v924_v52 }
 0x2fd   :  { %4161 = vmatmul.msk.f32.gmra.mxu1 %vm925_vm0, %v5281_v56  ;;  %3042 = vmatmul.f32.gmra.mxu2 %v9038_v5  ;;  %v910_v5 = vld [vmem:[%s8797_s2 + $0x17d0] sm:$0xff] }
 0x2fe   :  { %4162 = vmatpush.xpose.msk.msra.mxu0 %vm925_vm0, %v924_v52  ;;  %4185 = vmatpush.xpose.msk.msra.mxu1 %vm925_vm0, %v924_v52  ;;  %v7690_v39 = vpop.f32.mrf.mxu3 }
 0x2ff   :  { %v2776_v9 = vpop.f32.mrf.mxu0 }
 0x300   :  { %v2715_v36 = vpop.f32.mrf.mxu2  ;;  %v2777_v14 = vadd.f32 %v2776_v9, %v7465_v40  ;;  %4189 = vmatpush.xpose.msk.msra.mxu2 %vm925_vm0, %v917_v41  ;;  %4190 = vmatpush.xpose.msk.msra.mxu3 %vm925_vm0, %v917_v41  ;;  %v903_v40 = vld [vmem:[%s8797_s2 + $0x1798] sm:$0xff] }
 0x301   :  { %v7688_v38 = vadd.f32 %v2715_v36, %v2675_v1  ;;  %3103 = vmatmul.f32.vlgmr.msrb.gmra.mxu0 %v8977_v49  ;;  %v9070_v36 = vld [vmem:[#allocation24_spill] sm:$0xff] }
 0x302   :  { %4163 = vmatpush.xpose.msk.msra.mxu0 %vm925_vm0, %v917_v41  ;;  %4188 = vmatpush.xpose.msk.msra.mxu1 %vm925_vm0, %v917_v41  ;;  %v2817_v2 = vpop.f32.mrf.mxu1  ;;  %v9069_v41 = vld [vmem:[#allocation6_spill] sm:$0xff] }
 0x303   :  { %9068 = vst [vmem:[#allocation74_spill] sm:$0xff] %v7688_v38  ;;  %v2818_v25 = vadd.f32 %v2817_v2, %v2777_v14  ;;  %3226 = vmatmul.f32.vlgmr.msrb.gmra.mxu3 %v9042_v51 }
 0x304   :  { %4192 = vmatpush.xpose.msk.msra.mxu2 %vm925_vm0, %v910_v5  ;;  %4193 = vmatpush.xpose.msk.msra.mxu3 %vm925_vm0, %v910_v5 }
 0x305   :  { %3144 = vmatmul.f32.vlgmr.msrb.gmra.mxu1 %v8978_v8  ;;  %3185 = vmatmul.f32.vlgmr.msrb.gmra.mxu2 %v9041_v44  ;;  %v896_v44 = vld [vmem:[%s8797_s2 + $0x1760] sm:$0xff] }
 0x306   :  { %4164 = vmatpush.xpose.msk.msra.mxu0 %vm925_vm0, %v910_v5  ;;  %4191 = vmatpush.xpose.msk.msra.mxu1 %vm925_vm0, %v910_v5  ;;  %v2899_v37 = vpop.f32.mrf.mxu3 }
 0x307   :  { %v2779_v26 = vpop.f32.mrf.mxu0 }
 0x308   :  { %v2858_v49 = vpop.f32.mrf.mxu2  ;;  %v2780_v18 = vadd.f32 %v2779_v26, %v7496_v55  ;;  %4195 = vmatpush.xpose.msk.msra.mxu2 %vm925_vm0, %v903_v40  ;;  %4196 = vmatpush.xpose.msk.msra.mxu3 %vm925_vm0, %v903_v40  ;;  %v889_v55 = vld [vmem:[%s8797_s2 + $0x1728] sm:$0xff]  ;;  %v9073_v26 = vld [vmem:[#allocation26_spill] sm:$0xff] }
 0x309   :  { %v2859_v8 = vadd.f32 %v2858_v49, %v2818_v25  ;;  %3106 = vmatmul.f32.gmra.mxu0 %v4561_v29  ;;  %v854_v49 = vld [vmem:[%s8797_s2 + $0x1610] sm:$0xff] }
 0x30a   :  { %4165 = vmatpush.xpose.msk.msra.mxu0 %vm925_vm0, %v903_v40  ;;  %4194 = vmatpush.xpose.msk.msra.mxu1 %vm925_vm0, %v903_v40  ;;  %v2820_v7 = vpop.f32.mrf.mxu1  ;;  %v9071_v40 = vld [vmem:[#allocation7_spill] sm:$0xff] }
 0x30b   :  { %v7717_v51 = vadd.f32 %v2899_v37, %v2859_v8  ;;  %v2821_v19 = vadd.f32 %v2820_v7, %v2780_v18  ;;  %3229 = vmatmul.f32.gmra.mxu3 %v4990_v28  ;;  %v882_v28 = vld [vmem:[%s8797_s2 + $0x16f0] sm:$0xff] }
 0x30c   :  { %4198 = vmatpush.xpose.msk.msra.mxu2 %vm925_vm0, %v896_v44  ;;  %4199 = vmatpush.xpose.msk.msra.mxu3 %vm925_vm0, %v896_v44  ;;  %v9072_v37 = vld [vmem:[#allocation8_spill] sm:$0xff] }
 0x30d   :  { %3147 = vmatmul.f32.gmra.mxu1 %v4564_v30  ;;  %3188 = vmatmul.f32.gmra.mxu2 %v8981_v62 }
 0x30e   :  { %4166 = vmatpush.xpose.msk.msra.mxu0 %vm925_vm0, %v896_v44  ;;  %4197 = vmatpush.xpose.msk.msra.mxu1 %vm925_vm0, %v896_v44  ;;  %v2902_v31 = vpop.f32.mrf.mxu3 }
 0x30f   :  { %v2782_v10 = vpop.f32.mrf.mxu0 }
 0x310   :  { %v2861_v29 = vpop.f32.mrf.mxu2  ;;  %v2783_v62 = vadd.f32 %v2782_v10, %v7530_v23  ;;  %4201 = vmatpush.xpose.msk.msra.mxu2 %vm925_vm0, %v889_v55  ;;  %4202 = vmatpush.xpose.msk.msra.mxu3 %vm925_vm0, %v889_v55 }
 0x311   :  { %v2862_v30 = vadd.f32 %v2861_v29, %v2821_v19  ;;  %3109 = vmatmul.f32.gmra.mxu0 %v4615_v45  ;;  %v875_v45 = vld [vmem:[%s8797_s2 + $0x16b8] sm:$0xff] }
 0x312   :  { %4167 = vmatpush.xpose.msk.msra.mxu0 %vm925_vm0, %v889_v55  ;;  %4200 = vmatpush.xpose.msk.msra.mxu1 %vm925_vm0, %v889_v55  ;;  %v2823_v52 = vpop.f32.mrf.mxu1 }
 0x313   :  { %v7739_v43 = vadd.f32 %v2902_v31, %v2862_v30  ;;  %v2824_v17 = vadd.f32 %v2823_v52, %v2783_v62  ;;  %3232 = vmatmul.f32.gmra.mxu3 %v5037_v57  ;;  %v9074_v30 = vld [vmem:[#allocation9_spill] sm:$0xff]  ;;  %v840_v31 = vld [vmem:[%s8797_s2 + $0x15a0] sm:$0xff]  ;;  %v9076_v52 = vld [vmem:[#allocation27_spill] sm:$0xff] }
 0x314   :  { %4204 = vmatpush.xpose.msk.msra.mxu2 %vm925_vm0, %v882_v28  ;;  %4205 = vmatpush.xpose.msk.msra.mxu3 %vm925_vm0, %v882_v28  ;;  %v9075_v62 = vld [vmem:[#allocation10_spill] sm:$0xff] }
 0x315   :  { %3150 = vmatmul.f32.gmra.mxu1 %v9052_v21  ;;  %3191 = vmatmul.f32.gmra.mxu2 %v8982_v54 }
 0x316   :  { %4168 = vmatpush.xpose.msk.msra.mxu0 %vm925_vm0, %v882_v28  ;;  %4203 = vmatpush.xpose.msk.msra.mxu1 %vm925_vm0, %v882_v28  ;;  %v2905_v21 = vpop.f32.mrf.mxu3 }
 0x317   :  { %v2785_v60 = vpop.f32.mrf.mxu0 }
 0x318   :  { %v2864_v23 = vpop.f32.mrf.mxu2  ;;  %v2786_v54 = vadd.f32 %v2785_v60, %v7564_v50  ;;  %4207 = vmatpush.xpose.msk.msra.mxu2 %vm925_vm0, %v875_v45  ;;  %4208 = vmatpush.xpose.msk.msra.mxu3 %vm925_vm0, %v875_v45  ;;  %v9077_v60 = vld [vmem:[#allocation13_spill] sm:$0xff] }
 0x319   :  { %v2865_v59 = vadd.f32 %v2864_v23, %v2824_v17  ;;  %3112 = vmatmul.f32.gmra.mxu0 %v4669_v0  ;;  %v861_v0 = vld [vmem:[%s8797_s2 + $0x1648] sm:$0xff] }
 0x31a   :  { %v2826_v12 = vpop.f32.mrf.mxu1  ;;  %4169 = vmatpush.xpose.msk.msra.mxu0 %vm925_vm0, %v875_v45  ;;  %4206 = vmatpush.xpose.msk.msra.mxu1 %vm925_vm0, %v875_v45 }
 0x31b   :  { %v7753_v57 = vadd.f32 %v2905_v21, %v2865_v59  ;;  %v2827_v1 = vadd.f32 %v2826_v12, %v2786_v54  ;;  %3235 = vmatmul.f32.gmra.mxu3 %v9018_v34  ;;  %v826_v54 = vld [vmem:[%s8797_s2 + $0x1530] sm:$0xff] }
 0x31c   :  { %4210 = vmatpush.xpose.msk.msra.mxu2 %vm925_vm0, %v868_v46  ;;  %4211 = vmatpush.xpose.msk.msra.mxu3 %vm925_vm0, %v868_v46 }
 0x31d   :  { %3153 = vmatmul.f32.gmra.mxu1 %v9069_v41  ;;  %3194 = vmatmul.f32.gmra.mxu2 %v9070_v36 }
 0x31e   :  { %4170 = vmatpush.xpose.msk.msra.mxu0 %vm925_vm0, %v868_v46  ;;  %v2908_v5 = vpop.f32.mrf.mxu3  ;;  %4209 = vmatpush.xpose.msk.msra.mxu1 %vm925_vm0, %v868_v46  ;;  %v9078_v46 = vld [vmem:[#allocation14_spill] sm:$0xff] }
 0x31f   :  { %v2788_v14 = vpop.f32.mrf.mxu0 }
 0x320   :  { %v2867_v50 = vpop.f32.mrf.mxu2  ;;  %v2789_v2 = vadd.f32 %v2788_v14, %v7598_v53  ;;  %4213 = vmatpush.xpose.msk.msra.mxu2 %vm925_vm0, %v861_v0  ;;  %4214 = vmatpush.xpose.msk.msra.mxu3 %vm925_vm0, %v861_v0  ;;  %v847_v53 = vld [vmem:[%s8797_s2 + $0x15d8] sm:$0xff] }
 0x321   :  { %v2868_v9 = vadd.f32 %v2867_v50, %v2827_v1  ;;  %3115 = vmatmul.f32.gmra.mxu0 %v9071_v40  ;;  %v9079_v1 = vld [vmem:[#allocation28_spill] sm:$0xff]  ;;  %v9080_v14 = vld [vmem:[#allocation17_spill] sm:$0xff] }
 0x322   :  { %v2829_v25 = vpop.f32.mrf.mxu1  ;;  %4171 = vmatpush.xpose.msk.msra.mxu0 %vm925_vm0, %v861_v0  ;;  %4212 = vmatpush.xpose.msk.msra.mxu1 %vm925_vm0, %v861_v0 }
 0x323   :  { %v7774_v34 = vadd.f32 %v2908_v5, %v2868_v9  ;;  %v2830_v8 = vadd.f32 %v2829_v25, %v2789_v2  ;;  %3238 = vmatmul.f32.gmra.mxu3 %v5131_v20  ;;  %v9081_v2 = vld [vmem:[#allocation18_spill] sm:$0xff]  ;;  %v9082_v25 = vld [vmem:[#allocation31_spill] sm:$0xff] }
 0x324   :  { %4216 = vmatpush.xpose.msk.msra.mxu2 %vm925_vm0, %v854_v49  ;;  %4217 = vmatpush.xpose.msk.msra.mxu3 %vm925_vm0, %v854_v49 }
 0x325   :  { %3156 = vmatmul.f32.gmra.mxu1 %v9072_v37  ;;  %3197 = vmatmul.f32.gmra.mxu2 %v9073_v26 }
 0x326   :  { %4172 = vmatpush.xpose.msk.msra.mxu0 %vm925_vm0, %v854_v49  ;;  %v2911_v7 = vpop.f32.mrf.mxu3  ;;  %4215 = vmatpush.xpose.msk.msra.mxu1 %vm925_vm0, %v854_v49 }
 0x327   :  { %v2791_v19 = vpop.f32.mrf.mxu0 }
 0x328   :  { %v2870_v44 = vpop.f32.mrf.mxu2  ;;  %v2792_v55 = vadd.f32 %v2791_v19, %v7632_v13  ;;  %4219 = vmatpush.xpose.msk.msra.mxu2 %vm925_vm0, %v847_v53  ;;  %4220 = vmatpush.xpose.msk.msra.mxu3 %vm925_vm0, %v847_v53  ;;  %v833_v13 = vld [vmem:[%s8797_s2 + $0x1568] sm:$0xff] }
 0x329   :  { %v2871_v18 = vadd.f32 %v2870_v44, %v2830_v8  ;;  %3118 = vmatmul.f32.gmra.mxu0 %v9074_v30 }
 0x32a   :  { %v2832_v29 = vpop.f32.mrf.mxu1  ;;  %4173 = vmatpush.xpose.msk.msra.mxu0 %vm925_vm0, %v847_v53  ;;  %4218 = vmatpush.xpose.msk.msra.mxu1 %vm925_vm0, %v847_v53 }
 0x32b   :  { %v7795_v20 = vadd.f32 %v2911_v7, %v2871_v18  ;;  %v2833_v10 = vadd.f32 %v2832_v29, %v2792_v55  ;;  %3241 = vmatmul.f32.gmra.mxu3 %v5178_v15 }
 0x32c   :  { %4222 = vmatpush.xpose.msk.msra.mxu2 %vm925_vm0, %v840_v31  ;;  %4223 = vmatpush.xpose.msk.msra.mxu3 %vm925_vm0, %v840_v31 }
 0x32d   :  { %3159 = vmatmul.f32.gmra.mxu1 %v9075_v62  ;;  %3200 = vmatmul.f32.gmra.mxu2 %v9076_v52 }
 0x32e   :  { %4174 = vmatpush.xpose.msk.msra.mxu0 %vm925_vm0, %v840_v31  ;;  %v2914_v45 = vpop.f32.mrf.mxu3  ;;  %4221 = vmatpush.xpose.msk.msra.mxu1 %vm925_vm0, %v840_v31 }
 0x32f   :  { %v2794_v23 = vpop.f32.mrf.mxu0 }
 0x330   :  { %v2873_v28 = vpop.f32.mrf.mxu2  ;;  %v2795_v59 = vadd.f32 %v2794_v23, %v7669_v58  ;;  %4225 = vmatpush.xpose.msk.msra.mxu2 %vm925_vm0, %v833_v13  ;;  %4226 = vmatpush.xpose.msk.msra.mxu3 %vm925_vm0, %v833_v13 }
 0x331   :  { %v2874_v17 = vadd.f32 %v2873_v28, %v2833_v10  ;;  %3121 = vmatmul.f32.gmra.mxu0 %v9077_v60 }
 0x332   :  { %v2835_v21 = vpop.f32.mrf.mxu1  ;;  %4175 = vmatpush.xpose.msk.msra.mxu0 %vm925_vm0, %v833_v13  ;;  %4224 = vmatpush.xpose.msk.msra.mxu1 %vm925_vm0, %v833_v13 }
 0x333   :  { %v7816_v15 = vadd.f32 %v2914_v45, %v2874_v17  ;;  %v2836_v12 = vadd.f32 %v2835_v21, %v2795_v59  ;;  %3244 = vmatmul.f32.gmra.mxu3 %v9024_v27 }
 0x334   :  { %4228 = vmatpush.xpose.msk.msra.mxu2 %vm925_vm0, %v826_v54  ;;  %4229 = vmatpush.xpose.msk.msra.mxu3 %vm925_vm0, %v826_v54 }
 0x335   :  { %3162 = vmatmul.f32.gmra.mxu1 %v9078_v46  ;;  %3203 = vmatmul.f32.gmra.mxu2 %v9079_v1 }
 0x336   :  { %4176 = vmatpush.xpose.msk.msra.mxu0 %vm925_vm0, %v826_v54  ;;  %v2917_v36 = vpop.f32.mrf.mxu3  ;;  %4227 = vmatpush.xpose.msk.msra.mxu1 %vm925_vm0, %v826_v54 }
 0x337   :  { %v2797_v0 = vpop.f32.mrf.mxu0 }
 0x338   :  { %v2876_v58 = vpop.f32.mrf.mxu2  ;;  %v2798_v50 = vadd.f32 %v2797_v0, %v7690_v39  ;;  %v9094_v0 = vld [vmem:[#allocation4_spill] sm:$0xff] }
 0x339   :  { %v2877_v41 = vadd.f32 %v2876_v58, %v2836_v12  ;;  %3124 = vmatmul.f32.gmra.mxu0 %v9080_v14  ;;  %v9092_v58 = vld [vmem:[#allocation3_spill] sm:$0xff] }
 0x33a   :  { %v2838_v9 = vpop.f32.mrf.mxu1  ;;  %v9097_v14 = vld [vmem:[#allocation47_spill] sm:$0xff] }
 0x33b   :  { %v7833_v5 = vadd.f32 %v2917_v36, %v2877_v41  ;;  %v2839_v27 = vadd.f32 %v2838_v9, %v2798_v50  ;;  %3247 = vmatmul.f32.gmra.mxu3 %v9028_v6  ;;  %v9093_v41 = vld [vmem:[#allocation41_spill] sm:$0xff] }
 0x33c   :  { %v1793_v36 = vadd.f32 %v9093_v41, %v9092_v58  ;;  %v9095_v50 = vld [vmem:[#allocation45_spill] sm:$0xff] }
 0x33d   :  { %3165 = vmatmul.f32.gmra.mxu1 %v9081_v2  ;;  %3206 = vmatmul.f32.gmra.mxu2 %v9082_v25  ;;  %v1799_v9 = vadd.f32 %v9095_v50, %v9094_v0  ;;  %v9124_v41 = vld [vmem:[#allocation33_spill] sm:$0xff] }
 0x33e   :  { %v2920_v8 = vpop.f32.mrf.mxu3 }
 0x33f   :  { %v2940_v37 = vpop.f32.mrf.mxu0 }
 0x340   :  { %v2879_v40 = vpop.f32.mrf.mxu2  ;;  %v2941_v39 = vadd.f32 %v2940_v37, %v7717_v51  ;;  %v9100_v37 = vld [vmem:[#allocation46_spill] sm:$0xff] }
 0x341   :  { %v2880_v49 = vadd.f32 %v2879_v40, %v2839_v27  ;;  %4177 = vmatmul.msk.f32.vlgmr.msra.gmra.mxu0 %vm925_vm0, %v9043_v3 }
 0x342   :  { %v2981_v26 = vpop.f32.mrf.mxu1 }
 0x343   :  { %v7841_v53 = vadd.f32 %v2920_v8, %v2880_v49  ;;  %v7845_v44 = vadd.f32 %v2981_v26, %v2941_v39  ;;  %4183 = vmatmul.msk.f32.vlgmr.msra.gmra.mxu3 %vm925_vm0, %v8973_v16  ;;  %v9098_v49 = vld [vmem:[#allocation42_spill] sm:$0xff] }
 0x344   :  { %v7893_v8 = vadd.f32 %v9098_v49, %v1793_v36  ;;  %v9125_v36 = vld [vmem:[#allocation34_spill] sm:$0xff]  ;;  %v9130_v49 = vld [vmem:[#allocation25_spill] sm:$0xff] }
 0x345   :  { %4179 = vmatmul.msk.f32.vlgmr.msra.gmra.mxu1 %vm925_vm0, %v5046_v11  ;;  %4181 = vmatmul.msk.f32.vlgmr.msra.gmra.mxu2 %vm925_vm0, %v5140_v33  ;;  %v3292_v0 = vadd.f32 %v9125_v36, %v9124_v41 }
 0x346   :  { %v3063_v18 = vpop.f32.mrf.mxu3  ;;  %9099 = vst [vmem:[#allocation14_spill] sm:$0xff] %v7893_v8 }
 0x347   :  { %v2943_v51 = vpop.f32.mrf.mxu0 }
 0x348   :  { %v3022_v6 = vpop.f32.mrf.mxu2  ;;  %v2944_v55 = vadd.f32 %v2943_v51, %v7739_v43  ;;  %v9104_v51 = vld [vmem:[#allocation49_spill] sm:$0xff] }
 0x349   :  { %v7853_v19 = vadd.f32 %v3063_v18, %v3022_v6  ;;  %4178 = vmatmul.msk.f32.gmra.mxu0 %vm925_vm0, %v4999_v61  ;;  %v9103_v18 = vld [vmem:[#allocation23_spill] sm:$0xff] }
 0x34a   :  { %v2984_v7 = vpop.f32.mrf.mxu1 }
 0x34b   :  { %v7860_v11 = vadd.f32 %v2984_v7, %v2944_v55  ;;  %4184 = vmatmul.msk.f32.gmra.mxu3 %vm925_vm0, %v5281_v56  ;;  %v1805_v7 = vadd.f32 %v9104_v51, %v9103_v18  ;;  %v9105_v55 = vld [vmem:[#allocation44_spill] sm:$0xff]  ;;  %v9133_v51 = vld [vmem:[#allocation35_spill] sm:$0xff] }
 0x34d   :  { %4180 = vmatmul.msk.f32.gmra.mxu1 %vm925_vm0, %v5093_v48  ;;  %9083 = vst [vmem:[#allocation6_spill] sm:$0xff] %v7860_v11  ;;  %4182 = vmatmul.msk.f32.gmra.mxu2 %vm925_vm0, %v5187_v24 }
 0x34e   :  { %v3066_v16 = vpop.f32.mrf.mxu3 }
 0x34f   :  { %v2946_v3 = vpop.f32.mrf.mxu0 }
 0x350   :  { %v3025_v33 = vpop.f32.mrf.mxu2  ;;  %v2947_v43 = vadd.f32 %v2946_v3, %v7753_v57 }
 0x351   :  { %v7866_v29 = vadd.f32 %v3066_v16, %v3025_v33  ;;  %v3305_v33 = vadd.f32 %v9105_v55, %v7893_v8  ;;  %v9106_v16 = vld [vmem:[#allocation48_spill] sm:$0xff] }
 0x352   :  { %v2987_v30 = vpop.f32.mrf.mxu1 }
 0x353   :  { %9084 = vst [vmem:[#allocation24_spill] sm:$0xff] %v7866_v29  ;;  %v7869_v61 = vadd.f32 %v2987_v30, %v2947_v43  ;;  %v9109_v30 = vld [vmem:[#allocation39_spill] sm:$0xff] }
 0x355   :  { %9085 = vst [vmem:[#allocation7_spill] sm:$0xff] %v7869_v61 }
 0x356   :  { %v3069_v48 = vpop.f32.mrf.mxu3 }
 0x357   :  { %v2949_v10 = vpop.f32.mrf.mxu0 }
 0x358   :  { %v3028_v31 = vpop.f32.mrf.mxu2  ;;  %v2950_v24 = vadd.f32 %v2949_v10, %v7774_v34  ;;  %v9111_v10 = vld [vmem:[#allocation58_spill] sm:$0xff] }
 0x359   :  { %v7871_v62 = vadd.f32 %v3069_v48, %v3028_v31  ;;  %v9110_v31 = vld [vmem:[#allocation51_spill] sm:$0xff] }
 0x35a   :  { %v2990_v52 = vpop.f32.mrf.mxu1  ;;  %v1808_v48 = vadd.f32 %v9110_v31, %v9109_v30 }
 0x35b   :  { %9086 = vst [vmem:[#allocation8_spill] sm:$0xff] %v7871_v62  ;;  %v7874_v13 = vadd.f32 %v2990_v52, %v2950_v24  ;;  %v9112_v24 = vld [vmem:[#allocation63_spill] sm:$0xff] }
 0x35c   :  { %v7914_v52 = vadd.f32 %v9112_v24, %v9111_v10 }
 0x35d   :  { %9087 = vst [vmem:[#allocation26_spill] sm:$0xff] %v7874_v13 }
 0x35e   :  { %v3072_v28 = vpop.f32.mrf.mxu3  ;;  %9113 = vst [vmem:[#allocation3_spill] sm:$0xff] %v7914_v52 }
 0x35f   :  { %v2952_v17 = vpop.f32.mrf.mxu0 }
 0x360   :  { %v3031_v56 = vpop.f32.mrf.mxu2  ;;  %v2953_v57 = vadd.f32 %v2952_v17, %v7795_v20  ;;  %v9096_v20 = vld [vmem:[#allocation22_spill] sm:$0xff]  ;;  %v9116_v17 = vld [vmem:[#allocation40_spill] sm:$0xff] }
 0x361   :  { %v7876_v45 = vadd.f32 %v3072_v28, %v3031_v56  ;;  %v1802_v27 = vadd.f32 %v9097_v14, %v9096_v20  ;;  %v9114_v56 = vld [vmem:[#allocation50_spill] sm:$0xff]  ;;  %v9126_v20 = vld [vmem:[#allocation52_spill] sm:$0xff] }
 0x362   :  { %v2993_v23 = vpop.f32.mrf.mxu1  ;;  %v7918_v28 = vadd.f32 %v9114_v56, %v1805_v7  ;;  %v7934_v14 = vadd.f32 %v9126_v20, %v1808_v48  ;;  %v3293_v7 = vadd.f32 %v3292_v0, %v9133_v51  ;;  %v9135_v48 = vld [vmem:[#allocation54_spill] sm:$0xff]  ;;  %v9147_v20 = vld [vmem:[#allocation15_spill] sm:$0xff] }
 0x363   :  { %9088 = vst [vmem:[#allocation9_spill] sm:$0xff] %v7876_v45  ;;  %v7879_v59 = vadd.f32 %v2993_v23, %v2953_v57  ;;  %v7906_v3 = vadd.f32 %v9106_v16, %v1802_v27  ;;  %v9117_v57 = vld [vmem:[#allocation53_spill] sm:$0xff]  ;;  %v9128_v27 = vld [vmem:[#allocation43_spill] sm:$0xff]  ;;  %v9138_v56 = vld [vmem:[#allocation66_spill] sm:$0xff] }
 0x364   :  { %9115 = vst [vmem:[#allocation41_spill] sm:$0xff] %v7918_v28  ;;  %v1811_v23 = vadd.f32 %v9117_v57, %v9116_v17  ;;  %v9140_v57 = vld [vmem:[#allocation36_spill] sm:$0xff] }
 0x365   :  { %9089 = vst [vmem:[#allocation10_spill] sm:$0xff] %v7879_v59 }
 0x366   :  { %v3075_v60 = vpop.f32.mrf.mxu3  ;;  %9107 = vst [vmem:[#allocation18_spill] sm:$0xff] %v7906_v3  ;;  %v7950_v10 = vadd.f32 %v9135_v48, %v1811_v23  ;;  %v9145_v23 = vld [vmem:[#allocation67_spill] sm:$0xff]  ;;  %v9154_v48 = vld [vmem:[#allocation38_spill] sm:$0xff] }
 0x367   :  { %v2955_v54 = vpop.f32.mrf.mxu0  ;;  %9127 = vst [vmem:[#allocation22_spill] sm:$0xff] %v7934_v14 }
 0x368   :  { %v3034_v21 = vpop.f32.mrf.mxu2  ;;  %v2956_v34 = vadd.f32 %v2955_v54, %v7816_v15  ;;  %v7896_v15 = vadd.f32 %v9100_v37, %v1799_v9  ;;  %v9131_v37 = vld [vmem:[#allocation65_spill] sm:$0xff]  ;;  %9136 = vst [vmem:[#allocation46_spill] sm:$0xff] %v7950_v10 }
 0x369   :  { %v7881_v12 = vadd.f32 %v3075_v60, %v3034_v21  ;;  %v9118_v21 = vld [vmem:[#allocation57_spill] sm:$0xff]  ;;  %v9119_v60 = vld [vmem:[#allocation32_spill] sm:$0xff] }
 0x36a   :  { %v2996_v46 = vpop.f32.mrf.mxu1  ;;  %9101 = vst [vmem:[#allocation28_spill] sm:$0xff] %v7896_v15  ;;  %v7924_v54 = vadd.f32 %v9119_v60, %v9118_v21  ;;  %v3294_v21 = vadd.f32 %v3293_v7, %v9140_v57  ;;  %v9151_v7 = vld [vmem:[#allocation68_spill] sm:$0xff] }
 0x36b   :  { %9090 = vst [vmem:[#allocation27_spill] sm:$0xff] %v7881_v12  ;;  %v7884_v1 = vadd.f32 %v2996_v46, %v2956_v34  ;;  %v9121_v34 = vld [vmem:[#allocation59_spill] sm:$0xff]  ;;  %v9122_v46 = vld [vmem:[#allocation64_spill] sm:$0xff] }
 0x36c   :  { %9120 = vst [vmem:[#allocation4_spill] sm:$0xff] %v7924_v54  ;;  %v7928_v58 = vadd.f32 %v9122_v46, %v9121_v34  ;;  %v9142_v46 = vld [vmem:[#allocation56_spill] sm:$0xff]  ;;  %v9164_v12 = vld [vmem:[#allocation11_spill] sm:$0xff] }
 0x36d   :  { %9091 = vst [vmem:[#allocation13_spill] sm:$0xff] %v7884_v1 }
 0x36e   :  { %v3078_v25 = vpop.f32.mrf.mxu3  ;;  %9123 = vst [vmem:[#allocation45_spill] sm:$0xff] %v7928_v58 }
 0x36f   :  { %v2958_v40 = vpop.f32.mrf.mxu0 }
 0x370   :  { %v3037_v2 = vpop.f32.mrf.mxu2  ;;  %v2959_v26 = vadd.f32 %v2958_v40, %v7833_v5  ;;  %v3306_v5 = vadd.f32 %v3305_v33, %v7896_v15  ;;  %v3318_v40 = vadd.f32 %v7914_v52, %v7924_v54 }
 0x371   :  { %v7898_v39 = vadd.f32 %v3078_v25, %v3037_v2  ;;  %v9129_v2 = vld [vmem:[#allocation55_spill] sm:$0xff] }
 0x372   :  { %v2999_v6 = vpop.f32.mrf.mxu1  ;;  %v3307_v50 = vadd.f32 %v3306_v5, %v7906_v3  ;;  %v1814_v25 = vadd.f32 %v9129_v2, %v9128_v27  ;;  %v3319_v24 = vadd.f32 %v3318_v40, %v7928_v58  ;;  %v9137_v5 = vld [vmem:[#allocation60_spill] sm:$0xff]  ;;  %v9148_v27 = vld [vmem:[#allocation19_spill] sm:$0xff]  ;;  %v9149_v40 = vld [vmem:[#allocation37_spill] sm:$0xff] }
 0x373   :  { %9102 = vst [vmem:[#allocation17_spill] sm:$0xff] %v7898_v39  ;;  %v7908_v43 = vadd.f32 %v2999_v6, %v2959_v26  ;;  %v7942_v26 = vadd.f32 %v9131_v37, %v9130_v49  ;;  %v7955_v17 = vadd.f32 %v9138_v56, %v9137_v5  ;;  %v3331_v2 = vadd.f32 %v9148_v27, %v9147_v20 }
 0x374   :  { %v3308_v31 = vadd.f32 %v3307_v50, %v7918_v28  ;;  %v9144_v50 = vld [vmem:[#allocation61_spill] sm:$0xff]  ;;  %v3295_v49 = vadd.f32 %v3294_v21, %v9149_v40  ;;  %v9155_v21 = vld [vmem:[#allocation62_spill] sm:$0xff] }
 0x375   :  { %9108 = vst [vmem:[#allocation31_spill] sm:$0xff] %v7908_v43  ;;  %v3320_v0 = vadd.f32 %v3319_v24, %v7942_v26 }
 0x376   :  { %9132 = vst [vmem:[#allocation47_spill] sm:$0xff] %v7942_v26  ;;  %v3081_v6 = vpop.f32.mrf.mxu3  ;;  %v3309_v34 = vadd.f32 %v3308_v31, %v7934_v14  ;;  %v3296_v24 = vadd.f32 %v3295_v49, %v9154_v48  ;;  %v9162_v49 = vld [vmem:[#allocation30_spill] sm:$0xff] }
 0x377   :  { %v2961_v18 = vpop.f32.mrf.mxu0  ;;  %9139 = vst [vmem:[#allocation23_spill] sm:$0xff] %v7955_v17 }
 0x378   :  { %v3040_v9 = vpop.f32.mrf.mxu2  ;;  %v2962_v16 = vadd.f32 %v2961_v18, %v7841_v53  ;;  %v7962_v53 = vadd.f32 %v9142_v46, %v1814_v25  ;;  %v3310_v37 = vadd.f32 %v3309_v34, %v7950_v10  ;;  %v9150_v18 = vld [vmem:[#allocation29_spill] sm:$0xff]  ;;  %v9153_v25 = vld [vmem:[#allocation20_spill] sm:$0xff] }
 0x379   :  { %v7945_v33 = vadd.f32 %v3081_v6, %v3040_v9  ;;  %v7967_v9 = vadd.f32 %v9145_v23, %v9144_v50  ;;  %v3321_v6 = vadd.f32 %v3320_v0, %v7955_v17  ;;  %v9156_v23 = vld [vmem:[#allocation69_spill] sm:$0xff] }
 0x37a   :  { %v3002_v30 = vpop.f32.mrf.mxu1  ;;  %9143 = vst [vmem:[#allocation48_spill] sm:$0xff] %v7962_v53  ;;  %v3311_v5 = vadd.f32 %v3310_v37, %v7962_v53  ;;  %v7984_v34 = vadd.f32 %v9156_v23, %v9155_v21  ;;  %v9158_v0 = vld [vmem:[#allocation21_spill] sm:$0xff]  ;;  %v9165_v23 = vld [vmem:[#allocation71_spill] sm:$0xff] }
 0x37b   :  { %9134 = vst [vmem:[#allocation42_spill] sm:$0xff] %v7945_v33  ;;  %v7958_v60 = vadd.f32 %v3002_v30, %v2962_v16  ;;  %v7976_v16 = vadd.f32 %v9151_v7, %v9150_v18  ;;  %v3332_v30 = vadd.f32 %v3331_v2, %v9153_v25  ;;  %v3322_v56 = vadd.f32 %v3321_v6, %v7967_v9  ;;  %v9163_v6 = vld [vmem:[#allocation70_spill] sm:$0xff] }
 0x37c   :  { %9146 = vst [vmem:[#allocation39_spill] sm:$0xff] %v7967_v9  ;;  %v3297_v7 = vadd.f32 %v3296_v24, %v9162_v49  ;;  %v3312_v62 = vrot.slane %v3311_v5, 4 }
 0x37d   :  { %9141 = vst [vmem:[#allocation49_spill] sm:$0xff] %v7958_v60  ;;  %v3333_v33 = vadd.f32 %v3332_v30, %v9158_v0  ;;  %v3323_v37 = vadd.f32 %v3322_v56, %v7976_v16 }
 0x37e   :  { %9152 = vst [vmem:[#allocation51_spill] sm:$0xff] %v7976_v16  ;;  %v3084_v46 = vpop.f32.mrf.mxu3  ;;  %v3298_v45 = vadd.f32 %v3297_v7, %v9164_v12 }
 0x37f   :  { %v3104_v50 = vpop.f32.mrf.mxu0  ;;  %9157 = vst [vmem:[#allocation58_spill] sm:$0xff] %v7984_v34  ;;  %v3334_v53 = vadd.f32 %v3333_v33, %v9163_v6  ;;  %v3324_v21 = vadd.f32 %v3323_v37, %v7984_v34  ;;  %v9170_v34 = vld [vmem:[#allocation73_spill] sm:$0xff] }
 0x380   :  { %v3043_v31 = vpop.f32.mrf.mxu2  ;;  %v7990_v18 = vadd.f32 %v3104_v50, %v7853_v19  ;;  %v3357_v19 = vadd.f32 %v7860_v11, %v7845_v44  ;;  %v3299_v56 = vrot.slane %v3298_v45, 4 }
 0x381   :  { %v7987_v39 = vadd.f32 %v3084_v46, %v3043_v31  ;;  %v3335_v30 = vadd.f32 %v3334_v53, %v9165_v23  ;;  %v3344_v31 = vadd.f32 %v7494_v22, %v7463_v32  ;;  %v9166_v46 = vld [vmem:[#allocation72_spill] sm:$0xff]  ;;  %v3325_v53 = vrot.slane %v3324_v21, 4 }
 0x382   :  { %9160 = vst [vmem:[#allocation50_spill] sm:$0xff] %v7990_v18  ;;  %v7992_v2 = vpop.f32.mrf.mxu1  ;;  %v3358_v7 = vadd.f32 %v3357_v19, %v7869_v61 }
 0x383   :  { %9159 = vst [vmem:[#allocation63_spill] sm:$0xff] %v7987_v39  ;;  %v3336_v50 = vadd.f32 %v3335_v30, %v9166_v46  ;;  %v3313_v39 = vadd.f32 %v3312_v62, %v3311_v5  ;;  %v3345_v33 = vadd.f32 %v3344_v31, %v7528_v4  ;;  %v3326_v31 = vadd.f32 %v3325_v53, %v3324_v21 }
 0x384   :  { %9161 = vst [vmem:[#allocation40_spill] sm:$0xff] %v7992_v2  ;;  %v3359_v30 = vadd.f32 %v3358_v7, %v7874_v13 }
 0x385   :  { %v3337_v2 = vadd.f32 %v3336_v50, %v9170_v34  ;;  %v3346_v29 = vadd.f32 %v3345_v33, %v7562_v63  ;;  %v3314_v23 = vrot.slane %v3313_v39, 2 }
 0x386   :  { %v8009_v12 = vpop.f32.mrf.mxu3  ;;  %v3360_v5 = vadd.f32 %v3359_v30, %v7879_v59 }
 0x387   :  { %9168 = vst [vmem:[#allocation57_spill] sm:$0xff] %v8009_v12  ;;  %v8011_v37 = vpop.f32.mrf.mxu0  ;;  %v3347_v62 = vadd.f32 %v3346_v29, %v7596_v47  ;;  %v3338_v19 = vrot.slane %v3337_v2, 4  ;;  %v3315_v34 = vadd.f32 %v3314_v23, %v3313_v39  ;;  %v3327_v29 = vrot.slane %v3326_v31, 2 }
 0x388   :  { %v8005_v24 = vpop.f32.mrf.mxu2  ;;  %9169 = vst [vmem:[#allocation32_spill] sm:$0xff] %v8011_v37  ;;  %v3361_v37 = vadd.f32 %v3360_v5, %v7884_v1 }
 0x389   :  { %9167 = vst [vmem:[#allocation53_spill] sm:$0xff] %v8005_v24  ;;  %v3300_v24 = vadd.f32 %v3299_v56, %v3298_v45  ;;  %v3348_v12 = vadd.f32 %v3347_v62, %v7630_v42  ;;  %v3339_v30 = vadd.f32 %v3338_v19, %v3337_v2  ;;  %v3328_v1 = vadd.f32 %v3327_v29, %v3326_v31 }
 0x38a   :  { %v8014_v18 = vpop.f32.mrf.mxu1  ;;  %v3362_v7 = vadd.f32 %v3361_v37, %v7908_v43 }
 0x38b   :  { %v3301_v50 = vrot.slane %v3300_v24, 2  ;;  %v3349_v33 = vadd.f32 %v3348_v12, %v7667_v35  ;;  %v3340_v39 = vrot.slane %v3339_v30, 2  ;;  %v3329_v2 = vrot.slane %v3328_v1, 1 }
 0x38c   :  { %v3363_v62 = vadd.f32 %v3362_v7, %v7958_v60  ;;  %v3398_v60 = vlaneseq }
 0x38d   :  { %v3350_v53 = vadd.f32 %v3349_v33, %v7688_v38  ;;  %v3302_v5 = vadd.f32 %v3301_v50, %v3300_v24  ;;  %v3341_v19 = vadd.f32 %v3340_v39, %v3339_v30  ;;  %v3330_v31 = vadd.f32 %v3329_v2, %v3328_v1 }
 0x38e   :  { %v8026_v45 = vpop.f32.mrf.mxu3  ;;  %v3364_v12 = vrot.slane %v3363_v62, 4  ;;  %v3399_v39 = vshrl.u32 %v3398_v60, 7 }
 0x38f   :  { %9172 = vst [vmem:[#allocation64_spill] sm:$0xff] %v8026_v45  ;;  %v8028_v56 = vpop.f32.mrf.mxu0  ;;  %v3351_v23 = vrot.slane %v3350_v53, 4  ;;  %v3303_v37 = vrot.slane %v3302_v5, 1  ;;  %v3342_v29 = vrot.slane %v3341_v19, 1 }
 0x390   :  { %v8022_v61 = vpop.f32.mrf.mxu2  ;;  %v3365_v7 = vadd.f32 %v3364_v12, %v3363_v62 }
 0x391   :  { %9171 = vst [vmem:[#allocation59_spill] sm:$0xff] %v8022_v61  ;;  %v3316_v61 = vrot.slane %v3315_v34, 1  ;;  %v3352_v33 = vadd.f32 %v3351_v23, %v3350_v53  ;;  %v3304_v24 = vadd.f32 %v3303_v37, %v3302_v5  ;;  %v3343_v1 = vadd.f32 %v3342_v29, %v3341_v19 }
 0x392   :  { %v8030_v21 = vpop.f32.mrf.mxu1  ;;  %v8070_v29 = vadd.s32 48, %v3399_v39 }
 0x393   :  { %9173 = vst [vmem:[#allocation52_spill] sm:$0xff] %v8030_v21  ;;  %v3317_v45 = vadd.f32 %v3316_v61, %v3315_v34  ;;  %v3353_v38 = vrot.slane %v3352_v33, 2  ;;  %v8046_v61 = vmul.f32 0.020408163, %v3304_v24  ;;  %v8068_v19 = vmul.f32 0.020408163, %v3343_v1 }
 0x394   :  { %vm3413_vm1 = vcmp.lt.s32.totalorder %v8070_v29, 49 }
 0x395   :  { %v8042_v50 = vmul.f32 0.020408163, %v3317_v45  ;;  %v8056_v45 = vmul.f32 0.020408163, %v3330_v31  ;;  %v3354_v23 = vadd.f32 %v3353_v38, %v3352_v33  ;;  %v3415_v37 = vsub.f32 %v9124_v41, %v8046_v61 }
 0x396   :  { %v8036_v43 = vpop.f32.mrf.mxu3  ;;  %v3422_v2 = vsub.f32 %v9125_v36, %v8046_v61  ;;  %v3429_v60 = vsub.f32 %v9133_v51, %v8046_v61  ;;  %v3418_v51 = vsub.f32 %v9147_v20, %v8068_v19 }
 0x397   :  { %9175 = vst [vmem:[#allocation55_spill] sm:$0xff] %v8036_v43  ;;  %v8038_v42 = vpop.f32.mrf.mxu0  ;;  %v3416_v34 = vsub.f32 %v7893_v8, %v8042_v50  ;;  %v3423_v30 = vsub.f32 %v9105_v55, %v8042_v50  ;;  %v3417_v8 = vsub.f32 %v7924_v54, %v8056_v45  ;;  %v3424_v31 = vsub.f32 %v7914_v52, %v8056_v45 }
 0x398   :  { %v8034_v35 = vpop.f32.mrf.mxu2  ;;  %v3355_v38 = vrot.slane %v3354_v23, 1  ;;  %v3430_v33 = vsub.f32 %v7896_v15, %v8042_v50  ;;  %v3534_v36 = vmul.f32 %v3422_v2, %v3422_v2  ;;  %v3425_v15 = vsub.f32 %v9148_v27, %v8068_v19 }
 0x399   :  { %9174 = vst [vmem:[#allocation43_spill] sm:$0xff] %v8034_v35  ;;  %v3366_v35 = vrot.slane %v3365_v7, 2  ;;  %v3528_v24 = vmul.f32 %v3416_v34, %v3416_v34  ;;  %v3535_v55 = vmul.f32 %v3423_v30, %v3423_v30  ;;  %v3436_v34 = vsub.f32 %v9140_v57, %v8046_v61 }
 0x39a   :  { %v8040_v47 = vpop.f32.mrf.mxu1  ;;  %v3527_v30 = vmul.f32 %v3415_v37, %v3415_v37  ;;  %v3529_v54 = vmul.f32 %v3417_v8, %v3417_v8  ;;  %v3536_v41 = vmul.f32 %v3424_v31, %v3424_v31  ;;  %v3457_v37 = vsub.f32 %v9162_v49, %v8046_v61 }
 0x39b   :  { %v3367_v12 = vadd.f32 %v3366_v35, %v3365_v7  ;;  %v3596_v52 = vadd.f32 %v3535_v55, %v3528_v24  ;;  %v3356_v55 = vadd.f32 %v3355_v38, %v3354_v23  ;;  %v3443_v24 = vsub.f32 %v9149_v40, %v8046_v61 }
 0x39c   :  { %v3437_v8 = vsub.f32 %v7906_v3, %v8042_v50  ;;  %v3542_v31 = vmul.f32 %v3430_v33, %v3430_v33  ;;  %v3431_v57 = vsub.f32 %v7928_v58, %v8056_v45  ;;  %v3450_v27 = vsub.f32 %v9154_v48, %v8046_v61 }
 0x39d   :  { %v3368_v35 = vrot.slane %v3367_v12, 1  ;;  %v3541_v20 = vmul.f32 %v3429_v60, %v3429_v60  ;;  %v3609_v49 = vadd.f32 %v3536_v41, %v3529_v54  ;;  %v3530_v23 = vmul.f32 %v3418_v51, %v3418_v51 }
 0x39e   :  { %v8052_v53 = vpop.f32.mrf.mxu3  ;;  %v3597_v43 = vadd.f32 %v3596_v52, %v3542_v31  ;;  %v3513_v38 = vsel %vm3413_vm1, %v3457_v37, 0.0  ;;  %v8105_v33 = vmul.f32 0.020408163, %v3356_v55  ;;  %v3549_v3 = vmul.f32 %v3437_v8, %v3437_v8 }
 0x39f   :  { %9176 = vst [vmem:[#allocation25_spill] sm:$0xff] %v8052_v53  ;;  %v8054_v62 = vpop.f32.mrf.mxu0  ;;  %v3369_v2 = vadd.f32 %v3368_v35, %v3367_v12  ;;  %v3537_v12 = vmul.f32 %v3425_v15, %v3425_v15  ;;  %v3444_v35 = vsub.f32 %v7918_v28, %v8042_v50  ;;  %v3438_v60 = vsub.f32 %v7942_v26, %v8056_v45 }
 0x3a0   :  { %v8044_v21 = vpop.f32.mrf.mxu2  ;;  %v3432_v52 = vsub.f32 %v9153_v25, %v8068_v19  ;;  %v3555_v15 = vmul.f32 %v3443_v24, %v3443_v24  ;;  %v3458_v51 = vsub.f32 %v7950_v10, %v8042_v50  ;;  %v8123_v55 = vmul.f32 %v3450_v27, %v3450_v27 }
 0x3a1   :  { %v8107_v40 = vmul.f32 0.020408163, %v3369_v2  ;;  %v3622_v8 = vadd.f32 %v3537_v12, %v3530_v23  ;;  %v3550_v27 = vmul.f32 %v3438_v60, %v3438_v60  ;;  %v3459_v28 = vsub.f32 %v7976_v16, %v8056_v45 }
 0x3a2   :  { %v8058_v5 = vpop.f32.mrf.mxu1  ;;  %v3514_v23 = vsel %vm3413_vm1, %v3458_v51, 0.0  ;;  %v8151_v51 = vmul.f32 %v3513_v38, %v3513_v38 }
 0x3a3   :  { %v3420_v24 = vsub.f32 %v7845_v44, %v8107_v40  ;;  %v3427_v10 = vsub.f32 %v7860_v11, %v8107_v40  ;;  %v3515_v38 = vsel %vm3413_vm1, %v3459_v28, 0.0 }
 0x3a5   :  { %v3532_v58 = vmul.f32 %v3420_v24, %v3420_v24  ;;  %v3539_v11 = vmul.f32 %v3427_v10, %v3427_v10  ;;  %v9179_v10 = vld [vmem:[#allocation7_spill] sm:$0xff] }
 0x3a6   :  { %v8080_v1 = vpop.f32.mrf.mxu3 }
 0x3a7   :  { %9177 = vst [vmem:[#allocation65_spill] sm:$0xff] %v8080_v1  ;;  %v8082_v39 = vpop.f32.mrf.mxu0  ;;  %v3548_v1 = vmul.f32 %v3436_v34, %v3436_v34  ;;  %v3543_v34 = vmul.f32 %v3431_v57, %v3431_v57  ;;  %v3598_v57 = vadd.f32 %v3597_v43, %v3549_v3  ;;  %v3439_v3 = vsub.f32 %v9158_v0, %v8068_v19 }
 0x3a8   :  { %v8076_v7 = vpop.f32.mrf.mxu2  ;;  %v3544_v43 = vmul.f32 %v3432_v52, %v3432_v52  ;;  %v3446_v52 = vsub.f32 %v9163_v6, %v8068_v19 }
 0x3a9   :  { %v3610_v2 = vadd.f32 %v3609_v49, %v3543_v34  ;;  %v3445_v34 = vsub.f32 %v7955_v17, %v8056_v45  ;;  %v9180_v17 = vld [vmem:[#allocation71_spill] sm:$0xff] }
 0x3aa   :  { %v8088_v53 = vpop.f32.mrf.mxu1  ;;  %v3623_v25 = vadd.f32 %v3622_v8, %v3544_v43  ;;  %v3434_v8 = vsub.f32 %v9179_v10, %v8107_v40  ;;  %v3453_v0 = vsub.f32 %v9180_v17, %v8068_v19  ;;  %v9184_v17 = vld [vmem:[#allocation50_spill] sm:$0xff] }
 0x3ab   :  { %9178 = vst [vmem:[#allocation54_spill] sm:$0xff] %v8088_v53  ;;  %v3583_v53 = vadd.f32 %v3534_v36, %v3527_v30  ;;  %v3451_v36 = vsub.f32 %v7934_v14, %v8042_v50  ;;  %v3556_v14 = vmul.f32 %v3444_v35, %v3444_v35  ;;  %v3611_v26 = vadd.f32 %v3610_v2, %v3550_v27 }
 0x3ac   :  { %v3433_v2 = vsub.f32 %v7528_v4, %v8105_v33  ;;  %v3570_v27 = vmul.f32 %v3514_v23, %v3514_v23  ;;  %v3546_v23 = vmul.f32 %v3434_v8, %v3434_v8 }
 0x3ad   :  { %v3584_v41 = vadd.f32 %v3583_v53, %v3541_v20  ;;  %v3419_v20 = vsub.f32 %v7463_v32, %v8105_v33  ;;  %v3426_v53 = vsub.f32 %v7494_v22, %v8105_v33  ;;  %v3563_v12 = vmul.f32 %v3451_v36, %v3451_v36 }
 0x3ae   :  { %v8119_v30 = vpop.f32.mrf.mxu3  ;;  %v3599_v48 = vadd.f32 %v3598_v57, %v3556_v14  ;;  %v3551_v36 = vmul.f32 %v3439_v3, %v3439_v3  ;;  %v3557_v57 = vmul.f32 %v3445_v34, %v3445_v34 }
 0x3af   :  { %v8121_v37 = vpop.f32.mrf.mxu0  ;;  %v3585_v49 = vadd.f32 %v3584_v41, %v3548_v1  ;;  %v3531_v35 = vmul.f32 %v3419_v20, %v3419_v20  ;;  %v3538_v60 = vmul.f32 %v3426_v53, %v3426_v53  ;;  %v3452_v1 = vsub.f32 %v7967_v9, %v8056_v45 }
 0x3b0   :  { %v8113_v54 = vpop.f32.mrf.mxu2  ;;  %v3460_v41 = vsub.f32 %v9166_v46, %v8068_v19  ;;  %v3600_v43 = vadd.f32 %v3599_v48, %v3563_v12  ;;  %v3624_v3 = vadd.f32 %v3623_v25, %v3551_v36  ;;  %v3612_v34 = vadd.f32 %v3611_v26, %v3557_v57 }
 0x3b1   :  { %v8161_v24 = vadd.f32 %v3585_v49, %v3555_v15  ;;  %v3635_v16 = vadd.f32 %v3538_v60, %v3531_v35  ;;  %v3648_v9 = vadd.f32 %v3539_v11, %v3532_v58  ;;  %v3564_v6 = vmul.f32 %v3452_v1, %v3452_v1  ;;  %v9181_v11 = vld [vmem:[#allocation24_spill] sm:$0xff] }
 0x3b2   :  { %v8125_v31 = vpop.f32.mrf.mxu1  ;;  %v3516_v10 = vsel %vm3413_vm1, %v3460_v41, 0.0  ;;  %v3558_v15 = vmul.f32 %v3446_v52, %v3446_v52  ;;  %v3440_v48 = vsub.f32 %v7562_v63, %v8105_v33  ;;  %v3545_v25 = vmul.f32 %v3433_v2, %v3433_v2  ;;  %v9182_v58 = vld [vmem:[#allocation32_spill] sm:$0xff] }
 0x3b3   :  { %v3441_v49 = vsub.f32 %v7874_v13, %v8107_v40  ;;  %v8175_v28 = vadd.f32 %v3600_v43, %v3570_v27  ;;  %v3108_v12 = vadd.f32 %v9182_v58, %v9181_v11  ;;  %v9183_v35 = vld [vmem:[#allocation8_spill] sm:$0xff]  ;;  %v8181_v1 = vmul.f32 %v3515_v38, %v3515_v38  ;;  %v9186_v27 = vld [vmem:[#allocation9_spill] sm:$0xff]  ;;  %v9187_v38 = vld [vmem:[#allocation27_spill] sm:$0xff] }
 0x3b4   :  { %v3625_v26 = vadd.f32 %v3624_v3, %v3558_v15  ;;  %v3111_v60 = vadd.f32 %v8028_v56, %v9183_v35  ;;  %v8183_v52 = vadd.f32 %v3612_v34, %v3564_v6  ;;  %v3636_v41 = vadd.f32 %v3635_v16, %v3545_v25  ;;  %v9185_v13 = vld [vmem:[#allocation40_spill] sm:$0xff] }
 0x3b5   :  { %v3649_v36 = vadd.f32 %v3648_v9, %v3546_v23  ;;  %v3565_v57 = vmul.f32 %v3453_v0, %v3453_v0  ;;  %v3572_v2 = vmul.f32 %v3516_v10, %v3516_v10  ;;  %v3146_v8 = vadd.f32 %v9185_v13, %v9184_v17  ;;  %v9188_v0 = vld [vmem:[#allocation53_spill] sm:$0xff]  ;;  %v9189_v17 = vld [vmem:[#allocation52_spill] sm:$0xff] }
 0x3b6   :  { %v8157_v20 = vpop.f32.mrf.mxu3  ;;  %v3114_v43 = vadd.f32 %v8038_v42, %v9186_v27  ;;  %v3552_v15 = vmul.f32 %v3440_v48, %v3440_v48  ;;  %v3448_v11 = vsub.f32 %v7879_v59, %v8107_v40  ;;  %v3553_v56 = vmul.f32 %v3441_v49, %v3441_v49  ;;  %v9190_v48 = vld [vmem:[#allocation12_spill] sm:$0xff]  ;;  %v9193_v59 = vld [vmem:[#allocation59_spill] sm:$0xff] }
 0x3b7   :  { %v8159_v53 = vpop.f32.mrf.mxu0  ;;  %v3117_v6 = vadd.f32 %v8054_v62, %v9187_v38  ;;  %v3626_v16 = vadd.f32 %v3625_v26, %v3565_v57  ;;  %v3187_v10 = vadd.f32 %v9188_v0, %v3146_v8  ;;  %v3149_v13 = vadd.f32 %v8014_v18, %v3108_v12  ;;  %v9191_v58 = vld [vmem:[#allocation16_spill] sm:$0xff]  ;;  %v9192_v62 = vld [vmem:[#allocation13_spill] sm:$0xff]  ;;  %v9194_v57 = vld [vmem:[#allocation43_spill] sm:$0xff] }
 0x3b8   :  { %v8149_v14 = vpop.f32.mrf.mxu2  ;;  %v3152_v25 = vadd.f32 %v9189_v17, %v3111_v60  ;;  %v3447_v23 = vsub.f32 %v9190_v48, %v8105_v33  ;;  %v3454_v49 = vsub.f32 %v9191_v58, %v8105_v33  ;;  %v3637_v35 = vadd.f32 %v3636_v41, %v3552_v15  ;;  %v9195_v0 = vld [vmem:[#allocation17_spill] sm:$0xff]  ;;  %v9196_v48 = vld [vmem:[#allocation42_spill] sm:$0xff]  ;;  %v9198_v15 = vld [vmem:[#allocation31_spill] sm:$0xff] }
 0x3b9   :  { %v3650_v27 = vadd.f32 %v3649_v36, %v3553_v56  ;;  %v3455_v38 = vsub.f32 %v9192_v62, %v8107_v40  ;;  %v3190_v26 = vadd.f32 %v9193_v59, %v3149_v13  ;;  %v3155_v18 = vadd.f32 %v8040_v47, %v3114_v43  ;;  %v9197_v41 = vld [vmem:[#allocation2_spill] sm:$0xff]  ;;  %v9199_v59 = vld [vmem:[#allocation57_spill] sm:$0xff] }
 0x3ba   :  { %v8163_v46 = vpop.f32.mrf.mxu1  ;;  %v3193_v8 = vadd.f32 %v9194_v57, %v3152_v25  ;;  %v3560_v12 = vmul.f32 %v3448_v11, %v3448_v11  ;;  %v3158_v60 = vadd.f32 %v8058_v5, %v3117_v6  ;;  %v3120_v17 = vadd.f32 %v8082_v39, %v9195_v0  ;;  %v9200_v6 = vld [vmem:[#allocation64_spill] sm:$0xff]  ;;  %v9201_v57 = vld [vmem:[#allocation55_spill] sm:$0xff] }
 0x3bb   :  { %v3123_v58 = vadd.f32 %v8121_v37, %v9196_v48  ;;  %v3461_v36 = vsub.f32 %v9197_v41, %v8105_v33  ;;  %v3462_v56 = vsub.f32 %v9198_v15, %v8107_v40  ;;  %v3228_v13 = vadd.f32 %v9199_v59, %v3187_v10  ;;  %v9202_v37 = vld [vmem:[#allocation63_spill] sm:$0xff]  ;;  %v9203_v10 = vld [vmem:[#allocation54_spill] sm:$0xff] }
 0x3bc   :  { %v3196_v25 = vadd.f32 %v8044_v21, %v3155_v18  ;;  %v3559_v47 = vmul.f32 %v3447_v23, %v3447_v23  ;;  %v3566_v43 = vmul.f32 %v3454_v49, %v3454_v49  ;;  %v3651_v11 = vadd.f32 %v3650_v27, %v3560_v12  ;;  %v9204_v27 = vld [vmem:[#allocation25_spill] sm:$0xff] }
 0x3bd   :  { %v3199_v5 = vadd.f32 %v8076_v7, %v3158_v60  ;;  %v3231_v39 = vadd.f32 %v9200_v6, %v3190_v26  ;;  %v3234_v0 = vadd.f32 %v9201_v57, %v3193_v8  ;;  %v3126_v48 = vadd.f32 %v8159_v53, %v9202_v37  ;;  %v9205_v12 = vld [vmem:[#allocation65_spill] sm:$0xff] }
 0x3be   :  { %v8193_v34 = vpop.f32.mrf.mxu3  ;;  %v3638_v15 = vadd.f32 %v3637_v35, %v3559_v47  ;;  %v3567_v63 = vmul.f32 %v3455_v38, %v3455_v38  ;;  %v3161_v59 = vadd.f32 %v9203_v10, %v3120_v17  ;;  %v3164_v21 = vadd.f32 %v8125_v31, %v3123_v58 }
 0x3bf   :  { %v3268_v9 = vpop.f32.mrf.mxu0  ;;  %v3518_v7 = vsel %vm3413_vm1, %v3462_v56, 0.0  ;;  %v3237_v26 = vadd.f32 %v9204_v27, %v3196_v25  ;;  %v3240_v35 = vadd.f32 %v9205_v12, %v3199_v5  ;;  %v3167_v31 = vadd.f32 %v8163_v46, %v3126_v48 }
 0x3c0   :  { %v3207_v3 = vpop.f32.mrf.mxu2  ;;  %v8223_v41 = vadd.f32 %v3268_v9, %v3228_v13  ;;  %v3652_v9 = vadd.f32 %v3651_v11, %v3567_v63  ;;  %v3202_v38 = vadd.f32 %v8113_v54, %v3161_v59  ;;  %v3205_v60 = vadd.f32 %v8149_v14, %v3164_v21 }
 0x3c1   :  { %v3627_v56 = vadd.f32 %v3626_v16, %v3572_v2  ;;  %v3517_v63 = vsel %vm3413_vm1, %v3461_v36, 0.0  ;;  %v3639_v13 = vadd.f32 %v3638_v15, %v3566_v43  ;;  %v3574_v47 = vmul.f32 %v3518_v7, %v3518_v7 }
 0x3c2   :  { %v3274_v42 = vpop.f32.mrf.mxu1  ;;  %v3370_v58 = vsel %vm925_vm0, %v8223_v41, 0.0  ;;  %v3208_v54 = vadd.f32 %v3207_v3, %v3167_v31  ;;  %v3587_v11 = vadd.f32 %v8161_v24, %v8123_v55  ;;  %v3614_v5 = vadd.f32 %v8183_v52, %v8181_v1 }
 0x3c3   :  { %v8230_v8 = vadd.f32 %v3274_v42, %v3234_v0  ;;  %v3243_v2 = vadd.f32 %v8119_v30, %v3202_v38  ;;  %v3573_v6 = vmul.f32 %v3517_v63, %v3517_v63  ;;  %v3653_v36 = vadd.f32 %v3652_v9, %v3574_v47 }
 0x3c4   :  { %v3246_v15 = vadd.f32 %v8157_v20, %v3205_v60  ;;  %v3249_v1 = vadd.f32 %v8193_v34, %v3208_v54  ;;  %v3588_v20 = vadd.f32 %v3587_v11, %v8151_v51  ;;  %v3616_v48 = vrot.slane %v3614_v5, 4 }
 0x3c5   :  { %v3373_v14 = vsel %vm925_vm0, %v8230_v8, 0.0  ;;  %v3640_v24 = vadd.f32 %v3639_v13, %v3573_v6  ;;  %v3655_v10 = vrot.slane %v3653_v36, 4 }
 0x3c6   :  { %v3286_v23 = vpop.f32.mrf.mxu3  ;;  %v3617_v9 = vadd.f32 %v3616_v48, %v3614_v5 }
 0x3c7   :  { %v3271_v49 = vpop.f32.mrf.mxu0  ;;  %v8264_v52 = vadd.f32 %v3286_v23, %v3246_v15  ;;  %v3642_v34 = vrot.slane %v3640_v24, 4  ;;  %v3656_v51 = vadd.f32 %v3655_v10, %v3653_v36 }
 0x3c8   :  { %v3280_v62 = vpop.f32.mrf.mxu2  ;;  %v8232_v18 = vadd.f32 %v3271_v49, %v3231_v39  ;;  %v3629_v39 = vrot.slane %v3627_v56, 4  ;;  %v3618_v63 = vrot.slane %v3617_v9, 2 }
 0x3c9   :  { %v8248_v46 = vadd.f32 %v3280_v62, %v3240_v35  ;;  %v3603_v62 = vrot.slane %v8175_v28, 4  ;;  %v3643_v31 = vadd.f32 %v3642_v34, %v3640_v24 }
 0x3ca   :  { %v3277_v53 = vpop.f32.mrf.mxu1  ;;  %v3371_v17 = vsel %vm925_vm0, %v8232_v18, 0.0  ;;  %v3630_v27 = vadd.f32 %v3629_v39, %v3627_v56  ;;  %v3619_v11 = vadd.f32 %v3618_v63, %v3617_v9 }
 0x3cb   :  { %v8242_v42 = vadd.f32 %v3277_v53, %v3237_v26  ;;  %v3372_v25 = vadd.f32 %v3371_v17, %v3370_v58  ;;  %v3377_v30 = vsel %vm925_vm0, %v8248_v46, 0.0  ;;  %v3604_v7 = vadd.f32 %v3603_v62, %v8175_v28 }
 0x3cc   :  { %v3381_v26 = vsel %vm925_vm0, %v8264_v52, 0.0  ;;  %v3590_v53 = vrot.slane %v3588_v20, 4  ;;  %v3631_v60 = vrot.slane %v3630_v27, 2  ;;  %v3657_v28 = vrot.slane %v3656_v51, 2 }
 0x3cd   :  { %v3374_v16 = vadd.f32 %v3373_v14, %v3372_v25  ;;  %v3375_v3 = vsel %vm925_vm0, %v8242_v42, 0.0  ;;  %v3605_v38 = vrot.slane %v3604_v7, 2  ;;  %v3644_v47 = vrot.slane %v3643_v31, 2 }
 0x3ce   :  { %v3289_v55 = vpop.f32.mrf.mxu3  ;;  %v3591_v17 = vadd.f32 %v3590_v53, %v3588_v20  ;;  %v3632_v25 = vadd.f32 %v3631_v60, %v3630_v27  ;;  %v3658_v5 = vadd.f32 %v3657_v28, %v3656_v51 }
 0x3cf   :  { %v3376_v57 = vadd.f32 %v3375_v3, %v3374_v16  ;;  %v8269_v21 = vadd.f32 %v3289_v55, %v3249_v1  ;;  %v3606_v13 = vadd.f32 %v3605_v38, %v3604_v7  ;;  %v3645_v36 = vadd.f32 %v3644_v47, %v3643_v31 }
 0x3d0   :  { %v3283_v43 = vpop.f32.mrf.mxu2  ;;  %v3592_v14 = vrot.slane %v3591_v17, 2  ;;  %v3633_v6 = vrot.slane %v3632_v25, 1  ;;  %v3659_v62 = vrot.slane %v3658_v5, 1 }
 0x3d1   :  { %v8259_v0 = vadd.f32 %v3283_v43, %v3243_v2  ;;  %v3378_v37 = vadd.f32 %v3377_v30, %v3376_v57  ;;  %v3383_v12 = vsel %vm925_vm0, %v8269_v21, 0.0  ;;  %v3607_v16 = vrot.slane %v3606_v13, 1 }
 0x3d2   :  { %v3593_v3 = vadd.f32 %v3592_v14, %v3591_v17  ;;  %v3620_v43 = vrot.slane %v3619_v11, 1  ;;  %v3634_v55 = vadd.f32 %v3633_v6, %v3632_v25  ;;  %v3646_v24 = vrot.slane %v3645_v36, 1 }
 0x3d3   :  { %v3379_v59 = vsel %vm925_vm0, %v8259_v0, 0.0  ;;  %v3608_v57 = vadd.f32 %v3607_v16, %v3606_v13 }
 0x3d4   :  { %v3380_v49 = vadd.f32 %v3379_v59, %v3378_v37  ;;  %v3594_v30 = vrot.slane %v3593_v3, 1  ;;  %v3621_v20 = vadd.f32 %v3620_v43, %v3619_v11  ;;  %v3660_v37 = vadd.f32 %v3659_v62, %v3658_v5 }
 0x3d5   :  { %v3683_v7 = vmul.f32 0.020408163, %v3608_v57  ;;  %v3685_v27 = vmul.f32 0.020408163, %v3634_v55  ;;  %v3647_v34 = vadd.f32 %v3646_v24, %v3645_v36 }
 0x3d6   :  { %v3382_v23 = vadd.f32 %v3381_v26, %v3380_v49  ;;  %v3595_v51 = vadd.f32 %v3594_v30, %v3593_v3 }
 0x3d7   :  { %v8294_v63 = vadd.f32 1e-05, %v3683_v7  ;;  %v3686_v13 = vmul.f32 0.020408163, %v3647_v34 }
 0x3d8   :  { %v3384_v35 = vadd.f32 %v3383_v12, %v3382_v23  ;;  %v3684_v12 = vmul.f32 0.020408163, %v3621_v20 }
 0x3d9   :  { %4230 = vrsqrt.f32 %v8294_v63  ;;  %vm3712_vm4 = vweird.f32 %v8294_v63 }
 0x3da   :  { %v3385_v58 = vrot.slane %v3384_v35, 4  ;;  %v8299_v14 = vadd.f32 1e-05, %v3684_v12 }
 0x3dc   :  { %v3386_v56 = vadd.f32 %v3385_v58, %v3384_v35  ;;  %v3687_v35 = vmul.f32 0.020408163, %v3660_v37  ;;  %vm3722_vm10 = vweird.f32 %v8299_v14 }
 0x3de   :  { %v3387_v54 = vrot.slane %v3386_v56, 2 }
 0x3df   :  { %v8318_v24 = vpop.eup %4230 }
 0x3e0   :  { %v3388_v2 = vadd.f32 %v3387_v54, %v3386_v56  ;;  %v8296_v56 = vadd.f32 1e-05, %v3685_v27  ;;  %v3682_v54 = vmul.f32 0.020408163, %v3595_v51  ;;  %v3707_v27 = vmul.f32 %v8318_v24, %v8294_v63 }
 0x3e1   :  { %vm3713_vm2 = vweird.f32 %v8318_v24 }
 0x3e2   :  { %v3389_v15 = vrot.slane %v3388_v2, 1  ;;  %4232 = vrsqrt.f32 %v8296_v56  ;;  %v8311_v62 = vadd.f32 1e-05, %v3682_v54  ;;  %vm8361_vm6 = vmor %vm3712_vm4, %vm3713_vm2  ;;  %vm3732_vm7 = vweird.f32 %v8296_v56 }
 0x3e3   :  { %4234 = vrsqrt.f32 %v8299_v14 }
 0x3e4   :  { %v3390_v39 = vadd.f32 %v3389_v15, %v3388_v2  ;;  %v8303_v2 = vadd.f32 1e-05, %v3687_v35  ;;  %v8308_v15 = vadd.f32 1e-05, %v3686_v13 }
 0x3e6   :  { %v8276_v1 = vmul.f32 0.020408163, %v3390_v39  ;;  %4236 = vrsqrt.f32 %v8303_v2  ;;  %vm3752_vm14 = vweird.f32 %v8303_v2 }
 0x3e7   :  { %4238 = vrsqrt.f32 %v8308_v15 }
 0x3e8   :  { %v3421_v48 = vsub.f32 %v8223_v41, %v8276_v1  ;;  %v3428_v10 = vsub.f32 %v8232_v18, %v8276_v1  ;;  %v3435_v59 = vsub.f32 %v8230_v8, %v8276_v1  ;;  %v3442_v49 = vsub.f32 %v8242_v42, %v8276_v1  ;;  %v8321_v20 = vpop.eup %4232 }
 0x3e9   :  { %v3449_v26 = vsub.f32 %v8248_v46, %v8276_v1  ;;  %v3463_v38 = vsub.f32 %v8264_v52, %v8276_v1  ;;  %v3456_v60 = vsub.f32 %v8259_v0, %v8276_v1  ;;  %4240 = vrsqrt.f32 %v8311_v62  ;;  %v8323_v37 = vpop.eup %4234 }
 0x3ea   :  { %v3533_v23 = vmul.f32 %v3421_v48, %v3421_v48  ;;  %v3540_v53 = vmul.f32 %v3428_v10, %v3428_v10  ;;  %v3547_v9 = vmul.f32 %v3435_v59, %v3435_v59  ;;  %v3554_v31 = vmul.f32 %v3442_v49, %v3442_v49 }
 0x3eb   :  { %v3561_v25 = vmul.f32 %v3449_v26, %v3449_v26  ;;  %v3519_v11 = vsel %vm3413_vm1, %v3463_v38, 0.0  ;;  %v3568_v16 = vmul.f32 %v3456_v60, %v3456_v60  ;;  %v3727_v59 = vmul.f32 %v8321_v20, %v8296_v56 }
 0x3ec   :  { %v3661_v58 = vsel %vm925_vm0, %v3533_v23, 0.0  ;;  %v3662_v17 = vsel %vm925_vm0, %v3540_v53, 0.0  ;;  %v3664_v47 = vsel %vm925_vm0, %v3547_v9, 0.0  ;;  %v3666_v6 = vsel %vm925_vm0, %v3554_v31, 0.0  ;;  %v8325_v10 = vpop.eup %4236 }
 0x3ed   :  { %v3663_v28 = vadd.f32 %v3662_v17, %v3661_v58  ;;  %v3575_v3 = vmul.f32 %v3519_v11, %v3519_v11  ;;  %v3668_v43 = vsel %vm925_vm0, %v3561_v25, 0.0  ;;  %v3670_v39 = vsel %vm925_vm0, %v3568_v16, 0.0  ;;  %v8329_v7 = vpop.eup %4238 }
 0x3ee   :  { %v3717_v26 = vmul.f32 %v8323_v37, %v8299_v14  ;;  %v3747_v23 = vmul.f32 %v8325_v10, %v8303_v2  ;;  %v3728_v9 = vmul.f32 %v8321_v20, %v3727_v59  ;;  %v3737_v51 = vmul.f32 %v8329_v7, %v8308_v15  ;;  %v3766_v59 = vld [vmem:[%s8800_s3] sm:$0x7f] }
 0x3ef   :  { %v3665_v5 = vadd.f32 %v3664_v47, %v3663_v28  ;;  %v3672_v55 = vsel %vm925_vm0, %v3575_v3, 0.0  ;;  %v8333_v34 = vpop.eup %4240  ;;  %v3708_v38 = vmul.f32 %v8318_v24, %v3707_v27  ;;  %vm3733_vm3 = vweird.f32 %v8321_v20 }
 0x3f0   :  { %v3697_v35 = vmul.f32 %v8333_v34, %v8311_v62  ;;  %v3718_v60 = vmul.f32 %v8323_v37, %v3717_v26  ;;  %v3748_v31 = vmul.f32 %v8325_v10, %v3747_v23  ;;  %v3729_v17 = vmul.f32 0.5, %v3728_v9  ;;  %vm8373_vm11 = vmor %vm3732_vm7, %vm3733_vm3 }
 0x3f1   :  { %v3667_v36 = vadd.f32 %v3666_v6, %v3665_v5  ;;  %v3738_v28 = vmul.f32 %v8329_v7, %v3737_v51  ;;  %v3709_v47 = vmul.f32 0.5, %v3708_v38  ;;  %vm3723_vm5 = vweird.f32 %v8323_v37  ;;  %v9217_v38 = vld [vmem:[#allocation14_spill] sm:$0xff] }
 0x3f2   :  { %v3698_v25 = vmul.f32 %v8333_v34, %v3697_v35  ;;  %v3719_v54 = vmul.f32 0.5, %v3718_v60  ;;  %v3749_v11 = vmul.f32 0.5, %v3748_v31  ;;  %v3730_v16 = vsub.f32 1.5, %v3729_v17  ;;  %vm8377_vm12 = vmor %vm3722_vm10, %vm3723_vm5 }
 0x3f3   :  { %v3669_v29 = vadd.f32 %v3668_v43, %v3667_v36  ;;  %v3739_v6 = vmul.f32 0.5, %v3738_v28  ;;  %v3710_v43 = vsub.f32 1.5, %v3709_v47  ;;  %vm3753_vm8 = vweird.f32 %v8325_v10 }
 0x3f4   :  { %v3699_v3 = vmul.f32 0.5, %v3698_v25  ;;  %vm3703_vm9 = vweird.f32 %v8333_v34  ;;  %v3769_v63 = vperm.slane %v3766_v59, 1  ;;  %vm3743_vm13 = vweird.f32 %v8329_v7  ;;  %vm8390_vm15 = vmor %vm3752_vm14, %vm3753_vm8 }
 0x3f5   :  { %v3671_v57 = vadd.f32 %v3670_v39, %v3669_v29  ;;  %v3720_v29 = vsub.f32 1.5, %v3719_v54  ;;  %v3750_v39 = vsub.f32 1.5, %v3749_v11  ;;  %v3770_v35 = vperm.slane %v3766_v59, 2 }
 0x3f6   :  { %v3773_v60 = vperm.slane %v3766_v59, 5  ;;  %vm3742_vm1 = vweird.f32 %v8308_v15  ;;  %v3772_v17 = vperm.slane %v3766_v59, 4  ;;  %vm3702_vm3 = vweird.f32 %v8311_v62 }
 0x3f7   :  { %v3673_v30 = vadd.f32 %v3672_v55, %v3671_v57  ;;  %v3731_v57 = vmul.f32 %v8321_v20, %v3730_v16  ;;  %v3740_v55 = vsub.f32 1.5, %v3739_v6  ;;  %v3721_v27 = vmul.f32 %v8323_v37, %v3720_v29  ;;  %vm3744_vm2 = vmor %vm3742_vm1, %vm3743_vm13 }
 0x3f8   :  { %v3751_v26 = vmul.f32 %v8325_v10, %v3750_v39  ;;  %vm8407_vm4 = vmor %vm3702_vm3, %vm3703_vm9  ;;  %v3768_v11 = vperm.slane %v3766_v59, 0  ;;  %v3774_v6 = vperm.slane %v3766_v59, 6  ;;  %vm3812_vm8 = vcmask 1042434  }
 0x3f9   :  { %v3676_v48 = vrot.slane %v3673_v30, 4  ;;  %v3735_v56 = vsel %vm8373_vm11, %v8321_v20, %v3731_v57  ;;  %vm3810_vm9 = vcmask 1040384   ;;  %vm3816_vm10 = vcmask 1044484  }
 0x3fa   :  { %v3755_v2 = vsel %vm8390_vm15, %v8325_v10, %v3751_v26  ;;  %vm3814_vm11 = vcmask 1041408   ;;  %vm3820_vm13 = vcmask 1043456  }
 0x3fb   :  { %v3677_v49 = vadd.f32 %v3676_v48, %v3673_v30  ;;  %v3700_v30 = vsub.f32 1.5, %v3699_v3  ;;  %v3711_v48 = vmul.f32 %v8318_v24, %v3710_v43 }
 0x3fd   :  { %v3678_v53 = vrot.slane %v3677_v49, 2  ;;  %v3715_v14 = vsel %vm8361_vm6, %v8318_v24, %v3711_v48  ;;  %v3701_v20 = vmul.f32 %v8333_v34, %v3700_v30 }
 0x3ff   :  { %v3679_v12 = vadd.f32 %v3678_v53, %v3677_v49  ;;  %v3771_v53 = vperm.slane %v3766_v59, 3  ;;  %v3705_v10 = vsel %vm8407_vm4, %v8333_v34, %v3701_v20 }
 0x400   :  { %v3782_v39 = vmul.f32 %v3768_v11, %v3705_v10 }
 0x401   :  { %v3680_v58 = vrot.slane %v3679_v12, 1  ;;  %v3785_v24 = vmul.f32 %v3771_v53, %v3735_v56 }
 0x402   :  { %v8422_v59 = vperm.slane %v3782_v39, 0 }
 0x403   :  { %v3681_v13 = vadd.f32 %v3680_v58, %v3679_v12  ;;  %v3741_v12 = vmul.f32 %v8329_v7, %v3740_v55  ;;  %v3725_v58 = vsel %vm8377_vm12, %v8323_v37, %v3721_v27  ;;  %v3787_v37 = vmul.f32 %v3773_v60, %v3755_v2 }
 0x404   :  { %v3784_v15 = vmul.f32 %v3770_v35, %v3725_v58  ;;  %vm3818_vm12 = vcmask 1045508  }
 0x405   :  { %v3688_v5 = vmul.f32 0.020408163, %v3681_v13  ;;  %v3783_v13 = vmul.f32 %v3769_v63, %v3715_v14  ;;  %v3745_v25 = vsel %vm3744_vm2, %v8329_v7, %v3741_v12  ;;  %v3795_v43 = vmul.f32 %v3787_v37, %v8107_v40  ;;  %v9216_v12 = vld [vmem:[#allocation33_spill] sm:$0xff] }
 0x406   :  { %v3786_v62 = vmul.f32 %v3772_v17, %v3745_v25  ;;  %v3792_v3 = vmul.f32 %v3784_v15, %v8056_v45  ;;  %v8426_v63 = vperm.slane %v3784_v15, 0  ;;  %v3831_v14 = vmul.f32 %v8422_v59, %v9216_v12  ;;  %v9219_v25 = vld [vmem:[#allocation15_spill] sm:$0xff] }
 0x407   :  { %v8349_v36 = vadd.f32 1e-05, %v3688_v5  ;;  %v3793_v5 = vmul.f32 %v3785_v24, %v8068_v19  ;;  %v3791_v7 = vmul.f32 %v3783_v13, %v8042_v50  ;;  %v3808_v49 = vrot.slane %v3795_v43, 3 }
 0x408   :  { %v3794_v34 = vmul.f32 %v3786_v62, %v8105_v33  ;;  %v3805_v48 = vrot.slane %v3792_v3, 6  ;;  %v3790_v50 = vmul.f32 %v3782_v39, %v8046_v61  ;;  %v8424_v26 = vperm.slane %v3783_v13, 0  ;;  %v3789_v61 = vld [vmem:[%s8801_s4] sm:$0x7f] }
 0x409   :  { %4242 = vrsqrt.f32 %v8349_v36  ;;  %vm3762_vm6 = vweird.f32 %v8349_v36  ;;  %v3806_v57 = vrot.slane %v3793_v5, 5  ;;  %v3804_v30 = vrot.slane %v3791_v7, 7  ;;  %v9220_v3 = vld [vmem:[#allocation34_spill] sm:$0xff] }
 0x40a   :  { %v8433_v51 = vperm.slane %v3786_v62, 0  ;;  %v3832_v60 = vmul.f32 %v8424_v26, %v9217_v38  ;;  %v8441_v58 = vperm.slane %v3787_v37, 0  ;;  %v3838_v43 = vmul.f32 %v8422_v59, %v9220_v3 }
 0x40b   :  { %v3813_v45 = vsel %vm3812_vm8, %v3805_v48, %v3806_v57  ;;  %v3811_v33 = vsel %vm3810_vm9, %v3790_v50, %v3804_v30  ;;  %v9222_v57 = vld [vmem:[#allocation3_spill] sm:$0xff] }
 0x40c   :  { %v3815_v53 = vsel %vm3814_vm11, %v3811_v33, %v3813_v45  ;;  %v3835_v15 = vmul.f32 %v8433_v51, %v7463_v32  ;;  %v9225_v33 = vld [vmem:[#allocation35_spill] sm:$0xff] }
 0x40f   :  { %v4243_v9 = vpop.eup %4242 }
 0x410   :  { %v3757_v31 = vmul.f32 %v4243_v9, %v8349_v36  ;;  %vm3763_vm5 = vweird.f32 %v4243_v9  ;;  %v3807_v36 = vrot.slane %v3794_v34, 4  ;;  %v3840_v34 = vmul.f32 %v8426_v63, %v9222_v57 }
 0x411   :  { %vm3764_vm7 = vmor %vm3762_vm6, %vm3763_vm5 }
 0x412   :  { %v3758_v28 = vmul.f32 %v4243_v9, %v3757_v31  ;;  %v3817_v23 = vsel %vm3816_vm10, %v3807_v36, %v3808_v49  ;;  %v9218_v31 = vld [vmem:[#allocation4_spill] sm:$0xff]  ;;  %v3842_v49 = vmul.f32 %v8433_v51, %v7494_v22 }
 0x413   :  { %v3833_v20 = vmul.f32 %v8426_v63, %v9218_v31  ;;  %v3849_v31 = vmul.f32 %v8433_v51, %v7528_v4 }
 0x414   :  { %v3759_v54 = vmul.f32 0.5, %v3758_v28 }
 0x416   :  { %v3760_v16 = vsub.f32 1.5, %v3759_v54 }
 0x418   :  { %v3761_v29 = vmul.f32 %v4243_v9, %v3760_v16  ;;  %v3836_v16 = vmul.f32 %v8441_v58, %v7845_v44  ;;  %v9221_v44 = vld [vmem:[#allocation44_spill] sm:$0xff] }
 0x419   :  { %v3839_v39 = vmul.f32 %v8424_v26, %v9221_v44 }
 0x41a   :  { %v3765_v55 = vsel %vm3764_vm7, %v4243_v9, %v3761_v29  ;;  %v8431_v9 = vperm.slane %v3785_v24, 0 }
 0x41b   :  { %v3788_v19 = vmul.f32 %v3774_v6, %v3765_v55 }
 0x41c   :  { %v3834_v47 = vmul.f32 %v8431_v9, %v9219_v25  ;;  %v9229_v25 = vld [vmem:[#allocation7_spill] sm:$0xff] }
 0x41d   :  { %v3796_v40 = vmul.f32 %v3788_v19, %v8276_v1  ;;  %v8443_v2 = vperm.slane %v3788_v19, 0  ;;  %v9223_v19 = vld [vmem:[#allocation19_spill] sm:$0xff] }
 0x41e   :  { %v3841_v30 = vmul.f32 %v8431_v9, %v9223_v19 }
 0x41f   :  { %v3809_v27 = vrot.slane %v3796_v40, 2  ;;  %v3837_v32 = vmul.f32 %v8443_v2, %v8223_v41  ;;  %v9224_v40 = vld [vmem:[#allocation6_spill] sm:$0xff] }
 0x420   :  { %v3843_v45 = vmul.f32 %v8441_v58, %v9224_v40 }
 0x421   :  { %v3819_v1 = vsel %vm3818_vm12, %v3817_v23, %v3809_v27  ;;  %v3844_v27 = vmul.f32 %v8443_v2, %v8232_v18  ;;  %v3845_v23 = vmul.f32 %v8422_v59, %v9225_v33 }
 0x422   :  { %v3821_v56 = vsel %vm3820_vm13, %v3815_v53, %v3819_v1  ;;  %v9226_v53 = vld [vmem:[#allocation28_spill] sm:$0xff] }
 0x423   :  { %v3823_v35 = vsub.f32 %v3789_v61, %v3821_v56  ;;  %v3846_v1 = vmul.f32 %v8424_v26, %v9226_v53  ;;  %v9227_v56 = vld [vmem:[#allocation45_spill] sm:$0xff] }
 0x424   :  { %v3847_v12 = vmul.f32 %v8426_v63, %v9227_v56 }
 0x425   :  { %v8445_v17 = vperm.slane %v3823_v35, 0  ;;  %v8447_v24 = vperm.slane %v3823_v35, 1  ;;  %v8449_v28 = vperm.slane %v3823_v35, 2  ;;  %v8451_v13 = vperm.slane %v3823_v35, 3 }
 0x426   :  { %v8457_v54 = vperm.slane %v3823_v35, 4  ;;  %v8459_v37 = vperm.slane %v3823_v35, 5  ;;  %v8461_v10 = vperm.slane %v3823_v35, 6  ;;  %v9228_v35 = vld [vmem:[#allocation20_spill] sm:$0xff] }
 0x427   :  { %v3902_v11 = vadd.f32 %v8445_v17, %v3831_v14  ;;  %v3903_v5 = vadd.f32 %v8447_v24, %v3832_v60  ;;  %v3904_v62 = vadd.f32 %v8449_v28, %v3833_v20  ;;  %v3905_v7 = vadd.f32 %v8451_v13, %v3834_v47 }
 0x428   :  { %v3906_v6 = vadd.f32 %v8457_v54, %v3835_v15  ;;  %v3907_v29 = vadd.f32 %v8459_v37, %v3836_v16  ;;  %v3908_v41 = vadd.f32 %v8461_v10, %v3837_v32  ;;  %v3909_v55 = vadd.f32 %v8445_v17, %v3838_v43 }
 0x429   :  { %3958 = vst [vmem:[%s8802_s5] sm:$0xff] %v3902_v11  ;;  %v3910_v48 = vadd.f32 %v8447_v24, %v3839_v39  ;;  %v3911_v50 = vadd.f32 %v8449_v28, %v3840_v34  ;;  %v3912_v36 = vadd.f32 %v8451_v13, %v3841_v30  ;;  %v3913_v22 = vadd.f32 %v8457_v54, %v3842_v49 }
 0x42a   :  { %3959 = vst [vmem:[%s8802_s5 + $0x8] sm:$0xff] %v3903_v5  ;;  %v3914_v61 = vadd.f32 %v8459_v37, %v3843_v45  ;;  %v3915_v18 = vadd.f32 %v8461_v10, %v3844_v27  ;;  %v3916_v14 = vadd.f32 %v8445_v17, %v3845_v23  ;;  %v3848_v38 = vmul.f32 %v8431_v9, %v9228_v35  ;;  %v9230_v5 = vld [vmem:[#allocation36_spill] sm:$0xff] }
 0x42b   :  { %3960 = vst [vmem:[%s8802_s5 + $0x10] sm:$0xff] %v3904_v62  ;;  %v3917_v60 = vadd.f32 %v8447_v24, %v3846_v1  ;;  %v3918_v20 = vadd.f32 %v8449_v28, %v3847_v12  ;;  %v3850_v47 = vmul.f32 %v8441_v58, %v9229_v25  ;;  %v3851_v11 = vmul.f32 %v8443_v2, %v8230_v8 }
 0x42c   :  { %3961 = vst [vmem:[%s8802_s5 + $0x18] sm:$0xff] %v3905_v7  ;;  %v3919_v15 = vadd.f32 %v8451_v13, %v3848_v38  ;;  %v3920_v4 = vadd.f32 %v8457_v54, %v3849_v31  ;;  %v3852_v62 = vmul.f32 %v8422_v59, %v9230_v5  ;;  %v9231_v7 = vld [vmem:[#allocation18_spill] sm:$0xff] }
 0x42d   :  { %3962 = vst [vmem:[%s8802_s5 + $0x20] sm:$0xff] %v3906_v6  ;;  %v3921_v16 = vadd.f32 %v8459_v37, %v3850_v47  ;;  %v3853_v32 = vmul.f32 %v8424_v26, %v9231_v7  ;;  %v3922_v8 = vadd.f32 %v8461_v10, %v3851_v11  ;;  %v9232_v6 = vld [vmem:[#allocation47_spill] sm:$0xff] }
 0x42e   :  { %3963 = vst [vmem:[%s8802_s5 + $0x28] sm:$0xff] %v3907_v29  ;;  %v3854_v3 = vmul.f32 %v8426_v63, %v9232_v6  ;;  %v3923_v43 = vadd.f32 %v8445_v17, %v3852_v62  ;;  %v9233_v29 = vld [vmem:[#allocation21_spill] sm:$0xff] }
 0x42f   :  { %3964 = vst.msk [vmem:[%s8802_s5 + $0x30] sm:$0xff] %vm925_vm0, %v3908_v41  ;;  %v3855_v44 = vmul.f32 %v8431_v9, %v9233_v29  ;;  %v3924_v39 = vadd.f32 %v8447_v24, %v3853_v32  ;;  %v9234_v41 = vld [vmem:[#allocation5_spill] sm:$0xff] }
 0x430   :  { %3965 = vst [vmem:[%s8802_s5 + $0x38] sm:$0xff] %v3909_v55  ;;  %v3856_v57 = vmul.f32 %v8433_v51, %v9234_v41  ;;  %v3925_v34 = vadd.f32 %v8449_v28, %v3854_v3  ;;  %v9235_v55 = vld [vmem:[#allocation26_spill] sm:$0xff] }
 0x431   :  { %3966 = vst [vmem:[%s8802_s5 + $0x40] sm:$0xff] %v3910_v48  ;;  %v3857_v19 = vmul.f32 %v8441_v58, %v9235_v55  ;;  %v3926_v30 = vadd.f32 %v8451_v13, %v3855_v44  ;;  %v3858_v48 = vmul.f32 %v8443_v2, %v8242_v42 }
 0x432   :  { %3967 = vst [vmem:[%s8802_s5 + $0x48] sm:$0xff] %v3911_v50  ;;  %v3927_v49 = vadd.f32 %v8457_v54, %v3856_v57  ;;  %v9236_v50 = vld [vmem:[#allocation37_spill] sm:$0xff]  ;;  %v9248_v57 = vld [vmem:[#allocation30_spill] sm:$0xff] }
 0x433   :  { %3968 = vst [vmem:[%s8802_s5 + $0x50] sm:$0xff] %v3912_v36  ;;  %v3859_v40 = vmul.f32 %v8422_v59, %v9236_v50  ;;  %v3928_v45 = vadd.f32 %v8459_v37, %v3857_v19  ;;  %v9237_v36 = vld [vmem:[#allocation41_spill] sm:$0xff]  ;;  %v3929_v42 = vadd.f32 %v8461_v10, %v3858_v48  ;;  %v9249_v19 = vld [vmem:[#allocation46_spill] sm:$0xff]  ;;  %v9250_v48 = vld [vmem:[#allocation51_spill] sm:$0xff] }
 0x434   :  { %3969 = vst [vmem:[%s8802_s5 + $0x58] sm:$0xff] %v3913_v22  ;;  %v3860_v27 = vmul.f32 %v8424_v26, %v9237_v36  ;;  %v9238_v22 = vld [vmem:[#allocation23_spill] sm:$0xff] }
 0x435   :  { %3970 = vst [vmem:[%s8802_s5 + $0x60] sm:$0xff] %v3914_v61  ;;  %v3861_v33 = vmul.f32 %v8426_v63, %v9238_v22  ;;  %v3930_v23 = vadd.f32 %v8445_v17, %v3859_v40  ;;  %v9239_v61 = vld [vmem:[#allocation70_spill] sm:$0xff]  ;;  %v9251_v40 = vld [vmem:[#allocation72_spill] sm:$0xff] }
 0x436   :  { %3971 = vst.msk [vmem:[%s8802_s5 + $0x68] sm:$0xff] %vm925_vm0, %v3915_v18  ;;  %v3862_v53 = vmul.f32 %v8431_v9, %v9239_v61  ;;  %v3931_v1 = vadd.f32 %v8447_v24, %v3860_v27  ;;  %v9240_v18 = vld [vmem:[#allocation12_spill] sm:$0xff]  ;;  %v9252_v27 = vld [vmem:[#allocation2_spill] sm:$0xff] }
 0x437   :  { %3972 = vst [vmem:[%s8802_s5 + $0x70] sm:$0xff] %v3916_v14  ;;  %v3863_v56 = vmul.f32 %v8433_v51, %v9240_v18  ;;  %v3932_v12 = vadd.f32 %v8449_v28, %v3861_v33  ;;  %v9241_v14 = vld [vmem:[#allocation10_spill] sm:$0xff]  ;;  %v9253_v33 = vld [vmem:[#allocation31_spill] sm:$0xff] }
 0x438   :  { %3973 = vst [vmem:[%s8802_s5 + $0x78] sm:$0xff] %v3917_v60  ;;  %v3864_v35 = vmul.f32 %v8441_v58, %v9241_v14  ;;  %v3933_v38 = vadd.f32 %v8451_v13, %v3862_v53  ;;  %v3865_v60 = vmul.f32 %v8443_v2, %v8248_v46  ;;  %v3879_v53 = vmul.f32 %v8443_v2, %v8264_v52  ;;  %v9254_v18 = vld [vmem:[#allocation11_spill] sm:$0xff]  ;;  %v9255_v14 = vld [vmem:[#allocation48_spill] sm:$0xff] }
 0x439   :  { %3974 = vst [vmem:[%s8802_s5 + $0x80] sm:$0xff] %v3918_v20  ;;  %v3934_v31 = vadd.f32 %v8457_v54, %v3863_v56  ;;  %v9242_v20 = vld [vmem:[#allocation38_spill] sm:$0xff]  ;;  %v3880_v56 = vmul.f32 %v8422_v59, %v9254_v18 }
 0x43a   :  { %3975 = vst [vmem:[%s8802_s5 + $0x88] sm:$0xff] %v3919_v15  ;;  %v3866_v25 = vmul.f32 %v8422_v59, %v9242_v20  ;;  %v3935_v47 = vadd.f32 %v8459_v37, %v3864_v35  ;;  %v9243_v15 = vld [vmem:[#allocation22_spill] sm:$0xff]  ;;  %v3936_v46 = vadd.f32 %v8461_v10, %v3865_v60  ;;  %v3881_v35 = vmul.f32 %v8424_v26, %v9255_v14 }
 0x43b   :  { %3976 = vst [vmem:[%s8802_s5 + $0x90] sm:$0xff] %v3920_v4  ;;  %v3867_v11 = vmul.f32 %v8424_v26, %v9243_v15  ;;  %v9244_v4 = vld [vmem:[#allocation39_spill] sm:$0xff]  ;;  %v3950_v52 = vadd.f32 %v8461_v10, %v3879_v53 }
 0x43c   :  { %3977 = vst [vmem:[%s8802_s5 + $0x98] sm:$0xff] %v3921_v16  ;;  %v3868_v5 = vmul.f32 %v8426_v63, %v9244_v4  ;;  %v3937_v62 = vadd.f32 %v8445_v17, %v3866_v25  ;;  %v9245_v16 = vld [vmem:[#allocation71_spill] sm:$0xff]  ;;  %v9258_v25 = vld [vmem:[#allocation74_spill] sm:$0xff] }
 0x43d   :  { %3978 = vst.msk [vmem:[%s8802_s5 + $0xa0] sm:$0xff] %vm925_vm0, %v3922_v8  ;;  %v3869_v7 = vmul.f32 %v8431_v9, %v9245_v16  ;;  %v3938_v32 = vadd.f32 %v8447_v24, %v3867_v11  ;;  %v9246_v8 = vld [vmem:[#allocation16_spill] sm:$0xff] }
 0x43e   :  { %3979 = vst [vmem:[%s8802_s5 + $0xa8] sm:$0xff] %v3923_v43  ;;  %v3870_v6 = vmul.f32 %v8433_v51, %v9246_v8  ;;  %v3939_v3 = vadd.f32 %v8449_v28, %v3868_v5  ;;  %v9247_v43 = vld [vmem:[#allocation13_spill] sm:$0xff] }
 0x43f   :  { %3980 = vst [vmem:[%s8802_s5 + $0xb0] sm:$0xff] %v3924_v39  ;;  %v3871_v29 = vmul.f32 %v8441_v58, %v9247_v43  ;;  %v3940_v44 = vadd.f32 %v8451_v13, %v3869_v7  ;;  %v3872_v39 = vmul.f32 %v8443_v2, %v8259_v0 }
 0x440   :  { %3981 = vst [vmem:[%s8802_s5 + $0xb8] sm:$0xff] %v3925_v34  ;;  %v3941_v41 = vadd.f32 %v8457_v54, %v3870_v6  ;;  %v3873_v34 = vmul.f32 %v8422_v59, %v9248_v57  ;;  %v3951_v59 = vadd.f32 %v8445_v17, %v3880_v56 }
 0x441   :  { %3982 = vst [vmem:[%s8802_s5 + $0xc0] sm:$0xff] %v3926_v30  ;;  %v3942_v55 = vadd.f32 %v8459_v37, %v3871_v29  ;;  %v3874_v30 = vmul.f32 %v8424_v26, %v9249_v19  ;;  %v3943_v0 = vadd.f32 %v8461_v10, %v3872_v39  ;;  %v3952_v26 = vadd.f32 %v8447_v24, %v3881_v35 }
 0x442   :  { %3983 = vst [vmem:[%s8802_s5 + $0xc8] sm:$0xff] %v3927_v49  ;;  %v3875_v49 = vmul.f32 %v8426_v63, %v9250_v48  ;;  %v3944_v50 = vadd.f32 %v8445_v17, %v3873_v34  ;;  %v9259_v17 = vld [vmem:[#allocation49_spill] sm:$0xff] }
 0x443   :  { %3984 = vst [vmem:[%s8802_s5 + $0xd0] sm:$0xff] %v3928_v45  ;;  %v3876_v45 = vmul.f32 %v8431_v9, %v9251_v40  ;;  %v3945_v36 = vadd.f32 %v8447_v24, %v3874_v30  ;;  %v3885_v15 = vmul.f32 %v8441_v58, %v9259_v17  ;;  %v3886_v24 = vmul.f32 %v8443_v2, %v8269_v21 }
 0x444   :  { %3985 = vst.msk [vmem:[%s8802_s5 + $0xd8] sm:$0xff] %vm925_vm0, %v3929_v42  ;;  %v3877_v42 = vmul.f32 %v8433_v51, %v9252_v27  ;;  %v3946_v22 = vadd.f32 %v8449_v28, %v3875_v49 }
 0x445   :  { %3986 = vst [vmem:[%s8802_s5 + $0xe0] sm:$0xff] %v3930_v23  ;;  %v3878_v23 = vmul.f32 %v8441_v58, %v9253_v33  ;;  %v3947_v61 = vadd.f32 %v8451_v13, %v3876_v45  ;;  %v3957_v58 = vadd.f32 %v8461_v10, %v3886_v24 }
 0x446   :  { %3987 = vst [vmem:[%s8802_s5 + $0xe8] sm:$0xff] %v3931_v1  ;;  %v3948_v1 = vadd.f32 %v8457_v54, %v3877_v42 }
 0x447   :  { %3988 = vst [vmem:[%s8802_s5 + $0xf0] sm:$0xff] %v3932_v12  ;;  %v3949_v12 = vadd.f32 %v8459_v37, %v3878_v23 }
 0x448   :  { %3989 = vst [vmem:[%s8802_s5 + $0xf8] sm:$0xff] %v3933_v38  ;;  %v9256_v38 = vld [vmem:[#allocation58_spill] sm:$0xff] }
 0x449   :  { %3990 = vst [vmem:[%s8802_s5 + $0x100] sm:$0xff] %v3934_v31  ;;  %v3882_v60 = vmul.f32 %v8426_v63, %v9256_v38  ;;  %v9257_v31 = vld [vmem:[#allocation73_spill] sm:$0xff] }
 0x44a   :  { %3991 = vst [vmem:[%s8802_s5 + $0x108] sm:$0xff] %v3935_v47  ;;  %v3883_v20 = vmul.f32 %v8431_v9, %v9257_v31  ;;  %v3884_v47 = vmul.f32 %v8433_v51, %v9258_v25 }
 0x44b   :  { %3992 = vst.msk [vmem:[%s8802_s5 + $0x110] sm:$0xff] %vm925_vm0, %v3936_v46  ;;  %v3953_v63 = vadd.f32 %v8449_v28, %v3882_v60  ;;  %v3956_v28 = vadd.f32 %v8459_v37, %v3885_v15 }
 0x44c   :  { %3993 = vst [vmem:[%s8802_s5 + $0x118] sm:$0xff] %v3937_v62  ;;  %v3954_v9 = vadd.f32 %v8451_v13, %v3883_v20  ;;  %v3955_v51 = vadd.f32 %v8457_v54, %v3884_v47 }
 0x44d   :  { %3994 = vst [vmem:[%s8802_s5 + $0x120] sm:$0xff] %v3938_v32 }
 0x44e   :  { %3995 = vst [vmem:[%s8802_s5 + $0x128] sm:$0xff] %v3939_v3 }
 0x44f   :  { %3996 = vst [vmem:[%s8802_s5 + $0x130] sm:$0xff] %v3940_v44 }
 0x450   :  { %3997 = vst [vmem:[%s8802_s5 + $0x138] sm:$0xff] %v3941_v41 }
 0x451   :  { %3998 = vst [vmem:[%s8802_s5 + $0x140] sm:$0xff] %v3942_v55 }
 0x452   :  { %3999 = vst.msk [vmem:[%s8802_s5 + $0x148] sm:$0xff] %vm925_vm0, %v3943_v0 }
 0x453   :  { %4000 = vst [vmem:[%s8802_s5 + $0x150] sm:$0xff] %v3944_v50 }
 0x454   :  { %4001 = vst [vmem:[%s8802_s5 + $0x158] sm:$0xff] %v3945_v36 }
 0x455   :  { %4002 = vst [vmem:[%s8802_s5 + $0x160] sm:$0xff] %v3946_v22 }
 0x456   :  { %4003 = vst [vmem:[%s8802_s5 + $0x168] sm:$0xff] %v3947_v61 }
 0x457   :  { %4004 = vst [vmem:[%s8802_s5 + $0x170] sm:$0xff] %v3948_v1 }
 0x458   :  { %4005 = vst [vmem:[%s8802_s5 + $0x178] sm:$0xff] %v3949_v12 }
 0x459   :  { %4006 = vst.msk [vmem:[%s8802_s5 + $0x180] sm:$0xff] %vm925_vm0, %v3950_v52 }
 0x45a   :  { %4007 = vst [vmem:[%s8802_s5 + $0x188] sm:$0xff] %v3951_v59 }
 0x45b   :  { %4008 = vst [vmem:[%s8802_s5 + $0x190] sm:$0xff] %v3952_v26 }
 0x45c   :  { %4009 = vst [vmem:[%s8802_s5 + $0x198] sm:$0xff] %v3953_v63 }
 0x45d   :  { %4010 = vst [vmem:[%s8802_s5 + $0x1a0] sm:$0xff] %v3954_v9 }
 0x45e   :  { %4011 = vst [vmem:[%s8802_s5 + $0x1a8] sm:$0xff] %v3955_v51 }
 0x45f   :  { %4012 = vst [vmem:[%s8802_s5 + $0x1b0] sm:$0xff] %v3956_v28 }
 0x460   :  { %4013 = vst.msk [vmem:[%s8802_s5 + $0x1b8] sm:$0xff] %vm925_vm0, %v3957_v58 }

</bundles_post_ra>
